<compile_context>
chip_gen: v7x
topology: tpu7x:2x2x1
jax: 0.10.0
libtpu: 0.0.40
codegen_flags: <defaults>
</compile_context>

<pallas_src>
import jax
import jax.numpy as jnp
from jax.experimental import pallas as pl
from jax.experimental.pallas import tpu as pltpu


_VMEM_LIMIT = 40 << 20  # 40 MiB: < 64 MiB physical VMEM on v7x, raises v5e default.


# ----------------------------------------------------------------------------
# Big layers (fc1, fce1): weight-streaming linear + ReLU, tiled over N only.
# ----------------------------------------------------------------------------
def _linear_relu_kernel(x_ref, w_ref, b_ref, o_ref):
    """y = relu(x @ W + b) for one N tile; full K in a single MXU pass."""
    y = jnp.dot(
        x_ref[...].astype(jnp.bfloat16),      # x tiny, cast in-register
        w_ref[...],                            # bf16 weight tile streamed from HBM
        preferred_element_type=jnp.float32,    # f32 accumulation
    )
    y = jnp.maximum(y + b_ref[...], 0.0)
    o_ref[...] = y.astype(o_ref.dtype)


def linear_relu_streamed(x, w_bf16, b, *, tn=1024):
    """Fused linear+relu; W (bf16) streamed in (K, tn) blocks, x resident."""
    B, K = x.shape
    Kw, N = w_bf16.shape
    assert K == Kw and N % tn == 0
    b2 = b.reshape(1, N)

    return pl.pallas_call(
        _linear_relu_kernel,
        out_shape=jax.ShapeDtypeStruct((B, N), x.dtype),
        grid_spec=pltpu.PrefetchScalarGridSpec(
            num_scalar_prefetch=0,
            grid=(N // tn,),
            in_specs=[
                pl.BlockSpec((B, K), lambda j: (0, 0)),    # x: fully resident
                pl.BlockSpec((K, tn), lambda j: (0, j)),   # W: streamed bf16 tiles
                pl.BlockSpec((1, tn), lambda j: (0, j)),   # bias tile (f32)
            ],
            out_specs=pl.BlockSpec((B, tn), lambda j: (0, j)),
        ),
        compiler_params=pltpu.CompilerParams(
            dimension_semantics=("parallel",),             # N tiles split across TCs
            vmem_limit_bytes=_VMEM_LIMIT,
        ),
    )(x, w_bf16, b2)


# ----------------------------------------------------------------------------
# Tail (fce2..fc8): one kernel, all weights resident in VMEM, chained matmuls.
# ----------------------------------------------------------------------------
def _tail_kernel(*refs):
    h_ref = refs[0]
    o_ref = refs[-1]
    wb = refs[1:-1]                      # interleaved (w, b) refs
    n_layers = len(wb) // 2

    h = h_ref[...]                       # f32 activation
    for i in range(n_layers):
        w = wb[2 * i][...]               # bf16 weight, fully in VMEM
        b = wb[2 * i + 1][...]           # f32 bias (1, N)
        y = jnp.dot(
            h.astype(jnp.bfloat16), w, preferred_element_type=jnp.float32
        ) + b
        if i == n_layers - 1:
            h = jax.nn.sigmoid(y)
        else:
            h = jnp.maximum(y, 0.0)
    o_ref[...] = h.astype(o_ref.dtype)


def fused_tail(h, tail_params):
    """fce2..fc8 (relu x7, sigmoid last) fused in a single pallas_call."""
    B = h.shape[0]
    out_n = tail_params[-1][0].shape[1]

    args = [h]
    in_specs = [pl.BlockSpec(memory_space=pltpu.MemorySpace.VMEM)]
    for (w, b) in tail_params:
        args.append(w)
        args.append(b.reshape(1, -1))
        in_specs.append(pl.BlockSpec(memory_space=pltpu.MemorySpace.VMEM))
        in_specs.append(pl.BlockSpec(memory_space=pltpu.MemorySpace.VMEM))

    return pl.pallas_call(
        _tail_kernel,
        out_shape=jax.ShapeDtypeStruct((B, out_n), h.dtype),
        in_specs=in_specs,
        out_specs=pl.BlockSpec(memory_space=pltpu.MemorySpace.VMEM),
        compiler_params=pltpu.CompilerParams(vmem_limit_bytes=_VMEM_LIMIT),
    )(*args)


# ----------------------------------------------------------------------------
# Model
# ----------------------------------------------------------------------------
_LAYER_DIMS = [
    (2048, 4096),  # fc1
    (4096, 2048),  # fce1
    (2048, 1024),  # fce2
    (1024, 512),   # fc2
    (512, 128),    # fc3
    (128, 64),     # fc4
    (64, 32),      # fc5
    (32, 16),      # fc6
    (16, 8),       # fc7
    (8, 1),        # fc8
]


def init_params(key):
    """PyTorch-like init U(-1/sqrt(fan_in), 1/sqrt(fan_in)); W stored bf16."""
    params = []
    for (fan_in, fan_out) in _LAYER_DIMS:
        key, kw, kb = jax.random.split(key, 3)
        bound = 1.0 / jnp.sqrt(jnp.float32(fan_in))
        w = jax.random.uniform(kw, (fan_in, fan_out), jnp.float32, -bound, bound)
        b = jax.random.uniform(kb, (fan_out,), jnp.float32, -bound, bound)
        params.append((w.astype(jnp.bfloat16), b))
    return params


def binary_classifier_forward(x, params):
    """Forward pass of BinaryClassifier (dropout = identity / eval mode)."""
    (w1, b1), (we1, be1) = params[0], params[1]
    h = linear_relu_streamed(x, w1, b1, tn=1024)    # fc1 + relu
    h = linear_relu_streamed(h, we1, be1, tn=1024)  # fce1 + relu
    return fused_tail(h, params[2:])                # fce2..fc8 fused


def reference_forward(x, params):
    """Pure-JAX reference mirroring the kernel numerics (bf16 W, f32 acc)."""
    h = x
    n = len(params)
    for i, (w, b) in enumerate(params):
        y = jnp.dot(
            h.astype(jnp.bfloat16), w, preferred_element_type=jnp.float32
        ) + b
        h = jax.nn.sigmoid(y) if i == n - 1 else jnp.maximum(y, 0.0)
    return h


if __name__ == "__main__":
    key = jax.random.PRNGKey(0)
    kx, kp = jax.random.split(key)

    B = 2
    x = jax.random.normal(kx, (B, 2048), jnp.float32)
    params = init_params(kp)

    out = binary_classifier_forward(x, params)
    out = jax.block_until_ready(out)

    assert out.shape == (B, 1), out.shape
    assert bool(jnp.all((out >= 0.0) & (out <= 1.0)))

    ref = reference_forward(x, params)
    assert bool(jnp.allclose(out, ref, atol=2e-3, rtol=2e-3)), (
        jnp.max(jnp.abs(out - ref))
    )

    print("KERNEL_OK")
</pallas_src>

<mosaic_0001>
module attributes {stable_mosaic.version = 11 : i64} {
  func.func @_linear_relu_kernel(%arg0: i32, %arg1: memref<2x2048xf32, #tpu.memory_space<vmem>>, %arg2: memref<2048x1024xbf16, #tpu.memory_space<vmem>>, %arg3: memref<1x1024xf32, #tpu.memory_space<vmem>>, %arg4: memref<2x1024xf32, #tpu.memory_space<vmem>>) attributes {dimension_semantics = [#tpu.dimension_semantics<parallel>], iteration_bounds = array<i64: 4>, scalar_prefetch = 0 : i64, scratch_operands = 0 : i64, tpu.core_type = #tpu.core_type<tc>, window_params = [{pipeline_mode = #tpu.pipeline_mode<synchronous>, transform_indices = @transform_0, window_bounds = array<i64: 2, 2048>}, {transform_indices = @transform_1, window_bounds = array<i64: 2048, 1024>}, {transform_indices = @transform_2, window_bounds = array<i64: 1, 1024>}, {transform_indices = @transform_3, window_bounds = array<i64: 2, 1024>}]} {
    %c0 = arith.constant 0 : index
    %c0_0 = arith.constant 0 : index
    %0 = vector.load %arg1[%c0, %c0_0] : memref<2x2048xf32, #tpu.memory_space<vmem>>, vector<2x2048xf32>
    %1 = arith.truncf %0 : vector<2x2048xf32> to vector<2x2048xbf16>
    %c0_1 = arith.constant 0 : index
    %c0_2 = arith.constant 0 : index
    %2 = vector.load %arg2[%c0_1, %c0_2] : memref<2048x1024xbf16, #tpu.memory_space<vmem>>, vector<2048x1024xbf16>
    %cst = arith.constant dense<0.000000e+00> : vector<2x1024xf32>
    %3 = tpu.matmul %1, %2, %cst {dimension_numbers = #tpu.dot_dimension_numbers<[1], [0], [0], [1], [0, 0, 1, 1], [], []>} : vector<2x2048xbf16>, vector<2048x1024xbf16>, vector<2x1024xf32> -> vector<2x1024xf32>
    %c0_3 = arith.constant 0 : index
    %c0_4 = arith.constant 0 : index
    %4 = vector.load %arg3[%c0_3, %c0_4] : memref<1x1024xf32, #tpu.memory_space<vmem>>, vector<1x1024xf32>
    %5 = vector.broadcast %4 : vector<1x1024xf32> to vector<2x1024xf32>
    %6 = arith.addf %3, %5 : vector<2x1024xf32>
    %cst_5 = arith.constant 0.000000e+00 : f32
    %7 = vector.broadcast %cst_5 : f32 to vector<2x1024xf32>
    %8 = arith.maximumf %6, %7 : vector<2x1024xf32>
    %c0_6 = arith.constant 0 : index
    %c0_7 = arith.constant 0 : index
    %9 = vector.load %arg4[%c0_6, %c0_7] : memref<2x1024xf32, #tpu.memory_space<vmem>>, vector<2x1024xf32>
    tpu.vector_store %arg4[%c0_6, %c0_7], %8 {strides = array<i32>} : memref<2x1024xf32, #tpu.memory_space<vmem>>, vector<2x1024xf32>,
    return
  }
  func.func @transform_0(%arg0: i32) -> (i32, i32) {
    %c0_i32 = arith.constant 0 : i32
    %c0_i32_0 = arith.constant 0 : i32
    %c0_i32_1 = arith.constant 0 : i32
    return %c0_i32, %c0_i32_0 : i32, i32
  }
  func.func @transform_1(%arg0: i32) -> (i32, i32) {
    %c0_i32 = arith.constant 0 : i32
    %c0_i32_0 = arith.constant 0 : i32
    return %c0_i32, %arg0 : i32, i32
  }
  func.func @transform_2(%arg0: i32) -> (i32, i32) {
    %c0_i32 = arith.constant 0 : i32
    %c0_i32_0 = arith.constant 0 : i32
    return %c0_i32, %arg0 : i32, i32
  }
  func.func @transform_3(%arg0: i32) -> (i32, i32) {
    %c0_i32 = arith.constant 0 : i32
    %c0_i32_0 = arith.constant 0 : i32
    return %c0_i32, %arg0 : i32, i32
  }
}

</mosaic_0001>

<bundles_post_ra>
// kernel: tpu_custom_call.1
= control target key start
LH: loop header
LB: loop body
LE: loop exit
PB: predicated region body
PF: predicated region fallthrough
CT: control target
= control target key end

     0   :  { %8 = vsyncpa [#allocation3], 0  ;;  %s10900_s0 = inlined_call_operand.hbm [shape: f32[2,2048], index: 0, kind: input, shape index: {}]   ;;  %s10901_s1 = inlined_call_operand.hbm [shape: bf16[2048,4096], index: 1, kind: input, shape index: {}]   ;;  %s10902_s2 = inlined_call_operand.hbm [shape: f32[1,4096], index: 2, kind: input, shape index: {}]   ;;  %s10903_s3 = inlined_call_operand.hbm [shape: f32[2,4096], index: 3, kind: output, shape index: {}]  }
   0x1   :  { %9 = vsyncpa [#allocation6], 0 }
   0x2   :  { %11 = vsyncpa [#allocation6 + $0x1], 0 }
   0x3   :  { %12 = vsyncpa [#allocation4], 0 }
   0x4   :  { %14 = vsyncpa [#allocation4 + $0x1], 0  ;;  %s9443_s12 = smov 0   ;;  %s9445_s13 = smov 0  }
   0x5   :  { %s9447_s14 = smov 0   ;;  %s9449_s15 = smov 0  }
   0x6 LB: > { %s9464_s16 = sadd.s32 1, %s9413_s15   ;;  %s48_s17 = sadd.s32 1, %s9409_s14  ;;  %s9413_s15 = sphi %s9449_s15, %s10929_s15   ;;  %s9409_s14 = sphi %s9447_s14, %s10928_s14   ;;  %s9405_s13 = sphi %s9445_s13, %s10927_s13   ;;  %s9401_s12 = sphi %s9443_s12, %s10926_s12  }
   0x7   : > { %s45_s18 = ssub.s32 %s9413_s15, %s9464_s16  ;;  %p55_p0 = scmp.ne.s32.totalorder %s9409_s14, %s9405_s13 }
   0x8   : > { %p46_p1 = scmp.eq.s32.totalorder %s45_s18, 0  ;;  %p56_p2 = scmp.eq.s32.totalorder %s9413_s15, 0 }
   0x9   : > { %p9210_p3 = scmp.lt.s32.totalorder %s9413_s15, 4  ;;  %s148_s20 = sand.u32 1, %s9413_s15  }
   0xa   : > { %s9474_s19 = scalar_select %p46_p1, %s9409_s14, %s48_s17  }
   0xb   : > { %p57_p4 = por %p56_p2, %p55_p0  ;;  %s150_s21 = sand.u32 1, %s9409_s14  }
   0xc   : > { %s8021_s22 = sshll.u32 %s150_s21, 13  ;;  %s9061_s23 = sshll.u32 %s9413_s15, 9 }
   0xd   : > { %s9487_s26 = scalar_lea.hbm %s10901_s1, %s9061_s23  ;;  %s152_s27 = scalar_lea.vmem [#allocation5], %s8021_s22 }
   0xe   : > { %s159_s28 = sshll.u32 %s152_s27, 4  ;;  %p9489_p5 = pnand %p9210_p3, %p57_p4  ;;  %s9493_s28 = int_to_ptr.vmem [resolvable:$true] %s159_s28 }
   0xf   : > { %s9495_s30 = scalar_lea.sflag [#allocation6], %s148_s20  ;;  %s9255_s4 = scalar_lea.hbm %s9487_s26, 131072 }
  0x10   : > { %s10911_s29 = scalar_select %p9489_p5, 1, 0 }
  0x11   : > { %p9256_p6 = scmp.ne.s32.totalorder %s9487_s26, %s9255_s4  ;;  %p10905_p7 = pneg %p9489_p5 }
  0x12   : > { %s9260_s7 = scalar_lea.hbm %s10901_s1, 524288  ;;  %p9261_p10 = scmp.lt.u32.totalorder %s9487_s26, %s10901_s1 }
  0x13   : > { %p9258_p8 = pnand %p10905_p7, %p9256_p6  ;;  %p9262_p11 = scmp.lt.u32.totalorder %s9260_s7, %s9255_s4 }
  0x14   : > { %p9264_p13 = scmp.lt.u32.totalorder %s9255_s4, %s9487_s26 }
  0x15   : > { %p9259_p9 = pneg %p9258_p8  ;;  %p9263_p12 = por %p9262_p11, %p9261_p10 }
  0x17   : > { %p9265_p1 = por %p9264_p13, %p9263_p12 }
  0x19   : > { %p9266_p2 = pnand %p9265_p1, %p9259_p9 }
  0x1b   : > { %9269 = shalt.err (!%p9266_p2)
}
  0x1c   : > { %s9270_s10 = scalar_lea.vmem %s9493_s28, 131072  ;;  %s9415_s11 = smov [#allocation5]  }
  0x1d   : > { %p9271_p3 = scmp.ne.s32.totalorder %s9493_s28, %s9270_s10  ;;  %s9275_s17 = sshll.u32 %s9415_s11, 4  ;;  %s9276_s17 = int_to_ptr.vmem [resolvable:$false] %s9275_s17 }
  0x1e   : > { %s9277_s18 = scalar_lea.vmem %s9276_s17, 262144  ;;  %p9278_p8 = scmp.lt.s32.totalorder %s9493_s28, %s9276_s17 }
  0x1f   : > { %p9273_p4 = pnand %p9271_p3, %p10905_p7  ;;  %p9279_p10 = scmp.lt.s32.totalorder %s9277_s18, %s9270_s10 }
  0x21   : > { %p9274_p6 = pneg %p9273_p4  ;;  %p9280_p11 = por %p9279_p10, %p9278_p8 }
  0x23   : > { %p9281_p12 = pnand %p9280_p11, %p9274_p6 }
  0x25   : > { %9284 = shalt.err (!%p9281_p12)
}
  0x26   : > { %s9416_s20 = smov 2048   ;;  %s9417_s22 = smov 512  }
  0x27   : > { %s9418_s23 = smov 32   ;;  %s9524_s24 = sadd.s32 4294967295, %s9413_s15  }
  0x28   : > { %9201 = dma.hbm_to_vmem [thread:$0]  (!%p9489_p5), %s9487_s26, 131072, %s9493_s28, %s9495_s30, %s9416_s20, %s9417_s22, %s9418_s23  }
  0x29   : > { %s8017_s25 = sadd.s32 4294967294, %s9413_s15   ;;  %p61_p9 = scmp.ne.s32.totalorder %s9405_s13, %s9401_s12 }
  0x2a   : > { %p10904_p13 = scmp.eq.s32.totalorder %s9524_s24, 0  ;;  %p111_p1 = scmp.eq.s32.totalorder %s9524_s24, 3 }
  0x2b   : > { %p117_p2 = scmp.eq.s32.totalorder %s8017_s25, 3  ;;  %p8018_p3 = scmp.ge.s32.totalorder %s9413_s15, 1 }
  0x2c   : > { %p9534_p4 = por %p10904_p13, %p61_p9  ;;  %p9541_p6 = por %p111_p1, %p55_p0 }
  0x2d   : > { %p9545_p8 = por %p117_p2, %p61_p9  ;;  %p124_p10 = scmp.lt.s32.totalorder %s9413_s15, 5 }
  0x2e   : > { %s10912_s27 = scalar_select %p9534_p4, 1, 0 }
  0x2f   : > { %s10913_s26 = scalar_select %p9541_p6, 1, 0 }
  0x30   : > { %s10914_s28 = scalar_select %p9545_p8, 1, 0 }
  0x31   : > { %p9550_p11 = pnand %p8018_p3, %p124_p10  ;;  %s9419_s5 = smov [#allocation2]  }
  0x32   : > { %s137_s6 = sshll.u32 %s9419_s5, 4  ;;  %s8024_s7 = sshll.u32 %s150_s21, 3  ;;  %s138_s6 = int_to_ptr.vmem [resolvable:$true] %s137_s6 }
  0x33   : > { %s10915_s4 = scalar_select %p9550_p11, 1, 0 }
  0x34   : > { %p9194_p12 = pneg %p9550_p11  ;;  %s9062_s8 = sshll.u32 %s9413_s15, 7 }
  0x35   : > { %s173_s9 = scalar_lea.vmem [#allocation7], %s8024_s7  ;;  %s9568_s20 = scalar_lea.hbm %s10902_s2, %s9062_s8 }
  0x36   : > { %s181_s10 = sshll.u32 %s173_s9, 4  ;;  %p9561_p0 = pnand %p9194_p12, %p10904_p13  ;;  %s9570_s10 = int_to_ptr.vmem [resolvable:$true] %s181_s10 }
  0x37   : > { %s9285_s23 = scalar_lea.hbm %s10900_s0, 512 }
  0x38   : > { %p9286_p9 = scmp.ne.s32.totalorder %s10900_s0, %s9285_s23  ;;  %p9287_p1 = pneg %p9561_p0 }
  0x39   : > { %p9292_p10 = scmp.lt.u32.totalorder %s9285_s23, %s10900_s0 }
  0x3a   : > { %p9288_p2 = pnand %p9287_p1, %p9286_p9 }
  0x3c   : > { %p9289_p3 = pneg %p9288_p2 }
  0x3e   : > { %p9294_p12 = pnand %p9292_p10, %p9289_p3 }
  0x40   : > { %9297 = shalt.err (!%p9294_p12)
}
  0x41   : > { %s9298_s8 = scalar_lea.vmem %s138_s6, 512  ;;  %p9306_p6 = scmp.lt.s32.totalorder %s138_s6, %s138_s6 }
  0x42   : > { %p9299_p13 = scmp.ne.s32.totalorder %s138_s6, %s9298_s8  ;;  %p9307_p4 = scmp.lt.s32.totalorder %s9298_s8, %s9298_s8 }
  0x44   : > { %p9301_p7 = pnand %p9299_p13, %p9287_p1  ;;  %p9308_p11 = por %p9307_p4, %p9306_p6 }
  0x46   : > { %p9302_p8 = pneg %p9301_p7 }
  0x48   : > { %p9309_p5 = pnand %p9308_p11, %p9302_p8 }
  0x4a   : > { %9312 = shalt.err (!%p9309_p5)
}
  0x4b   : > { %9197 = dma.hbm_to_vmem [thread:$0]  (!%p9561_p0), %s10900_s0, 512, %s138_s6, [#allocation3]  }
  0x4c   : > { %s9313_s21 = scalar_lea.hbm %s9568_s20, 128  ;;  %p10917_p13 = scmp.ne.s32.totalorder %s10911_s29, 0 }
  0x4d   : > { %p9314_p9 = scmp.ne.s32.totalorder %s9568_s20, %s9313_s21  ;;  %s9318_s25 = scalar_lea.hbm %s10902_s2, 512 }
  0x4e   : > { %p10918_p7 = pneg %p10917_p13  ;;  %p9319_p5 = scmp.lt.u32.totalorder %s9568_s20, %s10902_s2 }
  0x4f   : > { %p9320_p4 = scmp.lt.u32.totalorder %s9318_s25, %s9313_s21  ;;  %p9322_p8 = scmp.lt.u32.totalorder %s9313_s21, %s9568_s20 }
  0x50   : > { %p9316_p1 = pnand %p9314_p9, %p10918_p7 }
  0x51   : > { %p9321_p6 = por %p9320_p4, %p9319_p5 }
  0x52   : > { %p9317_p2 = pneg %p9316_p1 }
  0x53   : > { %p9323_p11 = por %p9322_p8, %p9321_p6 }
  0x55   : > { %p9324_p3 = pnand %p9323_p11, %p9317_p2 }
  0x57   : > { %9327 = shalt.err (!%p9324_p3)
}
  0x58   : > { %s9328_s6 = scalar_lea.vmem %s9570_s10, 128  ;;  %p10919_p10 = pmov %p10918_p7 }
  0x59   : > { %p9329_p0 = scmp.ne.s32.totalorder %s9570_s10, %s9328_s6  ;;  %s9420_s7 = smov [#allocation7]  }
  0x5a   : > { %s9333_s9 = sshll.u32 %s9420_s7, 4  ;;  %s9334_s9 = int_to_ptr.vmem [resolvable:$false] %s9333_s9 }
  0x5b   : > { %p9331_p12 = pnand %p9329_p0, %p10919_p10  ;;  %s9335_s8 = scalar_lea.vmem %s9334_s9, 256 }
  0x5c   : > { %p9336_p7 = scmp.lt.s32.totalorder %s9570_s10, %s9334_s9  ;;  %p9337_p1 = scmp.lt.s32.totalorder %s9335_s8, %s9328_s6 }
  0x5d   : > { %p9332_p9 = pneg %p9331_p12 }
  0x5e   : > { %p9338_p5 = por %p9337_p1, %p9336_p7 }
  0x60   : > { %p9339_p4 = pnand %p9338_p5, %p9332_p9 }
  0x62   : > { %9342 = shalt.err (!%p9339_p4)
}
  0x63   : > { %9204 = dma.hbm_to_vmem [thread:$0]  (!%p10917_p13), %s9568_s20, 128, %s9570_s10, %s9495_s30  }
  0x64   : > { %p10920_p2 = scmp.ne.s32.totalorder %s10915_s4, 0 }
  0x65   : > { %p10921_p6 = scmp.eq.s32.totalorder (!%p10920_p2), %s9524_s24, 0 }
  0x66   : > { %190 = sbr.rel (%p10920_p2) target bundleno = 1380 (0x564), region = 32 }
  0x6d   : > { %9388 = dma.done.wait (%p10921_p6), [#allocation3], 512   ;;  %p10922_p8 = pmov %p10921_p6 }
  0x6e   : > { %s196_s17 = sand.u32 1, %s9524_s24   ;;  %s9620_s18 = sand.u32 1, %s9405_s13  }
  0x6f   : > { %9390 = vsyncadd (%p10922_p8), [#allocation3], 4294966784  ;;  %s8029_s29 = sshll.u32 %s9620_s18, 13  ;;  %s197_s21 = scalar_lea.sflag [#allocation6], %s196_s17 }
  0x70   : > { %s9623_s22 = scalar_lea.vmem [#allocation5], %s8029_s29  ;;  %p10923_p13 = scmp.ne.s32.totalorder %s10912_s27, 0 }
  0x72   : > { %9392 = dma.done.wait (%p10923_p13), %s197_s21, 131200  }
  0x73   : > { %9394 = vsyncadd (%p10923_p13), %s197_s21, 4294836096  ;;  %v348_v0 = vld [vmem:[%s9623_s22] sm:$0xff]  ;;  %v349_v2 = vld [vmem:[%s9623_s22 + $0x8] sm:$0xff]  ;;  %v9421_v32 = vmov 1983009808   ;;  %v252_v34 = vlaneseq  ;;  %s8030_s30 = sshll.u32 %s9620_s18, 3 }
  0x74   : > { %v352_v1 = vld [vmem:[%s9623_s22 + $0x20] sm:$0xff]  ;;  %v353_v4 = vld [vmem:[%s9623_s22 + $0x28] sm:$0xff]  ;;  %v250_v33 = vunpack.c.l.s4 %v9421_v32  ;;  %s10518_s27 = scalar_lea.vmem [#allocation7], %s8030_s30  ;;  %s8031_s4 = sshll.u32 %s9620_s18, 4 }
  0x75   : > { %v8033_v3 = vcombine.high %v348_v0, %v352_v1  ;;  %v8032_v5 = vcombine.low %v348_v0, %v352_v1  ;;  %v356_v6 = vld [vmem:[%s9623_s22 + $0x40] sm:$0xff]  ;;  %v8035_v8 = vcombine.high %v349_v2, %v353_v4  ;;  %v8034_v9 = vcombine.low %v349_v2, %v353_v4  ;;  %v357_v11 = vld [vmem:[%s9623_s22 + $0x48] sm:$0xff]  ;;  %s10547_s10 = scalar_lea.vmem [#allocation8], %s8031_s4  ;;  %s9063_s20 = sshll.u32 %s9524_s24, 8 }
  0x76   : > { %v360_v7 = vld [vmem:[%s9623_s22 + $0x60] sm:$0xff]  ;;  %v361_v12 = vld [vmem:[%s9623_s22 + $0x68] sm:$0xff]  ;;  %v251_v43 = vunpack.c.0.s8 %v250_v33  ;;  %v9651_v44 = vshrl.u32 %v252_v34, 7  ;;  %s7915_s23 = sshll.u32 %s10547_s10, 4  ;;  %s10856_s5 = scalar_lea.hbm %s10903_s3, %s9063_s20  ;;  %s10858_s23 = int_to_ptr.vmem [resolvable:$true] %s7915_s23 }
  0x77   : > { %v8041_v10 = vcombine.high %v356_v6, %v360_v7  ;;  %v364_v13 = vld [vmem:[%s9623_s22 + $0x80] sm:$0xff]  ;;  %6534 = vmatprep.subr.bf16.mxu0 %v8033_v3  ;;  %v8043_v14 = vcombine.high %v357_v11, %v361_v12  ;;  %v365_v16 = vld [vmem:[%s9623_s22 + $0x88] sm:$0xff]  ;;  %6862 = vmatprep.subr.bf16.mxu1 %v8035_v8  ;;  %v8040_v18 = vcombine.low %v356_v6, %v360_v7  ;;  %s7901_s6 = scalar_lea.sflag [#allocation4], %s9620_s18  ;;  %s9343_s7 = scalar_lea.vmem %s10858_s23, 256 }
  0x78   : > { %v368_v15 = vld [vmem:[%s9623_s22 + $0xa0] sm:$0xff]  ;;  %v369_v17 = vld [vmem:[%s9623_s22 + $0xa8] sm:$0xff]  ;;  %6535 = vmatpush1.bf16.msra.mxu0 %v8032_v5  ;;  %6863 = vmatpush1.bf16.msra.mxu1 %v8034_v9  ;;  %v8042_v19 = vcombine.low %v357_v11, %v361_v12  ;;  %v9658_v53 = vsub.s32 %v251_v43, %v9651_v44  ;;  %p9344_p11 = scmp.ne.s32.totalorder %s10858_s23, %s9343_s7  ;;  %p10924_p3 = scmp.ne.s32.totalorder %s10913_s26, 0 }
  0x79   : > { %6536 = vmatprep.subr.bf16.mxu0 %v8041_v10  ;;  %v8049_v20 = vcombine.high %v364_v13, %v368_v15  ;;  %6864 = vmatprep.subr.bf16.mxu1 %v8043_v14  ;;  %v8051_v21 = vcombine.high %v365_v16, %v369_v17  ;;  %v372_v22 = vld [vmem:[%s9623_s22 + $0xc0] sm:$0xff]  ;;  %v373_v24 = vld [vmem:[%s9623_s22 + $0xc8] sm:$0xff]  ;;  %v8048_v26 = vcombine.low %v364_v13, %v368_v15  ;;  %s9422_s24 = smov [#allocation8]  }
  0x7a   : > { %v376_v23 = vld [vmem:[%s9623_s22 + $0xe0] sm:$0xff]  ;;  %v377_v25 = vld [vmem:[%s9623_s22 + $0xe8] sm:$0xff]  ;;  %v8050_v27 = vcombine.low %v365_v16, %v369_v17  ;;  %p9345_p0 = pnand %p9344_p11, %p10924_p3  ;;  %s9347_s9 = sshll.u32 %s9422_s24, 4  ;;  %s9348_s9 = int_to_ptr.vmem [resolvable:$false] %s9347_s9 }
  0x7b   : > { %v8057_v28 = vcombine.high %v372_v22, %v376_v23  ;;  %v8059_v29 = vcombine.high %v373_v24, %v377_v25  ;;  %v380_v30 = vld [vmem:[%s9623_s22 + $0x100] sm:$0xff]  ;;  %v381_v35 = vld [vmem:[%s9623_s22 + $0x108] sm:$0xff]  ;;  %v8056_v37 = vcombine.low %v372_v22, %v376_v23  ;;  %v8058_v38 = vcombine.low %v373_v24, %v377_v25  ;;  %s9349_s8 = scalar_lea.vmem %s9348_s9, 512  ;;  %p9350_p12 = scmp.lt.s32.totalorder %s10858_s23, %s9348_s9 }
  0x7c   : > { %6537 = vmatpush1.bf16.msra.mxu0 %v8040_v18  ;;  %6865 = vmatpush1.bf16.msra.mxu1 %v8042_v19  ;;  %v384_v31 = vld [vmem:[%s9623_s22 + $0x120] sm:$0xff]  ;;  %v385_v36 = vld [vmem:[%s9623_s22 + $0x128] sm:$0xff]  ;;  %p9346_p10 = pneg %p9345_p0  ;;  %p9351_p9 = scmp.lt.s32.totalorder %s9349_s8, %s9343_s7 }
  0x7d   : > { %6538 = vmatprep.subr.bf16.mxu0 %v8049_v20  ;;  %6866 = vmatprep.subr.bf16.mxu1 %v8051_v21  ;;  %v8065_v39 = vcombine.high %v380_v30, %v384_v31  ;;  %v8067_v40 = vcombine.high %v381_v35, %v385_v36  ;;  %v388_v41 = vld [vmem:[%s9623_s22 + $0x140] sm:$0xff]  ;;  %v389_v45 = vld [vmem:[%s9623_s22 + $0x148] sm:$0xff]  ;;  %v8064_v47 = vcombine.low %v380_v30, %v384_v31 }
  0x7e   : > { %v392_v42 = vld [vmem:[%s9623_s22 + $0x160] sm:$0xff]  ;;  %v393_v46 = vld [vmem:[%s9623_s22 + $0x168] sm:$0xff]  ;;  %v8066_v48 = vcombine.low %v381_v35, %v385_v36  ;;  %p9352_p7 = por %p9351_p9, %p9350_p12 }
  0x7f   : > { %v8073_v49 = vcombine.high %v388_v41, %v392_v42  ;;  %v8075_v50 = vcombine.high %v389_v45, %v393_v46  ;;  %v396_v51 = vld [vmem:[%s9623_s22 + $0x180] sm:$0xff]  ;;  %v397_v54 = vld [vmem:[%s9623_s22 + $0x188] sm:$0xff]  ;;  %v8072_v56 = vcombine.low %v388_v41, %v392_v42  ;;  %v8074_v57 = vcombine.low %v389_v45, %v393_v46 }
  0x80   : > { %6539 = vmatpush1.bf16.msra.mxu0 %v8048_v26  ;;  %6867 = vmatpush1.bf16.msra.mxu1 %v8050_v27  ;;  %v400_v52 = vld [vmem:[%s9623_s22 + $0x1a0] sm:$0xff]  ;;  %v401_v55 = vld [vmem:[%s9623_s22 + $0x1a8] sm:$0xff]  ;;  %p9353_p1 = pnand %p9352_p7, %p9346_p10 }
  0x81   : > { %6540 = vmatprep.subr.bf16.mxu0 %v8057_v28  ;;  %6868 = vmatprep.subr.bf16.mxu1 %v8059_v29  ;;  %v8081_v58 = vcombine.high %v396_v51, %v400_v52  ;;  %v9662_v59 = vld [vmem:[#allocation2] sm:$0xff]  ;;  %v8083_v60 = vcombine.high %v397_v54, %v401_v55  ;;  %v405_v0 = vld [vmem:[%s9623_s22 + $0x1c8] sm:$0xff]  ;;  %v8080_v2 = vcombine.low %v396_v51, %v400_v52 }
  0x82   : > { %v404_v61 = vld [vmem:[%s9623_s22 + $0x1c0] sm:$0xff]  ;;  %v9668_v63 = vrot.slane %v9662_v59, %v9658_v53  ;;  %v409_v1 = vld [vmem:[%s9623_s22 + $0x1e8] sm:$0xff]  ;;  %v8082_v4 = vcombine.low %v397_v54, %v401_v55 }
  0x83   : > { %v408_v62 = vld [vmem:[%s9623_s22 + $0x1e0] sm:$0xff]  ;;  %v8091_v6 = vcombine.high %v405_v0, %v409_v1  ;;  %v413_v10 = vld [vmem:[%s9623_s22 + $0x208] sm:$0xff]  ;;  %v8090_v13 = vcombine.low %v405_v0, %v409_v1 }
  0x84   : > { %6541 = vmatpush1.bf16.msra.mxu0 %v8056_v37  ;;  %6869 = vmatpush1.bf16.msra.mxu1 %v8058_v38  ;;  %v263_v3 = vcombine.high %v9668_v63, %v9668_v63  ;;  %v8089_v5 = vcombine.high %v404_v61, %v408_v62  ;;  %v412_v7 = vld [vmem:[%s9623_s22 + $0x200] sm:$0xff]  ;;  %v417_v11 = vld [vmem:[%s9623_s22 + $0x228] sm:$0xff]  ;;  %v8088_v12 = vcombine.low %v404_v61, %v408_v62 }
  0x85   : > { %6542 = vmatprep.subr.bf16.mxu0 %v8065_v39  ;;  %6870 = vmatprep.subr.bf16.mxu1 %v8067_v40  ;;  %v416_v8 = vld [vmem:[%s9623_s22 + $0x220] sm:$0xff]  ;;  %v8099_v15 = vcombine.high %v413_v10, %v417_v11  ;;  %v421_v18 = vld [vmem:[%s9623_s22 + $0x248] sm:$0xff]  ;;  %v8098_v21 = vcombine.low %v413_v10, %v417_v11 }
  0x86   : > { %v9676_v9 = vpack.c.bf16 %v263_v3, %v263_v3  ;;  %v8097_v14 = vcombine.high %v412_v7, %v416_v8  ;;  %v420_v16 = vld [vmem:[%s9623_s22 + $0x240] sm:$0xff]  ;;  %v425_v19 = vld [vmem:[%s9623_s22 + $0x268] sm:$0xff]  ;;  %v8096_v20 = vcombine.low %v412_v7, %v416_v8 }
  0x87   : > { %v424_v17 = vld [vmem:[%s9623_s22 + $0x260] sm:$0xff]  ;;  %v8107_v23 = vcombine.high %v421_v18, %v425_v19  ;;  %v429_v26 = vld [vmem:[%s9623_s22 + $0x288] sm:$0xff]  ;;  %v8106_v29 = vcombine.low %v421_v18, %v425_v19 }
  0x88   : > { %6543 = vmatpush1.bf16.msra.mxu0 %v8064_v47  ;;  %6871 = vmatpush1.bf16.msra.mxu1 %v8066_v48  ;;  %v8105_v22 = vcombine.high %v420_v16, %v424_v17  ;;  %v428_v24 = vld [vmem:[%s9623_s22 + $0x280] sm:$0xff]  ;;  %v433_v27 = vld [vmem:[%s9623_s22 + $0x2a8] sm:$0xff]  ;;  %v8104_v28 = vcombine.low %v420_v16, %v424_v17 }
  0x89   : > { %6544 = vmatprep.subr.bf16.mxu0 %v8073_v49  ;;  %6872 = vmatprep.subr.bf16.mxu1 %v8075_v50  ;;  %v432_v25 = vld [vmem:[%s9623_s22 + $0x2a0] sm:$0xff]  ;;  %v8115_v31 = vcombine.high %v429_v26, %v433_v27  ;;  %v437_v34 = vld [vmem:[%s9623_s22 + $0x2c8] sm:$0xff]  ;;  %v8114_v37 = vcombine.low %v429_v26, %v433_v27 }
  0x8a   : > { %6566 = vmatprep.mubr.bf16.mxu0 %v9676_v9  ;;  %6894 = vmatprep.mubr.bf16.mxu1 %v9676_v9  ;;  %v8113_v30 = vcombine.high %v428_v24, %v432_v25  ;;  %v436_v32 = vld [vmem:[%s9623_s22 + $0x2c0] sm:$0xff]  ;;  %v441_v35 = vld [vmem:[%s9623_s22 + $0x2e8] sm:$0xff]  ;;  %v8112_v36 = vcombine.low %v428_v24, %v432_v25  ;;  %v9725_v25 = vpack.c.bf16 %v9668_v63, %v9668_v63 }
  0x8b   : > { %v440_v33 = vld [vmem:[%s9623_s22 + $0x2e0] sm:$0xff]  ;;  %v8123_v39 = vcombine.high %v437_v34, %v441_v35  ;;  %v445_v42 = vld [vmem:[%s9623_s22 + $0x308] sm:$0xff]  ;;  %v8122_v46 = vcombine.low %v437_v34, %v441_v35 }
  0x8c   : > { %6545 = vmatpush1.bf16.msra.mxu0 %v8072_v56  ;;  %6873 = vmatpush1.bf16.msra.mxu1 %v8074_v57  ;;  %v8121_v38 = vcombine.high %v436_v32, %v440_v33  ;;  %v444_v40 = vld [vmem:[%s9623_s22 + $0x300] sm:$0xff]  ;;  %v449_v43 = vld [vmem:[%s9623_s22 + $0x328] sm:$0xff]  ;;  %v8120_v45 = vcombine.low %v436_v32, %v440_v33 }
  0x8d   : > { %6546 = vmatprep.subr.bf16.mxu0 %v8081_v58  ;;  %6874 = vmatprep.subr.bf16.mxu1 %v8083_v60  ;;  %v448_v41 = vld [vmem:[%s9623_s22 + $0x320] sm:$0xff]  ;;  %v8131_v48 = vcombine.high %v445_v42, %v449_v43  ;;  %v453_v51 = vld [vmem:[%s9623_s22 + $0x348] sm:$0xff]  ;;  %v8130_v55 = vcombine.low %v445_v42, %v449_v43 }
  0x8e   : > { %v8129_v47 = vcombine.high %v444_v40, %v448_v41  ;;  %v452_v49 = vld [vmem:[%s9623_s22 + $0x340] sm:$0xff]  ;;  %v457_v52 = vld [vmem:[%s9623_s22 + $0x368] sm:$0xff]  ;;  %v8128_v54 = vcombine.low %v444_v40, %v448_v41 }
  0x8f   : > { %v456_v50 = vld [vmem:[%s9623_s22 + $0x360] sm:$0xff]  ;;  %v8139_v57 = vcombine.high %v453_v51, %v457_v52  ;;  %v461_v61 = vld [vmem:[%s9623_s22 + $0x388] sm:$0xff]  ;;  %v8138_v1 = vcombine.low %v453_v51, %v457_v52 }
  0x90   : > { %6547 = vmatpush1.bf16.msra.mxu0 %v8080_v2  ;;  %6875 = vmatpush1.bf16.msra.mxu1 %v8082_v4  ;;  %v8137_v56 = vcombine.high %v452_v49, %v456_v50  ;;  %v460_v58 = vld [vmem:[%s9623_s22 + $0x380] sm:$0xff]  ;;  %v465_v62 = vld [vmem:[%s9623_s22 + $0x3a8] sm:$0xff]  ;;  %v8136_v0 = vcombine.low %v452_v49, %v456_v50 }
  0x91   : > { %6548 = vmatprep.subr.bf16.mxu0 %v8089_v5  ;;  %6876 = vmatprep.subr.bf16.mxu1 %v8091_v6  ;;  %v464_v60 = vld [vmem:[%s9623_s22 + $0x3a0] sm:$0xff]  ;;  %v8147_v3 = vcombine.high %v461_v61, %v465_v62  ;;  %v248_v6 = vcombine.high %v9662_v59, %v9662_v59  ;;  %v469_v7 = vld [vmem:[%s9623_s22 + $0x3c8] sm:$0xff]  ;;  %v8146_v11 = vcombine.low %v461_v61, %v465_v62 }
  0x92   : > { %v8145_v2 = vcombine.high %v460_v58, %v464_v60  ;;  %v468_v4 = vld [vmem:[%s9623_s22 + $0x3c0] sm:$0xff]  ;;  %v473_v8 = vld [vmem:[%s9623_s22 + $0x3e8] sm:$0xff]  ;;  %v8144_v10 = vcombine.low %v460_v58, %v464_v60 }
  0x93   : > { %v472_v5 = vld [vmem:[%s9623_s22 + $0x3e0] sm:$0xff]  ;;  %v9715_v16 = vrot.slane %v248_v6, %v9658_v53  ;;  %v477_v59 = vld [vmem:[%s9623_s22 + $0x408] sm:$0xff]  ;;  %v8154_v19 = vcombine.low %v469_v7, %v473_v8 }
  0x94   : > { %6549 = vmatpush1.bf16.msra.mxu0 %v8088_v12  ;;  %6877 = vmatpush1.bf16.msra.mxu1 %v8090_v13  ;;  %v8153_v12 = vcombine.high %v468_v4, %v472_v5  ;;  %v8155_v13 = vcombine.high %v469_v7, %v473_v8  ;;  %v481_v17 = vld [vmem:[%s9623_s22 + $0x428] sm:$0xff]  ;;  %v8152_v18 = vcombine.low %v468_v4, %v472_v5  ;;  %v492_v32 = vld [vmem:[%s9623_s22 + $0x480] sm:$0xff] }
  0x95   : > { %6550 = vmatprep.subr.bf16.mxu0 %v8097_v14  ;;  %6878 = vmatprep.subr.bf16.mxu1 %v8099_v15  ;;  %v476_v14 = vld [vmem:[%s9623_s22 + $0x400] sm:$0xff]  ;;  %v264_v24 = vcombine.high %v9715_v16, %v9715_v16  ;;  %v485_v26 = vld [vmem:[%s9623_s22 + $0x448] sm:$0xff] }
  0x96   : > { %v480_v15 = vld [vmem:[%s9623_s22 + $0x420] sm:$0xff]  ;;  %v489_v27 = vld [vmem:[%s9623_s22 + $0x468] sm:$0xff] }
  0x97   : > { %v496_v33 = vld [vmem:[%s9623_s22 + $0x4a0] sm:$0xff]  ;;  %v9731_v34 = vpack.c.bf16 %v264_v24, %v264_v24  ;;  %v493_v63 = vld [vmem:[%s9623_s22 + $0x488] sm:$0xff] }
  0x98   : > { %6551 = vmatpush1.bf16.msra.mxu0 %v8096_v20  ;;  %6879 = vmatpush1.bf16.msra.mxu1 %v8098_v21  ;;  %v8161_v20 = vcombine.high %v476_v14, %v480_v15  ;;  %v8163_v21 = vcombine.high %v477_v59, %v481_v17  ;;  %v497_v35 = vld [vmem:[%s9623_s22 + $0x4a8] sm:$0xff]  ;;  %v500_v40 = vld [vmem:[%s9623_s22 + $0x4c0] sm:$0xff] }
  0x99   : > { %6552 = vmatprep.subr.bf16.mxu0 %v8105_v22  ;;  %6880 = vmatprep.subr.bf16.mxu1 %v8107_v23  ;;  %v484_v22 = vld [vmem:[%s9623_s22 + $0x440] sm:$0xff]  ;;  %v501_v42 = vld [vmem:[%s9623_s22 + $0x4c8] sm:$0xff] }
  0x9a   : > { %v488_v23 = vld [vmem:[%s9623_s22 + $0x460] sm:$0xff]  ;;  %v505_v43 = vld [vmem:[%s9623_s22 + $0x4e8] sm:$0xff] }
  0x9b   : > { %v504_v41 = vld [vmem:[%s9623_s22 + $0x4e0] sm:$0xff]  ;;  %v509_v51 = vld [vmem:[%s9623_s22 + $0x508] sm:$0xff] }
  0x9c   : > { %6553 = vmatpush1.bf16.msra.mxu0 %v8104_v28  ;;  %6881 = vmatpush1.bf16.msra.mxu1 %v8106_v29  ;;  %v8160_v28 = vcombine.low %v476_v14, %v480_v15  ;;  %v8162_v29 = vcombine.low %v477_v59, %v481_v17  ;;  %v508_v49 = vld [vmem:[%s9623_s22 + $0x500] sm:$0xff]  ;;  %v513_v52 = vld [vmem:[%s9623_s22 + $0x528] sm:$0xff] }
  0x9d   : > { %6554 = vmatprep.subr.bf16.mxu0 %v8113_v30  ;;  %6882 = vmatprep.subr.bf16.mxu1 %v8115_v31  ;;  %v8169_v30 = vcombine.high %v484_v22, %v488_v23  ;;  %v8171_v31 = vcombine.high %v485_v26, %v489_v27  ;;  %v512_v50 = vld [vmem:[%s9623_s22 + $0x520] sm:$0xff]  ;;  %v517_v61 = vld [vmem:[%s9623_s22 + $0x548] sm:$0xff] }
  0x9e   : > { %v516_v58 = vld [vmem:[%s9623_s22 + $0x540] sm:$0xff]  ;;  %v521_v62 = vld [vmem:[%s9623_s22 + $0x568] sm:$0xff] }
  0x9f   : > { %v520_v60 = vld [vmem:[%s9623_s22 + $0x560] sm:$0xff]  ;;  %v525_v6 = vld [vmem:[%s9623_s22 + $0x588] sm:$0xff] }
  0xa0   : > { %6555 = vmatpush1.bf16.msra.mxu0 %v8112_v36  ;;  %6883 = vmatpush1.bf16.msra.mxu1 %v8114_v37  ;;  %v8168_v36 = vcombine.low %v484_v22, %v488_v23  ;;  %v8170_v37 = vcombine.low %v485_v26, %v489_v27  ;;  %v524_v4 = vld [vmem:[%s9623_s22 + $0x580] sm:$0xff]  ;;  %v529_v7 = vld [vmem:[%s9623_s22 + $0x5a8] sm:$0xff]  ;;  %v8200_v8 = vcombine.low %v516_v58, %v520_v60 }
  0xa1   : > { %6556 = vmatprep.subr.bf16.mxu0 %v8121_v38  ;;  %6884 = vmatprep.subr.bf16.mxu1 %v8123_v39  ;;  %v8177_v38 = vcombine.high %v492_v32, %v496_v33  ;;  %v8179_v39 = vcombine.high %v493_v63, %v497_v35  ;;  %v528_v5 = vld [vmem:[%s9623_s22 + $0x5a0] sm:$0xff]  ;;  %v533_v15 = vld [vmem:[%s9623_s22 + $0x5c8] sm:$0xff] }
  0xa2   : > { %v536_v14 = vld [vmem:[%s9623_s22 + $0x5e0] sm:$0xff]  ;;  %v537_v59 = vld [vmem:[%s9623_s22 + $0x5e8] sm:$0xff]  ;;  %v8208_v17 = vcombine.low %v524_v4, %v528_v5 }
  0xa3   : > { %v544_v22 = vld [vmem:[%s9623_s22 + $0x620] sm:$0xff]  ;;  %v541_v23 = vld [vmem:[%s9623_s22 + $0x608] sm:$0xff]  ;;  %v8218_v27 = vcombine.low %v533_v15, %v537_v59 }
  0xa4   : > { %6557 = vmatpush1.bf16.msra.mxu0 %v8120_v45  ;;  %6885 = vmatpush1.bf16.msra.mxu1 %v8122_v46  ;;  %v8176_v45 = vcombine.low %v492_v32, %v496_v33  ;;  %v8178_v46 = vcombine.low %v493_v63, %v497_v35  ;;  %v545_v24 = vld [vmem:[%s9623_s22 + $0x628] sm:$0xff] }
  0xa5   : > { %6558 = vmatprep.subr.bf16.mxu0 %v8129_v47  ;;  %6886 = vmatprep.subr.bf16.mxu1 %v8131_v48  ;;  %v8185_v47 = vcombine.high %v500_v40, %v504_v41  ;;  %v8187_v48 = vcombine.high %v501_v42, %v505_v43  ;;  %v549_v32 = vld [vmem:[%s9623_s22 + $0x648] sm:$0xff]  ;;  %v8226_v35 = vcombine.low %v541_v23, %v545_v24 }
  0xa6   : > { %v553_v33 = vld [vmem:[%s9623_s22 + $0x668] sm:$0xff] }
  0xa8   : > { %6559 = vmatpush1.bf16.msra.mxu0 %v8128_v54  ;;  %6887 = vmatpush1.bf16.msra.mxu1 %v8130_v55  ;;  %v8184_v54 = vcombine.low %v500_v40, %v504_v41  ;;  %v8186_v55 = vcombine.low %v501_v42, %v505_v43  ;;  %v557_v40 = vld [vmem:[%s9623_s22 + $0x688] sm:$0xff]  ;;  %v8234_v43 = vcombine.low %v549_v32, %v553_v33 }
  0xa9   : > { %6560 = vmatprep.subr.bf16.mxu0 %v8137_v56  ;;  %6888 = vmatprep.subr.bf16.mxu1 %v8139_v57  ;;  %v8193_v56 = vcombine.high %v508_v49, %v512_v50  ;;  %v8195_v57 = vcombine.high %v509_v51, %v513_v52  ;;  %v561_v41 = vld [vmem:[%s9623_s22 + $0x6a8] sm:$0xff] }
  0xac   : > { %6561 = vmatpush1.bf16.msra.mxu0 %v8136_v0  ;;  %6889 = vmatpush1.bf16.msra.mxu1 %v8138_v1  ;;  %v8192_v0 = vcombine.low %v508_v49, %v512_v50  ;;  %v8194_v1 = vcombine.low %v509_v51, %v513_v52  ;;  %v565_v49 = vld [vmem:[%s9623_s22 + $0x6c8] sm:$0xff]  ;;  %v8242_v52 = vcombine.low %v557_v40, %v561_v41 }
  0xad   : > { %6562 = vmatprep.subr.bf16.mxu0 %v8145_v2  ;;  %6890 = vmatprep.subr.bf16.mxu1 %v8147_v3  ;;  %v8201_v2 = vcombine.high %v516_v58, %v520_v60  ;;  %v8203_v3 = vcombine.high %v517_v61, %v521_v62  ;;  %v569_v50 = vld [vmem:[%s9623_s22 + $0x6e8] sm:$0xff] }
  0xae   : > { %v573_v58 = vld [vmem:[%s9623_s22 + $0x708] sm:$0xff] }
  0xaf   : > { %v577_v60 = vld [vmem:[%s9623_s22 + $0x728] sm:$0xff] }
  0xb0   : > { %6563 = vmatpush1.bf16.msra.mxu0 %v8144_v10  ;;  %6891 = vmatpush1.bf16.msra.mxu1 %v8146_v11  ;;  %v8202_v10 = vcombine.low %v517_v61, %v521_v62  ;;  %v8209_v11 = vcombine.high %v524_v4, %v528_v5  ;;  %v8250_v62 = vcombine.low %v565_v49, %v569_v50  ;;  %v581_v4 = vld [vmem:[%s9623_s22 + $0x748] sm:$0xff] }
  0xb1   : > { %6564 = vmatprep.subr.bf16.mxu0 %v8153_v12  ;;  %6892 = vmatprep.subr.bf16.mxu1 %v8155_v13  ;;  %v8211_v12 = vcombine.high %v525_v6, %v529_v7  ;;  %v532_v13 = vld [vmem:[%s9623_s22 + $0x5c0] sm:$0xff]  ;;  %v585_v5 = vld [vmem:[%s9623_s22 + $0x768] sm:$0xff] }
  0xb2   : > { %v8216_v26 = vcombine.low %v532_v13, %v536_v14 }
  0xb4   : > { %6565 = vmatpush1.bf16.msra.mxu0 %v8152_v18  ;;  %6893 = vmatpush1.bf16.msra.mxu1 %v8154_v19  ;;  %v8210_v18 = vcombine.low %v525_v6, %v529_v7  ;;  %v8217_v19 = vcombine.high %v532_v13, %v536_v14  ;;  %v8258_v7 = vcombine.low %v573_v58, %v577_v60  ;;  %v589_v13 = vld [vmem:[%s9623_s22 + $0x788] sm:$0xff] }
  0xb5   : > { %6575 = vmatprep.subr.bf16.mxu0 %v8161_v20  ;;  %6903 = vmatprep.subr.bf16.mxu1 %v8163_v21  ;;  %v8219_v20 = vcombine.high %v533_v15, %v537_v59  ;;  %v540_v21 = vld [vmem:[%s9623_s22 + $0x600] sm:$0xff]  ;;  %v593_v14 = vld [vmem:[%s9623_s22 + $0x7a8] sm:$0xff]  ;;  %v8266_v59 = vcombine.low %v581_v4, %v585_v5 }
  0xb6   : > { %v8224_v63 = vcombine.low %v540_v21, %v544_v22 }
  0xb7   : > { %6567 = vmatmul.mubr.bf16.vlgmr.msra.gmra.mrb[0].mxu0 %v9725_v25  ;;  %6895 = vmatmul.mubr.bf16.vlgmr.msra.gmra.mrb[0].mxu1 %v9725_v25 }
  0xb8   : > { %6576 = vmatpush1.bf16.msra.mxu0 %v8160_v28  ;;  %6904 = vmatpush1.bf16.msra.mxu1 %v8162_v29  ;;  %v8225_v28 = vcombine.high %v540_v21, %v544_v22  ;;  %v8227_v29 = vcombine.high %v541_v23, %v545_v24  ;;  %v597_v21 = vld [vmem:[%s9623_s22 + $0x7c8] sm:$0xff] }
  0xb9   : > { %6577 = vmatprep.subr.bf16.mxu0 %v8169_v30  ;;  %6905 = vmatprep.subr.bf16.mxu1 %v8171_v31  ;;  %v548_v30 = vld [vmem:[%s9623_s22 + $0x640] sm:$0xff]  ;;  %v601_v22 = vld [vmem:[%s9623_s22 + $0x7e8] sm:$0xff] }
  0xba   : > { %6607 = vmatprep.mubr.bf16.mxu0 %v9731_v34  ;;  %6935 = vmatprep.mubr.bf16.mxu1 %v9731_v34  ;;  %v552_v31 = vld [vmem:[%s9623_s22 + $0x660] sm:$0xff]  ;;  %v9791_v23 = vld [vmem:[#allocation2 + $0x8] sm:$0xff] }
  0xbb   : > { %v8232_v42 = vcombine.low %v548_v30, %v552_v31 }
  0xbc   : > { %6578 = vmatpush1.bf16.msra.mxu0 %v8168_v36  ;;  %6906 = vmatpush1.bf16.msra.mxu1 %v8170_v37  ;;  %v8233_v36 = vcombine.high %v548_v30, %v552_v31  ;;  %v8235_v37 = vcombine.high %v549_v32, %v553_v33  ;;  %v608_v30 = vld [vmem:[%s9623_s22 + $0x820] sm:$0xff]  ;;  %v9797_v31 = vrot.slane %v9791_v23, %v9658_v53  ;;  %v605_v32 = vld [vmem:[%s9623_s22 + $0x808] sm:$0xff] }
  0xbd   : > { %6579 = vmatprep.subr.bf16.mxu0 %v8177_v38  ;;  %6907 = vmatprep.subr.bf16.mxu1 %v8179_v39  ;;  %v556_v38 = vld [vmem:[%s9623_s22 + $0x680] sm:$0xff]  ;;  %v609_v33 = vld [vmem:[%s9623_s22 + $0x828] sm:$0xff] }
  0xbe   : > { %v560_v39 = vld [vmem:[%s9623_s22 + $0x6a0] sm:$0xff] }
  0xbf   : > { %v8240_v51 = vcombine.low %v556_v38, %v560_v39 }
  0xc0   : > { %6580 = vmatpush1.bf16.msra.mxu0 %v8176_v45  ;;  %6908 = vmatpush1.bf16.msra.mxu1 %v8178_v46  ;;  %v8241_v45 = vcombine.high %v556_v38, %v560_v39  ;;  %v8243_v46 = vcombine.high %v557_v40, %v561_v41  ;;  %v612_v38 = vld [vmem:[%s9623_s22 + $0x840] sm:$0xff]  ;;  %v280_v40 = vcombine.high %v9797_v31, %v9797_v31 }
  0xc1   : > { %6581 = vmatprep.subr.bf16.mxu0 %v8185_v47  ;;  %6909 = vmatprep.subr.bf16.mxu1 %v8187_v48  ;;  %v564_v47 = vld [vmem:[%s9623_s22 + $0x6c0] sm:$0xff]  ;;  %v9807_v41 = vpack.c.bf16 %v9715_v16, %v9715_v16  ;;  %v621_v16 = vld [vmem:[%s9623_s22 + $0x888] sm:$0xff] }
  0xc2   : > { %v568_v48 = vld [vmem:[%s9623_s22 + $0x6e0] sm:$0xff] }
  0xc3   : > { %v8248_v61 = vcombine.low %v564_v47, %v568_v48  ;;  %v616_v39 = vld [vmem:[%s9623_s22 + $0x860] sm:$0xff] }
  0xc4   : > { %6582 = vmatpush1.bf16.msra.mxu0 %v8184_v54  ;;  %6910 = vmatpush1.bf16.msra.mxu1 %v8186_v55  ;;  %v8249_v54 = vcombine.high %v564_v47, %v568_v48  ;;  %v8251_v55 = vcombine.high %v565_v49, %v569_v50  ;;  %v8297_v47 = vcombine.high %v612_v38, %v616_v39  ;;  %v620_v49 = vld [vmem:[%s9623_s22 + $0x880] sm:$0xff] }
  0xc5   : > { %6583 = vmatprep.subr.bf16.mxu0 %v8193_v56  ;;  %6911 = vmatprep.subr.bf16.mxu1 %v8195_v57  ;;  %v572_v56 = vld [vmem:[%s9623_s22 + $0x700] sm:$0xff] }
  0xc6   : > { %v576_v57 = vld [vmem:[%s9623_s22 + $0x720] sm:$0xff] }
  0xc7   : > { %v8256_v6 = vcombine.low %v572_v56, %v576_v57  ;;  %v624_v50 = vld [vmem:[%s9623_s22 + $0x8a0] sm:$0xff] }
  0xc8   : > { %6584 = vmatpush1.bf16.msra.mxu0 %v8192_v0  ;;  %6912 = vmatpush1.bf16.msra.mxu1 %v8194_v1  ;;  %v8257_v0 = vcombine.high %v572_v56, %v576_v57  ;;  %v8259_v1 = vcombine.high %v573_v58, %v577_v60  ;;  %v8305_v56 = vcombine.high %v620_v49, %v624_v50  ;;  %v628_v58 = vld [vmem:[%s9623_s22 + $0x8c0] sm:$0xff] }
  0xc9   : > { %6585 = vmatprep.subr.bf16.mxu0 %v8201_v2  ;;  %6913 = vmatprep.subr.bf16.mxu1 %v8203_v3  ;;  %v580_v2 = vld [vmem:[%s9623_s22 + $0x740] sm:$0xff] }
  0xca   : > { %v584_v3 = vld [vmem:[%s9623_s22 + $0x760] sm:$0xff] }
  0xcb   : > { %v8264_v15 = vcombine.low %v580_v2, %v584_v3  ;;  %v632_v60 = vld [vmem:[%s9623_s22 + $0x8e0] sm:$0xff] }
  0xcc   : > { %6586 = vmatpush1.bf16.msra.mxu0 %v8200_v8  ;;  %6914 = vmatpush1.bf16.msra.mxu1 %v8202_v10  ;;  %v8265_v8 = vcombine.high %v580_v2, %v584_v3  ;;  %v8267_v10 = vcombine.high %v581_v4, %v585_v5  ;;  %v8313_v2 = vcombine.high %v628_v58, %v632_v60  ;;  %v636_v4 = vld [vmem:[%s9623_s22 + $0x900] sm:$0xff] }
  0xcd   : > { %6587 = vmatprep.subr.bf16.mxu0 %v8209_v11  ;;  %6915 = vmatprep.subr.bf16.mxu1 %v8211_v12  ;;  %v588_v11 = vld [vmem:[%s9623_s22 + $0x780] sm:$0xff] }
  0xce   : > { %v592_v12 = vld [vmem:[%s9623_s22 + $0x7a0] sm:$0xff] }
  0xcf   : > { %v8272_v24 = vcombine.low %v588_v11, %v592_v12  ;;  %v640_v5 = vld [vmem:[%s9623_s22 + $0x920] sm:$0xff] }
  0xd0   : > { %6588 = vmatpush1.bf16.msra.mxu0 %v8208_v17  ;;  %6916 = vmatpush1.bf16.msra.mxu1 %v8210_v18  ;;  %v8273_v17 = vcombine.high %v588_v11, %v592_v12  ;;  %v8275_v18 = vcombine.high %v589_v13, %v593_v14  ;;  %v8321_v11 = vcombine.high %v636_v4, %v640_v5 }
  0xd1   : > { %6589 = vmatprep.subr.bf16.mxu0 %v8217_v19  ;;  %6917 = vmatprep.subr.bf16.mxu1 %v8219_v20  ;;  %v596_v19 = vld [vmem:[%s9623_s22 + $0x7c0] sm:$0xff] }
  0xd2   : > { %v600_v20 = vld [vmem:[%s9623_s22 + $0x7e0] sm:$0xff] }
  0xd4   : > { %6590 = vmatpush1.bf16.msra.mxu0 %v8216_v26  ;;  %6918 = vmatpush1.bf16.msra.mxu1 %v8218_v27  ;;  %v8274_v26 = vcombine.low %v589_v13, %v593_v14  ;;  %v8281_v27 = vcombine.high %v596_v19, %v600_v20  ;;  %v644_v13 = vld [vmem:[%s9623_s22 + $0x940] sm:$0xff] }
  0xd5   : > { %6591 = vmatprep.subr.bf16.mxu0 %v8225_v28  ;;  %6919 = vmatprep.subr.bf16.mxu1 %v8227_v29  ;;  %v8283_v28 = vcombine.high %v597_v21, %v601_v22  ;;  %v604_v29 = vld [vmem:[%s9623_s22 + $0x800] sm:$0xff] }
  0xd6   : > { %v648_v14 = vld [vmem:[%s9623_s22 + $0x960] sm:$0xff] }
  0xd8   : > { %6592 = vmatpush1.bf16.msra.mxu0 %v8224_v63  ;;  %6920 = vmatpush1.bf16.msra.mxu1 %v8226_v35  ;;  %v8280_v63 = vcombine.low %v596_v19, %v600_v20  ;;  %v8282_v35 = vcombine.low %v597_v21, %v601_v22  ;;  %v8329_v19 = vcombine.high %v644_v13, %v648_v14  ;;  %v652_v21 = vld [vmem:[%s9623_s22 + $0x980] sm:$0xff] }
  0xd9   : > { %6593 = vmatprep.subr.bf16.mxu0 %v8233_v36  ;;  %6921 = vmatprep.subr.bf16.mxu1 %v8235_v37  ;;  %v8289_v36 = vcombine.high %v604_v29, %v608_v30  ;;  %v8291_v37 = vcombine.high %v605_v32, %v609_v33  ;;  %v656_v22 = vld [vmem:[%s9623_s22 + $0x9a0] sm:$0xff] }
  0xdc   : > { %6594 = vmatpush1.bf16.msra.mxu0 %v8232_v42  ;;  %6922 = vmatpush1.bf16.msra.mxu1 %v8234_v43  ;;  %v613_v42 = vld [vmem:[%s9623_s22 + $0x848] sm:$0xff] }
  0xdd   : > { %6595 = vmatprep.subr.bf16.mxu0 %v8241_v45  ;;  %6923 = vmatprep.subr.bf16.mxu1 %v8243_v46  ;;  %v617_v43 = vld [vmem:[%s9623_s22 + $0x868] sm:$0xff]  ;;  %v8288_v45 = vcombine.low %v604_v29, %v608_v30  ;;  %v8290_v46 = vcombine.low %v605_v32, %v609_v33  ;;  %v8337_v29 = vcombine.high %v652_v21, %v656_v22  ;;  %v660_v32 = vld [vmem:[%s9623_s22 + $0x9c0] sm:$0xff] }
  0xde   : > { %v8299_v48 = vcombine.high %v613_v42, %v617_v43  ;;  %v664_v33 = vld [vmem:[%s9623_s22 + $0x9e0] sm:$0xff] }
  0xe0   : > { %6596 = vmatpush1.bf16.msra.mxu0 %v8240_v51  ;;  %6924 = vmatpush1.bf16.msra.mxu1 %v8242_v52  ;;  %v9813_v51 = vpack.c.bf16 %v280_v40, %v280_v40  ;;  %v625_v52 = vld [vmem:[%s9623_s22 + $0x8a8] sm:$0xff]  ;;  %v668_v40 = vld [vmem:[%s9623_s22 + $0xa00] sm:$0xff] }
  0xe1   : > { %6597 = vmatprep.subr.bf16.mxu0 %v8249_v54  ;;  %6925 = vmatprep.subr.bf16.mxu1 %v8251_v55  ;;  %v8296_v54 = vcombine.low %v612_v38, %v616_v39  ;;  %v8298_v55 = vcombine.low %v613_v42, %v617_v43  ;;  %v8307_v57 = vcombine.high %v621_v16, %v625_v52  ;;  %v672_v42 = vld [vmem:[%s9623_s22 + $0xa20] sm:$0xff]  ;;  %v669_v43 = vld [vmem:[%s9623_s22 + $0xa08] sm:$0xff] }
  0xe2   : > { %v8345_v38 = vcombine.high %v660_v32, %v664_v33 }
  0xe4   : > { %6598 = vmatpush1.bf16.msra.mxu0 %v8248_v61  ;;  %6926 = vmatpush1.bf16.msra.mxu1 %v8250_v62  ;;  %v629_v61 = vld [vmem:[%s9623_s22 + $0x8c8] sm:$0xff] }
  0xe5   : > { %6599 = vmatprep.subr.bf16.mxu0 %v8257_v0  ;;  %6927 = vmatprep.subr.bf16.mxu1 %v8259_v1  ;;  %v633_v62 = vld [vmem:[%s9623_s22 + $0x8e8] sm:$0xff]  ;;  %v8304_v0 = vcombine.low %v620_v49, %v624_v50  ;;  %v8306_v1 = vcombine.low %v621_v16, %v625_v52  ;;  %v676_v50 = vld [vmem:[%s9623_s22 + $0xa40] sm:$0xff] }
  0xe6   : > { %v8315_v3 = vcombine.high %v629_v61, %v633_v62  ;;  %v680_v16 = vld [vmem:[%s9623_s22 + $0xa60] sm:$0xff]  ;;  %v677_v52 = vld [vmem:[%s9623_s22 + $0xa48] sm:$0xff] }
  0xe8   : > { %6600 = vmatpush1.bf16.msra.mxu0 %v8256_v6  ;;  %6928 = vmatpush1.bf16.msra.mxu1 %v8258_v7  ;;  %v637_v6 = vld [vmem:[%s9623_s22 + $0x908] sm:$0xff] }
  0xe9   : > { %6601 = vmatprep.subr.bf16.mxu0 %v8265_v8  ;;  %6929 = vmatprep.subr.bf16.mxu1 %v8267_v10  ;;  %v641_v7 = vld [vmem:[%s9623_s22 + $0x928] sm:$0xff]  ;;  %v8312_v8 = vcombine.low %v628_v58, %v632_v60  ;;  %v8314_v10 = vcombine.low %v629_v61, %v633_v62  ;;  %v684_v60 = vld [vmem:[%s9623_s22 + $0xa80] sm:$0xff] }
  0xea   : > { %v8323_v12 = vcombine.high %v637_v6, %v641_v7  ;;  %v688_v61 = vld [vmem:[%s9623_s22 + $0xaa0] sm:$0xff]  ;;  %v685_v62 = vld [vmem:[%s9623_s22 + $0xa88] sm:$0xff] }
  0xec   : > { %6602 = vmatpush1.bf16.msra.mxu0 %v8264_v15  ;;  %6930 = vmatpush1.bf16.msra.mxu1 %v8266_v59  ;;  %v645_v15 = vld [vmem:[%s9623_s22 + $0x948] sm:$0xff] }
  0xed   : > { %6603 = vmatprep.subr.bf16.mxu0 %v8273_v17  ;;  %6931 = vmatprep.subr.bf16.mxu1 %v8275_v18  ;;  %v649_v59 = vld [vmem:[%s9623_s22 + $0x968] sm:$0xff]  ;;  %v8320_v17 = vcombine.low %v636_v4, %v640_v5  ;;  %v8322_v18 = vcombine.low %v637_v6, %v641_v7  ;;  %v692_v5 = vld [vmem:[%s9623_s22 + $0xac0] sm:$0xff] }
  0xee   : > { %v8331_v20 = vcombine.high %v645_v15, %v649_v59  ;;  %v696_v6 = vld [vmem:[%s9623_s22 + $0xae0] sm:$0xff]  ;;  %v693_v7 = vld [vmem:[%s9623_s22 + $0xac8] sm:$0xff] }
  0xf0   : > { %6604 = vmatpush1.bf16.msra.mxu0 %v8272_v24  ;;  %6932 = vmatpush1.bf16.msra.mxu1 %v8274_v26  ;;  %v653_v24 = vld [vmem:[%s9623_s22 + $0x988] sm:$0xff] }
  0xf1   : > { %6605 = vmatprep.subr.bf16.mxu0 %v8281_v27  ;;  %6933 = vmatprep.subr.bf16.mxu1 %v8283_v28  ;;  %v657_v26 = vld [vmem:[%s9623_s22 + $0x9a8] sm:$0xff]  ;;  %v8328_v27 = vcombine.low %v644_v13, %v648_v14  ;;  %v8330_v28 = vcombine.low %v645_v15, %v649_v59  ;;  %v700_v14 = vld [vmem:[%s9623_s22 + $0xb00] sm:$0xff] }
  0xf2   : > { %v8339_v30 = vcombine.high %v653_v24, %v657_v26  ;;  %v704_v15 = vld [vmem:[%s9623_s22 + $0xb20] sm:$0xff]  ;;  %v701_v59 = vld [vmem:[%s9623_s22 + $0xb08] sm:$0xff] }
  0xf4   : > { %6606 = vmatpush1.bf16.msra.mxu0 %v8280_v63  ;;  %6934 = vmatpush1.bf16.msra.mxu1 %v8282_v35  ;;  %v661_v63 = vld [vmem:[%s9623_s22 + $0x9c8] sm:$0xff] }
  0xf5   : > { %6616 = vmatprep.subr.bf16.mxu0 %v8289_v36  ;;  %6944 = vmatprep.subr.bf16.mxu1 %v8291_v37  ;;  %v665_v35 = vld [vmem:[%s9623_s22 + $0x9e8] sm:$0xff]  ;;  %v8336_v36 = vcombine.low %v652_v21, %v656_v22  ;;  %v8338_v37 = vcombine.low %v653_v24, %v657_v26  ;;  %v708_v22 = vld [vmem:[%s9623_s22 + $0xb40] sm:$0xff] }
  0xf6   : > { %v8347_v39 = vcombine.high %v661_v63, %v665_v35  ;;  %v712_v24 = vld [vmem:[%s9623_s22 + $0xb60] sm:$0xff]  ;;  %v709_v26 = vld [vmem:[%s9623_s22 + $0xb48] sm:$0xff] }
  0xf7   : > { %6608 = vmatmul.mubr.bf16.vlgmr.msra.gmra.mrb[0].mxu0 %v9807_v41  ;;  %6936 = vmatmul.mubr.bf16.vlgmr.msra.gmra.mrb[0].mxu1 %v9807_v41 }
  0xf8   : > { %6617 = vmatpush1.bf16.msra.mxu0 %v8288_v45  ;;  %6945 = vmatpush1.bf16.msra.mxu1 %v8290_v46  ;;  %v673_v45 = vld [vmem:[%s9623_s22 + $0xa28] sm:$0xff]  ;;  %v8344_v46 = vcombine.low %v660_v32, %v664_v33  ;;  %v716_v33 = vld [vmem:[%s9623_s22 + $0xb80] sm:$0xff] }
  0xf9   : > { %6618 = vmatprep.subr.bf16.mxu0 %v8297_v47  ;;  %6946 = vmatprep.subr.bf16.mxu1 %v8299_v48  ;;  %v8346_v47 = vcombine.low %v661_v63, %v665_v35  ;;  %v8353_v48 = vcombine.high %v668_v40, %v672_v42  ;;  %v8355_v49 = vcombine.high %v669_v43, %v673_v45  ;;  %v720_v63 = vld [vmem:[%s9623_s22 + $0xba0] sm:$0xff]  ;;  %v717_v35 = vld [vmem:[%s9623_s22 + $0xb88] sm:$0xff] }
  0xfa   : > { %6648 = vmatprep.mubr.bf16.mxu0 %v9813_v51  ;;  %6976 = vmatprep.mubr.bf16.mxu1 %v9813_v51 }
  0xfc   : > { %6619 = vmatpush1.bf16.msra.mxu0 %v8296_v54  ;;  %6947 = vmatpush1.bf16.msra.mxu1 %v8298_v55  ;;  %v681_v54 = vld [vmem:[%s9623_s22 + $0xa68] sm:$0xff]  ;;  %v8352_v55 = vcombine.low %v668_v40, %v672_v42  ;;  %v724_v42 = vld [vmem:[%s9623_s22 + $0xbc0] sm:$0xff] }
  0xfd   : > { %6620 = vmatprep.subr.bf16.mxu0 %v8305_v56  ;;  %6948 = vmatprep.subr.bf16.mxu1 %v8307_v57  ;;  %v8354_v56 = vcombine.low %v669_v43, %v673_v45  ;;  %v8361_v57 = vcombine.high %v676_v50, %v680_v16  ;;  %v8363_v58 = vcombine.high %v677_v52, %v681_v54  ;;  %v728_v43 = vld [vmem:[%s9623_s22 + $0xbe0] sm:$0xff] }
  0xfe   : > { %v265_v45 = vcombine.high %v9791_v23, %v9791_v23  ;;  %v733_v23 = vld [vmem:[%s9623_s22 + $0xc08] sm:$0xff] }
 0x100   : > { %6621 = vmatpush1.bf16.msra.mxu0 %v8304_v0  ;;  %6949 = vmatpush1.bf16.msra.mxu1 %v8306_v1  ;;  %v689_v0 = vld [vmem:[%s9623_s22 + $0xaa8] sm:$0xff]  ;;  %v8360_v1 = vcombine.low %v676_v50, %v680_v16  ;;  %v8409_v50 = vcombine.high %v724_v42, %v728_v43 }
 0x101   : > { %6622 = vmatprep.subr.bf16.mxu0 %v8313_v2  ;;  %6950 = vmatprep.subr.bf16.mxu1 %v8315_v3  ;;  %v8362_v2 = vcombine.low %v677_v52, %v681_v54  ;;  %v8369_v3 = vcombine.high %v684_v60, %v688_v61  ;;  %v8371_v4 = vcombine.high %v685_v62, %v689_v0  ;;  %v732_v52 = vld [vmem:[%s9623_s22 + $0xc00] sm:$0xff] }
 0x102   : > { %v736_v54 = vld [vmem:[%s9623_s22 + $0xc20] sm:$0xff] }
 0x104   : > { %6623 = vmatpush1.bf16.msra.mxu0 %v8312_v8  ;;  %6951 = vmatpush1.bf16.msra.mxu1 %v8314_v10  ;;  %v697_v8 = vld [vmem:[%s9623_s22 + $0xae8] sm:$0xff]  ;;  %v8368_v10 = vcombine.low %v684_v60, %v688_v61  ;;  %v8417_v60 = vcombine.high %v732_v52, %v736_v54 }
 0x105   : > { %6624 = vmatprep.subr.bf16.mxu0 %v8321_v11  ;;  %6952 = vmatprep.subr.bf16.mxu1 %v8323_v12  ;;  %v8370_v11 = vcombine.low %v685_v62, %v689_v0  ;;  %v8377_v12 = vcombine.high %v692_v5, %v696_v6  ;;  %v8379_v13 = vcombine.high %v693_v7, %v697_v8  ;;  %v740_v62 = vld [vmem:[%s9623_s22 + $0xc40] sm:$0xff] }
 0x106   : > { %v744_v0 = vld [vmem:[%s9623_s22 + $0xc60] sm:$0xff] }
 0x108   : > { %6625 = vmatpush1.bf16.msra.mxu0 %v8320_v17  ;;  %6953 = vmatpush1.bf16.msra.mxu1 %v8322_v18  ;;  %v705_v17 = vld [vmem:[%s9623_s22 + $0xb28] sm:$0xff]  ;;  %v8376_v18 = vcombine.low %v692_v5, %v696_v6  ;;  %v8416_v5 = vcombine.low %v732_v52, %v736_v54 }
 0x109   : > { %6626 = vmatprep.subr.bf16.mxu0 %v8329_v19  ;;  %6954 = vmatprep.subr.bf16.mxu1 %v8331_v20  ;;  %v8378_v19 = vcombine.low %v693_v7, %v697_v8  ;;  %v8385_v20 = vcombine.high %v700_v14, %v704_v15  ;;  %v8387_v21 = vcombine.high %v701_v59, %v705_v17 }
 0x10a   : > { %v8425_v7 = vcombine.high %v740_v62, %v744_v0 }
 0x10c   : > { %6627 = vmatpush1.bf16.msra.mxu0 %v8328_v27  ;;  %6955 = vmatpush1.bf16.msra.mxu1 %v8330_v28  ;;  %v713_v27 = vld [vmem:[%s9623_s22 + $0xb68] sm:$0xff]  ;;  %v8384_v28 = vcombine.low %v700_v14, %v704_v15  ;;  %v8424_v14 = vcombine.low %v740_v62, %v744_v0 }
 0x10d   : > { %6628 = vmatprep.subr.bf16.mxu0 %v8337_v29  ;;  %6956 = vmatprep.subr.bf16.mxu1 %v8339_v30  ;;  %v8386_v29 = vcombine.low %v701_v59, %v705_v17  ;;  %v8393_v30 = vcombine.high %v708_v22, %v712_v24  ;;  %v8395_v32 = vcombine.high %v709_v26, %v713_v27 }
 0x110   : > { %6629 = vmatpush1.bf16.msra.mxu0 %v8336_v36  ;;  %6957 = vmatpush1.bf16.msra.mxu1 %v8338_v37  ;;  %v721_v36 = vld [vmem:[%s9623_s22 + $0xba8] sm:$0xff]  ;;  %v8392_v37 = vcombine.low %v708_v22, %v712_v24 }
 0x111   : > { %6630 = vmatprep.subr.bf16.mxu0 %v8345_v38  ;;  %6958 = vmatprep.subr.bf16.mxu1 %v8347_v39  ;;  %v8394_v38 = vcombine.low %v709_v26, %v713_v27  ;;  %v8401_v39 = vcombine.high %v716_v33, %v720_v63  ;;  %v8403_v40 = vcombine.high %v717_v35, %v721_v36 }
 0x114   : > { %6631 = vmatpush1.bf16.msra.mxu0 %v8344_v46  ;;  %6959 = vmatpush1.bf16.msra.mxu1 %v8346_v47  ;;  %v725_v46 = vld [vmem:[%s9623_s22 + $0xbc8] sm:$0xff] }
 0x115   : > { %6632 = vmatprep.subr.bf16.mxu0 %v8353_v48  ;;  %6960 = vmatprep.subr.bf16.mxu1 %v8355_v49  ;;  %v729_v47 = vld [vmem:[%s9623_s22 + $0xbe8] sm:$0xff]  ;;  %v8400_v48 = vcombine.low %v716_v33, %v720_v63  ;;  %v8402_v49 = vcombine.low %v717_v35, %v721_v36 }
 0x116   : > { %v8411_v16 = vcombine.high %v725_v46, %v729_v47 }
 0x118   : > { %6633 = vmatpush1.bf16.msra.mxu0 %v8352_v55  ;;  %6961 = vmatpush1.bf16.msra.mxu1 %v8354_v56  ;;  %v9878_v55 = vrot.slane %v265_v45, %v9658_v53  ;;  %v737_v56 = vld [vmem:[%s9623_s22 + $0xc28] sm:$0xff] }
 0x119   : > { %6634 = vmatprep.subr.bf16.mxu0 %v8361_v57  ;;  %6962 = vmatprep.subr.bf16.mxu1 %v8363_v58  ;;  %v8408_v57 = vcombine.low %v724_v42, %v728_v43  ;;  %v8410_v58 = vcombine.low %v725_v46, %v729_v47  ;;  %v8419_v61 = vcombine.high %v733_v23, %v737_v56  ;;  %v780_v47 = vld [vmem:[%s9623_s22 + $0xd80] sm:$0xff] }
 0x11a   : > { %v8418_v6 = vcombine.low %v733_v23, %v737_v56  ;;  %v788_v56 = vld [vmem:[%s9623_s22 + $0xdc0] sm:$0xff] }
 0x11c   : > { %6635 = vmatpush1.bf16.msra.mxu0 %v8360_v1  ;;  %6963 = vmatpush1.bf16.msra.mxu1 %v8362_v2  ;;  %v281_v1 = vcombine.high %v9878_v55, %v9878_v55  ;;  %v9888_v2 = vpack.c.bf16 %v9797_v31, %v9797_v31  ;;  %v749_v31 = vld [vmem:[%s9623_s22 + $0xc88] sm:$0xff] }
 0x11d   : > { %6636 = vmatprep.subr.bf16.mxu0 %v8369_v3  ;;  %6964 = vmatprep.subr.bf16.mxu1 %v8371_v4  ;;  %v741_v3 = vld [vmem:[%s9623_s22 + $0xc48] sm:$0xff] }
 0x11e   : > { %v745_v4 = vld [vmem:[%s9623_s22 + $0xc68] sm:$0xff] }
 0x11f   : > { %v8427_v8 = vcombine.high %v741_v3, %v745_v4  ;;  %v8426_v15 = vcombine.low %v741_v3, %v745_v4  ;;  %v796_v3 = vld [vmem:[%s9623_s22 + $0xe00] sm:$0xff] }
 0x120   : > { %6637 = vmatpush1.bf16.msra.mxu0 %v8368_v10  ;;  %6965 = vmatpush1.bf16.msra.mxu1 %v8370_v11  ;;  %v748_v10 = vld [vmem:[%s9623_s22 + $0xc80] sm:$0xff] }
 0x121   : > { %6638 = vmatprep.subr.bf16.mxu0 %v8377_v12  ;;  %6966 = vmatprep.subr.bf16.mxu1 %v8379_v13  ;;  %v752_v11 = vld [vmem:[%s9623_s22 + $0xca0] sm:$0xff]  ;;  %v9894_v12 = vpack.c.bf16 %v281_v1, %v281_v1  ;;  %v753_v13 = vld [vmem:[%s9623_s22 + $0xca8] sm:$0xff] }
 0x122   : > { %v8433_v59 = vcombine.high %v748_v10, %v752_v11  ;;  %v8435_v17 = vcombine.high %v749_v31, %v753_v13  ;;  %v8432_v22 = vcombine.low %v748_v10, %v752_v11  ;;  %v8434_v24 = vcombine.low %v749_v31, %v753_v13  ;;  %v800_v4 = vld [vmem:[%s9623_s22 + $0xe20] sm:$0xff] }
 0x123   : > { %v8481_v10 = vcombine.high %v796_v3, %v800_v4  ;;  %v804_v31 = vld [vmem:[%s9623_s22 + $0xe40] sm:$0xff] }
 0x124   : > { %6639 = vmatpush1.bf16.msra.mxu0 %v8376_v18  ;;  %6967 = vmatpush1.bf16.msra.mxu1 %v8378_v19  ;;  %v756_v18 = vld [vmem:[%s9623_s22 + $0xcc0] sm:$0xff] }
 0x125   : > { %6640 = vmatprep.subr.bf16.mxu0 %v8385_v20  ;;  %6968 = vmatprep.subr.bf16.mxu1 %v8387_v21  ;;  %v760_v19 = vld [vmem:[%s9623_s22 + $0xce0] sm:$0xff]  ;;  %v757_v20 = vld [vmem:[%s9623_s22 + $0xcc8] sm:$0xff] }
 0x126   : > { %v761_v21 = vld [vmem:[%s9623_s22 + $0xce8] sm:$0xff]  ;;  %v8441_v26 = vcombine.high %v756_v18, %v760_v19  ;;  %v8440_v33 = vcombine.low %v756_v18, %v760_v19  ;;  %v808_v13 = vld [vmem:[%s9623_s22 + $0xe60] sm:$0xff] }
 0x127   : > { %v8443_v27 = vcombine.high %v757_v20, %v761_v21  ;;  %v8442_v63 = vcombine.low %v757_v20, %v761_v21  ;;  %v8489_v18 = vcombine.high %v804_v31, %v808_v13  ;;  %v812_v20 = vld [vmem:[%s9623_s22 + $0xe80] sm:$0xff] }
 0x128   : > { %6641 = vmatpush1.bf16.msra.mxu0 %v8384_v28  ;;  %6969 = vmatpush1.bf16.msra.mxu1 %v8386_v29  ;;  %v764_v28 = vld [vmem:[%s9623_s22 + $0xd00] sm:$0xff] }
 0x129   : > { %6642 = vmatprep.subr.bf16.mxu0 %v8393_v30  ;;  %6970 = vmatprep.subr.bf16.mxu1 %v8395_v32  ;;  %v768_v29 = vld [vmem:[%s9623_s22 + $0xd20] sm:$0xff]  ;;  %v765_v30 = vld [vmem:[%s9623_s22 + $0xd08] sm:$0xff] }
 0x12a   : > { %v769_v32 = vld [vmem:[%s9623_s22 + $0xd28] sm:$0xff]  ;;  %v8449_v35 = vcombine.high %v764_v28, %v768_v29  ;;  %v8448_v42 = vcombine.low %v764_v28, %v768_v29  ;;  %v816_v21 = vld [vmem:[%s9623_s22 + $0xea0] sm:$0xff] }
 0x12b   : > { %v8451_v36 = vcombine.high %v765_v30, %v769_v32  ;;  %v8450_v43 = vcombine.low %v765_v30, %v769_v32  ;;  %v8497_v28 = vcombine.high %v812_v20, %v816_v21  ;;  %v820_v30 = vld [vmem:[%s9623_s22 + $0xec0] sm:$0xff] }
 0x12c   : > { %6643 = vmatpush1.bf16.msra.mxu0 %v8392_v37  ;;  %6971 = vmatpush1.bf16.msra.mxu1 %v8394_v38  ;;  %v772_v37 = vld [vmem:[%s9623_s22 + $0xd40] sm:$0xff] }
 0x12d   : > { %6644 = vmatprep.subr.bf16.mxu0 %v8401_v39  ;;  %6972 = vmatprep.subr.bf16.mxu1 %v8403_v40  ;;  %v776_v38 = vld [vmem:[%s9623_s22 + $0xd60] sm:$0xff]  ;;  %v773_v39 = vld [vmem:[%s9623_s22 + $0xd48] sm:$0xff] }
 0x12e   : > { %v777_v40 = vld [vmem:[%s9623_s22 + $0xd68] sm:$0xff]  ;;  %v8457_v45 = vcombine.high %v772_v37, %v776_v38  ;;  %v824_v32 = vld [vmem:[%s9623_s22 + $0xee0] sm:$0xff] }
 0x12f   : > { %v8459_v46 = vcombine.high %v773_v39, %v777_v40  ;;  %v8458_v52 = vcombine.low %v773_v39, %v777_v40  ;;  %v828_v39 = vld [vmem:[%s9623_s22 + $0xf00] sm:$0xff] }
 0x130   : > { %6645 = vmatpush1.bf16.msra.mxu0 %v8400_v48  ;;  %6973 = vmatpush1.bf16.msra.mxu1 %v8402_v49  ;;  %v784_v48 = vld [vmem:[%s9623_s22 + $0xda0] sm:$0xff]  ;;  %v781_v49 = vld [vmem:[%s9623_s22 + $0xd88] sm:$0xff] }
 0x131   : > { %6646 = vmatprep.subr.bf16.mxu0 %v8409_v50  ;;  %6974 = vmatprep.subr.bf16.mxu1 %v8411_v16  ;;  %v785_v50 = vld [vmem:[%s9623_s22 + $0xda8] sm:$0xff]  ;;  %v8456_v16 = vcombine.low %v772_v37, %v776_v38  ;;  %v8465_v54 = vcombine.high %v780_v47, %v784_v48  ;;  %v8505_v37 = vcombine.high %v820_v30, %v824_v32  ;;  %v832_v40 = vld [vmem:[%s9623_s22 + $0xf20] sm:$0xff] }
 0x132   : > { %v8467_v23 = vcombine.high %v781_v49, %v785_v50  ;;  %v8466_v62 = vcombine.low %v781_v49, %v785_v50  ;;  %v836_v49 = vld [vmem:[%s9623_s22 + $0xf40] sm:$0xff] }
 0x133   : > { %v840_v50 = vld [vmem:[%s9623_s22 + $0xf60] sm:$0xff] }
 0x134   : > { %6647 = vmatpush1.bf16.msra.mxu0 %v8408_v57  ;;  %6975 = vmatpush1.bf16.msra.mxu1 %v8410_v58  ;;  %v792_v57 = vld [vmem:[%s9623_s22 + $0xde0] sm:$0xff]  ;;  %v789_v58 = vld [vmem:[%s9623_s22 + $0xdc8] sm:$0xff] }
 0x135   : > { %6657 = vmatprep.subr.bf16.mxu0 %v8417_v60  ;;  %6985 = vmatprep.subr.bf16.mxu1 %v8419_v61  ;;  %v793_v60 = vld [vmem:[%s9623_s22 + $0xde8] sm:$0xff]  ;;  %v8464_v61 = vcombine.low %v780_v47, %v784_v48  ;;  %v8473_v0 = vcombine.high %v788_v56, %v792_v57  ;;  %v8513_v47 = vcombine.high %v828_v39, %v832_v40 }
 0x136   : > { %v8475_v1 = vcombine.high %v789_v58, %v793_v60 }
 0x137   : > { %6649 = vmatmul.mubr.bf16.vlgmr.msra.gmra.mrb[0].mxu0 %v9888_v2  ;;  %6977 = vmatmul.mubr.bf16.vlgmr.msra.gmra.mrb[0].mxu1 %v9888_v2 }
 0x138   : > { %6658 = vmatpush1.bf16.msra.mxu0 %v8416_v5  ;;  %6986 = vmatpush1.bf16.msra.mxu1 %v8418_v6  ;;  %v797_v5 = vld [vmem:[%s9623_s22 + $0xe08] sm:$0xff] }
 0x139   : > { %6659 = vmatprep.subr.bf16.mxu0 %v8425_v7  ;;  %6987 = vmatprep.subr.bf16.mxu1 %v8427_v8  ;;  %v801_v6 = vld [vmem:[%s9623_s22 + $0xe28] sm:$0xff]  ;;  %v8472_v7 = vcombine.low %v788_v56, %v792_v57  ;;  %v8474_v8 = vcombine.low %v789_v58, %v793_v60  ;;  %v8521_v56 = vcombine.high %v836_v49, %v840_v50  ;;  %v844_v58 = vld [vmem:[%s9623_s22 + $0xf80] sm:$0xff] }
 0x13a   : > { %6689 = vmatprep.mubr.bf16.mxu0 %v9894_v12  ;;  %7017 = vmatprep.mubr.bf16.mxu1 %v9894_v12  ;;  %v8483_v11 = vcombine.high %v797_v5, %v801_v6  ;;  %v848_v60 = vld [vmem:[%s9623_s22 + $0xfa0] sm:$0xff] }
 0x13c   : > { %6660 = vmatpush1.bf16.msra.mxu0 %v8424_v14  ;;  %6988 = vmatpush1.bf16.msra.mxu1 %v8426_v15  ;;  %v805_v14 = vld [vmem:[%s9623_s22 + $0xe48] sm:$0xff] }
 0x13d   : > { %6661 = vmatprep.subr.bf16.mxu0 %v8433_v59  ;;  %6989 = vmatprep.subr.bf16.mxu1 %v8435_v17  ;;  %v809_v15 = vld [vmem:[%s9623_s22 + $0xe68] sm:$0xff]  ;;  %v8480_v59 = vcombine.low %v796_v3, %v800_v4  ;;  %v8482_v17 = vcombine.low %v797_v5, %v801_v6  ;;  %v8529_v3 = vcombine.high %v844_v58, %v848_v60  ;;  %v852_v5 = vld [vmem:[%s9623_s22 + $0xfc0] sm:$0xff] }
 0x13e   : > { %v8491_v19 = vcombine.high %v805_v14, %v809_v15  ;;  %v856_v6 = vld [vmem:[%s9623_s22 + $0xfe0] sm:$0xff] }
 0x140   : > { %6662 = vmatpush1.bf16.msra.mxu0 %v8432_v22  ;;  %6990 = vmatpush1.bf16.msra.mxu1 %v8434_v24  ;;  %v813_v22 = vld [vmem:[%s9623_s22 + $0xe88] sm:$0xff] }
 0x141   : > { %6663 = vmatprep.subr.bf16.mxu0 %v8441_v26  ;;  %6991 = vmatprep.subr.bf16.mxu1 %v8443_v27  ;;  %v817_v24 = vld [vmem:[%s9623_s22 + $0xea8] sm:$0xff]  ;;  %v8488_v26 = vcombine.low %v804_v31, %v808_v13  ;;  %v8490_v27 = vcombine.low %v805_v14, %v809_v15  ;;  %v8537_v13 = vcombine.high %v852_v5, %v856_v6  ;;  %v860_v15 = vld [vmem:[%s9623_s22 + $0x1000] sm:$0xff] }
 0x142   : > { %v8499_v29 = vcombine.high %v813_v22, %v817_v24 }
 0x144   : > { %6664 = vmatpush1.bf16.msra.mxu0 %v8440_v33  ;;  %6992 = vmatpush1.bf16.msra.mxu1 %v8442_v63  ;;  %v821_v33 = vld [vmem:[%s9623_s22 + $0xec8] sm:$0xff] }
 0x145   : > { %6665 = vmatprep.subr.bf16.mxu0 %v8449_v35  ;;  %6993 = vmatprep.subr.bf16.mxu1 %v8451_v36  ;;  %v825_v63 = vld [vmem:[%s9623_s22 + $0xee8] sm:$0xff]  ;;  %v8496_v35 = vcombine.low %v812_v20, %v816_v21  ;;  %v8498_v36 = vcombine.low %v813_v22, %v817_v24  ;;  %v8536_v20 = vcombine.low %v852_v5, %v856_v6 }
 0x146   : > { %v8507_v38 = vcombine.high %v821_v33, %v825_v63  ;;  %v901_v5 = vld [vmem:[%s9623_s22 + $0x1148] sm:$0xff] }
 0x147   : > { %v905_v6 = vld [vmem:[%s9623_s22 + $0x1168] sm:$0xff] }
 0x148   : > { %6666 = vmatpush1.bf16.msra.mxu0 %v8448_v42  ;;  %6994 = vmatpush1.bf16.msra.mxu1 %v8450_v43  ;;  %v829_v42 = vld [vmem:[%s9623_s22 + $0xf08] sm:$0xff] }
 0x149   : > { %6667 = vmatprep.subr.bf16.mxu0 %v8457_v45  ;;  %6995 = vmatprep.subr.bf16.mxu1 %v8459_v46  ;;  %v833_v43 = vld [vmem:[%s9623_s22 + $0xf28] sm:$0xff]  ;;  %v8504_v45 = vcombine.low %v820_v30, %v824_v32  ;;  %v8506_v46 = vcombine.low %v821_v33, %v825_v63 }
 0x14a   : > { %v8515_v48 = vcombine.high %v829_v42, %v833_v43  ;;  %v869_v30 = vld [vmem:[%s9623_s22 + $0x1048] sm:$0xff] }
 0x14b   : > { %v873_v32 = vld [vmem:[%s9623_s22 + $0x1068] sm:$0xff] }
 0x14c   : > { %6668 = vmatpush1.bf16.msra.mxu0 %v8456_v16  ;;  %6996 = vmatpush1.bf16.msra.mxu1 %v8458_v52  ;;  %v837_v16 = vld [vmem:[%s9623_s22 + $0xf48] sm:$0xff] }
 0x14d   : > { %6669 = vmatprep.subr.bf16.mxu0 %v8465_v54  ;;  %6997 = vmatprep.subr.bf16.mxu1 %v8467_v23  ;;  %v841_v52 = vld [vmem:[%s9623_s22 + $0xf68] sm:$0xff]  ;;  %v8512_v54 = vcombine.low %v828_v39, %v832_v40  ;;  %v8514_v23 = vcombine.low %v829_v42, %v833_v43  ;;  %v8554_v43 = vcombine.low %v869_v30, %v873_v32 }
 0x14e   : > { %v8523_v57 = vcombine.high %v837_v16, %v841_v52  ;;  %v881_v40 = vld [vmem:[%s9623_s22 + $0x10a8] sm:$0xff] }
 0x150   : > { %6670 = vmatpush1.bf16.msra.mxu0 %v8464_v61  ;;  %6998 = vmatpush1.bf16.msra.mxu1 %v8466_v62  ;;  %v845_v61 = vld [vmem:[%s9623_s22 + $0xf88] sm:$0xff] }
 0x151   : > { %6671 = vmatprep.subr.bf16.mxu0 %v8473_v0  ;;  %6999 = vmatprep.subr.bf16.mxu1 %v8475_v1  ;;  %v849_v62 = vld [vmem:[%s9623_s22 + $0xfa8] sm:$0xff]  ;;  %v8520_v0 = vcombine.low %v836_v49, %v840_v50  ;;  %v8522_v1 = vcombine.low %v837_v16, %v841_v52 }
 0x152   : > { %v8531_v4 = vcombine.high %v845_v61, %v849_v62  ;;  %v8530_v31 = vcombine.low %v845_v61, %v849_v62  ;;  %v885_v49 = vld [vmem:[%s9623_s22 + $0x10c8] sm:$0xff] }
 0x153   : > { %v889_v50 = vld [vmem:[%s9623_s22 + $0x10e8] sm:$0xff] }
 0x154   : > { %6672 = vmatpush1.bf16.msra.mxu0 %v8472_v7  ;;  %7000 = vmatpush1.bf16.msra.mxu1 %v8474_v8  ;;  %v853_v7 = vld [vmem:[%s9623_s22 + $0xfc8] sm:$0xff]  ;;  %v8570_v62 = vcombine.low %v885_v49, %v889_v50 }
 0x155   : > { %6673 = vmatprep.subr.bf16.mxu0 %v8481_v10  ;;  %7001 = vmatprep.subr.bf16.mxu1 %v8483_v11  ;;  %v857_v8 = vld [vmem:[%s9623_s22 + $0xfe8] sm:$0xff]  ;;  %v9954_v10 = vld [vmem:[#allocation2 + $0x10] sm:$0xff]  ;;  %v8528_v11 = vcombine.low %v844_v58, %v848_v60 }
 0x156   : > { %v8539_v14 = vcombine.high %v853_v7, %v857_v8  ;;  %v8538_v21 = vcombine.low %v853_v7, %v857_v8  ;;  %v893_v58 = vld [vmem:[%s9623_s22 + $0x1108] sm:$0xff] }
 0x157   : > { %v897_v60 = vld [vmem:[%s9623_s22 + $0x1128] sm:$0xff] }
 0x158   : > { %6674 = vmatpush1.bf16.msra.mxu0 %v8480_v59  ;;  %7002 = vmatpush1.bf16.msra.mxu1 %v8482_v17  ;;  %v864_v59 = vld [vmem:[%s9623_s22 + $0x1020] sm:$0xff]  ;;  %v9960_v17 = vrot.slane %v9954_v10, %v9658_v53  ;;  %v8578_v8 = vcombine.low %v893_v58, %v897_v60 }
 0x159   : > { %6675 = vmatprep.subr.bf16.mxu0 %v8489_v18  ;;  %7003 = vmatprep.subr.bf16.mxu1 %v8491_v19  ;;  %v861_v18 = vld [vmem:[%s9623_s22 + $0x1008] sm:$0xff]  ;;  %v8545_v22 = vcombine.high %v860_v15, %v864_v59  ;;  %v8544_v33 = vcombine.low %v860_v15, %v864_v59 }
 0x15a   : > { %v865_v19 = vld [vmem:[%s9623_s22 + $0x1028] sm:$0xff] }
 0x15b   : > { %v8547_v24 = vcombine.high %v861_v18, %v865_v19  ;;  %v8546_v63 = vcombine.low %v861_v18, %v865_v19  ;;  %v909_v15 = vld [vmem:[%s9623_s22 + $0x1188] sm:$0xff]  ;;  %v8586_v19 = vcombine.low %v901_v5, %v905_v6 }
 0x15c   : > { %6676 = vmatpush1.bf16.msra.mxu0 %v8488_v26  ;;  %7004 = vmatpush1.bf16.msra.mxu1 %v8490_v27  ;;  %v868_v26 = vld [vmem:[%s9623_s22 + $0x1040] sm:$0xff]  ;;  %v913_v59 = vld [vmem:[%s9623_s22 + $0x11a8] sm:$0xff] }
 0x15d   : > { %6677 = vmatprep.subr.bf16.mxu0 %v8497_v28  ;;  %7005 = vmatprep.subr.bf16.mxu1 %v8499_v29  ;;  %v872_v27 = vld [vmem:[%s9623_s22 + $0x1060] sm:$0xff]  ;;  %v297_v28 = vcombine.high %v9960_v17, %v9960_v17  ;;  %v9970_v29 = vpack.c.bf16 %v9878_v55, %v9878_v55  ;;  %v877_v55 = vld [vmem:[%s9623_s22 + $0x1088] sm:$0xff] }
 0x15e   : > { %v8552_v42 = vcombine.low %v868_v26, %v872_v27  ;;  %v8562_v52 = vcombine.low %v877_v55, %v881_v40 }
 0x15f   : > { %v9976_v39 = vpack.c.bf16 %v297_v28, %v297_v28 }
 0x160   : > { %6678 = vmatpush1.bf16.msra.mxu0 %v8496_v35  ;;  %7006 = vmatpush1.bf16.msra.mxu1 %v8498_v36  ;;  %v8553_v35 = vcombine.high %v868_v26, %v872_v27  ;;  %v8555_v36 = vcombine.high %v869_v30, %v873_v32  ;;  %v917_v26 = vld [vmem:[%s9623_s22 + $0x11c8] sm:$0xff]  ;;  %v8594_v30 = vcombine.low %v909_v15, %v913_v59 }
 0x161   : > { %6679 = vmatprep.subr.bf16.mxu0 %v8505_v37  ;;  %7007 = vmatprep.subr.bf16.mxu1 %v8507_v38  ;;  %v876_v37 = vld [vmem:[%s9623_s22 + $0x1080] sm:$0xff]  ;;  %v921_v27 = vld [vmem:[%s9623_s22 + $0x11e8] sm:$0xff] }
 0x162   : > { %v880_v38 = vld [vmem:[%s9623_s22 + $0x10a0] sm:$0xff] }
 0x163   : > { %v8560_v16 = vcombine.low %v876_v37, %v880_v38 }
 0x164   : > { %6680 = vmatpush1.bf16.msra.mxu0 %v8504_v45  ;;  %7008 = vmatpush1.bf16.msra.mxu1 %v8506_v46  ;;  %v8561_v45 = vcombine.high %v876_v37, %v880_v38  ;;  %v8563_v46 = vcombine.high %v877_v55, %v881_v40  ;;  %v929_v37 = vld [vmem:[%s9623_s22 + $0x1228] sm:$0xff]  ;;  %v8602_v55 = vcombine.low %v917_v26, %v921_v27 }
 0x165   : > { %6681 = vmatprep.subr.bf16.mxu0 %v8513_v47  ;;  %7009 = vmatprep.subr.bf16.mxu1 %v8515_v48  ;;  %v884_v47 = vld [vmem:[%s9623_s22 + $0x10c0] sm:$0xff] }
 0x166   : > { %v888_v48 = vld [vmem:[%s9623_s22 + $0x10e0] sm:$0xff] }
 0x167   : > { %v8568_v61 = vcombine.low %v884_v47, %v888_v48 }
 0x168   : > { %6682 = vmatpush1.bf16.msra.mxu0 %v8512_v54  ;;  %7010 = vmatpush1.bf16.msra.mxu1 %v8514_v23  ;;  %v8569_v54 = vcombine.high %v884_v47, %v888_v48  ;;  %v8571_v23 = vcombine.high %v885_v49, %v889_v50  ;;  %v937_v47 = vld [vmem:[%s9623_s22 + $0x1268] sm:$0xff] }
 0x169   : > { %6683 = vmatprep.subr.bf16.mxu0 %v8521_v56  ;;  %7011 = vmatprep.subr.bf16.mxu1 %v8523_v57  ;;  %v892_v56 = vld [vmem:[%s9623_s22 + $0x1100] sm:$0xff] }
 0x16a   : > { %v896_v57 = vld [vmem:[%s9623_s22 + $0x1120] sm:$0xff] }
 0x16b   : > { %v8576_v7 = vcombine.low %v892_v56, %v896_v57 }
 0x16c   : > { %6684 = vmatpush1.bf16.msra.mxu0 %v8520_v0  ;;  %7012 = vmatpush1.bf16.msra.mxu1 %v8522_v1  ;;  %v8577_v0 = vcombine.high %v892_v56, %v896_v57  ;;  %v8579_v1 = vcombine.high %v893_v58, %v897_v60  ;;  %v945_v56 = vld [vmem:[%s9623_s22 + $0x12a8] sm:$0xff] }
 0x16d   : > { %6685 = vmatprep.subr.bf16.mxu0 %v8529_v3  ;;  %7013 = vmatprep.subr.bf16.mxu1 %v8531_v4  ;;  %v900_v3 = vld [vmem:[%s9623_s22 + $0x1140] sm:$0xff] }
 0x16e   : > { %v904_v4 = vld [vmem:[%s9623_s22 + $0x1160] sm:$0xff] }
 0x16f   : > { %v8584_v18 = vcombine.low %v900_v3, %v904_v4 }
 0x170   : > { %6686 = vmatpush1.bf16.msra.mxu0 %v8528_v11  ;;  %7014 = vmatpush1.bf16.msra.mxu1 %v8530_v31  ;;  %v8585_v11 = vcombine.high %v900_v3, %v904_v4  ;;  %v8587_v31 = vcombine.high %v901_v5, %v905_v6  ;;  %v953_v3 = vld [vmem:[%s9623_s22 + $0x12e8] sm:$0xff] }
 0x171   : > { %6687 = vmatprep.subr.bf16.mxu0 %v8537_v13  ;;  %7015 = vmatprep.subr.bf16.mxu1 %v8539_v14  ;;  %v908_v13 = vld [vmem:[%s9623_s22 + $0x1180] sm:$0xff] }
 0x172   : > { %v912_v14 = vld [vmem:[%s9623_s22 + $0x11a0] sm:$0xff] }
 0x173   : > { %v8592_v28 = vcombine.low %v908_v13, %v912_v14 }
 0x174   : > { %6688 = vmatpush1.bf16.msra.mxu0 %v8536_v20  ;;  %7016 = vmatpush1.bf16.msra.mxu1 %v8538_v21  ;;  %v8593_v20 = vcombine.high %v908_v13, %v912_v14  ;;  %v8595_v21 = vcombine.high %v909_v15, %v913_v59  ;;  %v961_v13 = vld [vmem:[%s9623_s22 + $0x1328] sm:$0xff] }
 0x175   : > { %6698 = vmatprep.subr.bf16.mxu0 %v8545_v22  ;;  %7026 = vmatprep.subr.bf16.mxu1 %v8547_v24  ;;  %v916_v22 = vld [vmem:[%s9623_s22 + $0x11c0] sm:$0xff] }
 0x176   : > { %v920_v24 = vld [vmem:[%s9623_s22 + $0x11e0] sm:$0xff] }
 0x177   : > { %6690 = vmatmul.mubr.bf16.vlgmr.msra.gmra.mrb[0].mxu0 %v9970_v29  ;;  %7018 = vmatmul.mubr.bf16.vlgmr.msra.gmra.mrb[0].mxu1 %v9970_v29  ;;  %v8601_v32 = vcombine.high %v916_v22, %v920_v24  ;;  %v8600_v38 = vcombine.low %v916_v22, %v920_v24  ;;  %v969_v22 = vld [vmem:[%s9623_s22 + $0x1368] sm:$0xff] }
 0x178   : > { %6699 = vmatpush1.bf16.msra.mxu0 %v8544_v33  ;;  %7027 = vmatpush1.bf16.msra.mxu1 %v8546_v63  ;;  %v8603_v33 = vcombine.high %v917_v26, %v921_v27  ;;  %v924_v63 = vld [vmem:[%s9623_s22 + $0x1200] sm:$0xff] }
 0x179   : > { %6700 = vmatprep.subr.bf16.mxu0 %v8553_v35  ;;  %7028 = vmatprep.subr.bf16.mxu1 %v8555_v36  ;;  %v928_v35 = vld [vmem:[%s9623_s22 + $0x1220] sm:$0xff]  ;;  %v925_v36 = vld [vmem:[%s9623_s22 + $0x1208] sm:$0xff] }
 0x17a   : > { %6730 = vmatprep.mubr.bf16.mxu0 %v9976_v39  ;;  %7058 = vmatprep.mubr.bf16.mxu1 %v9976_v39  ;;  %v8609_v40 = vcombine.high %v924_v63, %v928_v35  ;;  %v8608_v48 = vcombine.low %v924_v63, %v928_v35  ;;  %v8610_v49 = vcombine.low %v925_v36, %v929_v37  ;;  %v977_v63 = vld [vmem:[%s9623_s22 + $0x13a8] sm:$0xff] }
 0x17c   : > { %6701 = vmatpush1.bf16.msra.mxu0 %v8552_v42  ;;  %7029 = vmatpush1.bf16.msra.mxu1 %v8554_v43  ;;  %v8611_v42 = vcombine.high %v925_v36, %v929_v37  ;;  %v932_v43 = vld [vmem:[%s9623_s22 + $0x1240] sm:$0xff] }
 0x17d   : > { %6702 = vmatprep.subr.bf16.mxu0 %v8561_v45  ;;  %7030 = vmatprep.subr.bf16.mxu1 %v8563_v46  ;;  %v936_v45 = vld [vmem:[%s9623_s22 + $0x1260] sm:$0xff]  ;;  %v933_v46 = vld [vmem:[%s9623_s22 + $0x1248] sm:$0xff] }
 0x17e   : > { %v8617_v50 = vcombine.high %v932_v43, %v936_v45  ;;  %v8616_v57 = vcombine.low %v932_v43, %v936_v45  ;;  %v8618_v58 = vcombine.low %v933_v46, %v937_v47  ;;  %v981_v43 = vld [vmem:[%s9623_s22 + $0x13c8] sm:$0xff] }
 0x17f   : > { %v985_v45 = vld [vmem:[%s9623_s22 + $0x13e8] sm:$0xff] }
 0x180   : > { %6703 = vmatpush1.bf16.msra.mxu0 %v8560_v16  ;;  %7031 = vmatpush1.bf16.msra.mxu1 %v8562_v52  ;;  %v8619_v16 = vcombine.high %v933_v46, %v937_v47  ;;  %v940_v52 = vld [vmem:[%s9623_s22 + $0x1280] sm:$0xff] }
 0x181   : > { %6704 = vmatprep.subr.bf16.mxu0 %v8569_v54  ;;  %7032 = vmatprep.subr.bf16.mxu1 %v8571_v23  ;;  %v944_v54 = vld [vmem:[%s9623_s22 + $0x12a0] sm:$0xff]  ;;  %v941_v23 = vld [vmem:[%s9623_s22 + $0x1288] sm:$0xff] }
 0x182   : > { %v8625_v60 = vcombine.high %v940_v52, %v944_v54  ;;  %v8624_v4 = vcombine.low %v940_v52, %v944_v54  ;;  %v8626_v5 = vcombine.low %v941_v23, %v945_v56  ;;  %v993_v54 = vld [vmem:[%s9623_s22 + $0x1428] sm:$0xff] }
 0x184   : > { %6705 = vmatpush1.bf16.msra.mxu0 %v8568_v61  ;;  %7033 = vmatpush1.bf16.msra.mxu1 %v8570_v62  ;;  %v8627_v61 = vcombine.high %v941_v23, %v945_v56  ;;  %v948_v62 = vld [vmem:[%s9623_s22 + $0x12c0] sm:$0xff]  ;;  %v8666_v56 = vcombine.low %v981_v43, %v985_v45 }
 0x185   : > { %6706 = vmatprep.subr.bf16.mxu0 %v8577_v0  ;;  %7034 = vmatprep.subr.bf16.mxu1 %v8579_v1  ;;  %v952_v0 = vld [vmem:[%s9623_s22 + $0x12e0] sm:$0xff]  ;;  %v949_v1 = vld [vmem:[%s9623_s22 + $0x12c8] sm:$0xff] }
 0x186   : > { %v8633_v6 = vcombine.high %v948_v62, %v952_v0  ;;  %v8632_v14 = vcombine.low %v948_v62, %v952_v0  ;;  %v8634_v15 = vcombine.low %v949_v1, %v953_v3  ;;  %v10051_v0 = vpack.c.bf16 %v9960_v17, %v9960_v17  ;;  %v1005_v17 = vld [vmem:[%s9623_s22 + $0x1488] sm:$0xff] }
 0x188   : > { %6707 = vmatpush1.bf16.msra.mxu0 %v8576_v7  ;;  %7035 = vmatpush1.bf16.msra.mxu1 %v8578_v8  ;;  %v8635_v7 = vcombine.high %v949_v1, %v953_v3  ;;  %v956_v8 = vld [vmem:[%s9623_s22 + $0x1300] sm:$0xff]  ;;  %v997_v1 = vld [vmem:[%s9623_s22 + $0x1448] sm:$0xff] }
 0x189   : > { %6708 = vmatprep.subr.bf16.mxu0 %v8585_v11  ;;  %7036 = vmatprep.subr.bf16.mxu1 %v8587_v31  ;;  %v960_v11 = vld [vmem:[%s9623_s22 + $0x1320] sm:$0xff]  ;;  %v957_v31 = vld [vmem:[%s9623_s22 + $0x1308] sm:$0xff] }
 0x18a   : > { %v8641_v59 = vcombine.high %v956_v8, %v960_v11  ;;  %v8640_v24 = vcombine.low %v956_v8, %v960_v11  ;;  %v8642_v26 = vcombine.low %v957_v31, %v961_v13  ;;  %v1001_v3 = vld [vmem:[%s9623_s22 + $0x1468] sm:$0xff]  ;;  %v1004_v8 = vld [vmem:[%s9623_s22 + $0x1480] sm:$0xff] }
 0x18b   : > { %v1008_v11 = vld [vmem:[%s9623_s22 + $0x14a0] sm:$0xff] }
 0x18c   : > { %6709 = vmatpush1.bf16.msra.mxu0 %v8584_v18  ;;  %7037 = vmatpush1.bf16.msra.mxu1 %v8586_v19  ;;  %v8643_v18 = vcombine.high %v957_v31, %v961_v13  ;;  %v964_v19 = vld [vmem:[%s9623_s22 + $0x1340] sm:$0xff]  ;;  %v1009_v13 = vld [vmem:[%s9623_s22 + $0x14a8] sm:$0xff] }
 0x18d   : > { %6710 = vmatprep.subr.bf16.mxu0 %v8593_v20  ;;  %7038 = vmatprep.subr.bf16.mxu1 %v8595_v21  ;;  %v968_v20 = vld [vmem:[%s9623_s22 + $0x1360] sm:$0xff]  ;;  %v965_v21 = vld [vmem:[%s9623_s22 + $0x1348] sm:$0xff] }
 0x18e   : > { %v8649_v27 = vcombine.high %v964_v19, %v968_v20  ;;  %v8648_v35 = vcombine.low %v964_v19, %v968_v20  ;;  %v8650_v36 = vcombine.low %v965_v21, %v969_v22  ;;  %v1012_v19 = vld [vmem:[%s9623_s22 + $0x14c0] sm:$0xff] }
 0x18f   : > { %v1016_v20 = vld [vmem:[%s9623_s22 + $0x14e0] sm:$0xff] }
 0x190   : > { %6711 = vmatpush1.bf16.msra.mxu0 %v8592_v28  ;;  %7039 = vmatpush1.bf16.msra.mxu1 %v8594_v30  ;;  %v8651_v28 = vcombine.high %v965_v21, %v969_v22  ;;  %v972_v30 = vld [vmem:[%s9623_s22 + $0x1380] sm:$0xff]  ;;  %v1013_v21 = vld [vmem:[%s9623_s22 + $0x14c8] sm:$0xff] }
 0x191   : > { %6712 = vmatprep.subr.bf16.mxu0 %v8601_v32  ;;  %7040 = vmatprep.subr.bf16.mxu1 %v8603_v33  ;;  %v976_v32 = vld [vmem:[%s9623_s22 + $0x13a0] sm:$0xff]  ;;  %v973_v33 = vld [vmem:[%s9623_s22 + $0x1388] sm:$0xff] }
 0x192   : > { %v8657_v37 = vcombine.high %v972_v30, %v976_v32  ;;  %v8656_v46 = vcombine.low %v972_v30, %v976_v32  ;;  %v8658_v47 = vcombine.low %v973_v33, %v977_v63  ;;  %v1017_v22 = vld [vmem:[%s9623_s22 + $0x14e8] sm:$0xff]  ;;  %v1020_v30 = vld [vmem:[%s9623_s22 + $0x1500] sm:$0xff] }
 0x193   : > { %v1024_v32 = vld [vmem:[%s9623_s22 + $0x1520] sm:$0xff] }
 0x194   : > { %6713 = vmatpush1.bf16.msra.mxu0 %v8600_v38  ;;  %7041 = vmatpush1.bf16.msra.mxu1 %v8602_v55  ;;  %v8659_v38 = vcombine.high %v973_v33, %v977_v63  ;;  %v980_v55 = vld [vmem:[%s9623_s22 + $0x13c0] sm:$0xff]  ;;  %v1021_v33 = vld [vmem:[%s9623_s22 + $0x1508] sm:$0xff] }
 0x195   : > { %6714 = vmatprep.subr.bf16.mxu0 %v8609_v40  ;;  %7042 = vmatprep.subr.bf16.mxu1 %v8611_v42  ;;  %v984_v40 = vld [vmem:[%s9623_s22 + $0x13e0] sm:$0xff]  ;;  %v282_v42 = vcombine.high %v9954_v10, %v9954_v10  ;;  %v989_v10 = vld [vmem:[%s9623_s22 + $0x1408] sm:$0xff] }
 0x196   : > { %v8664_v23 = vcombine.low %v980_v55, %v984_v40  ;;  %v1025_v63 = vld [vmem:[%s9623_s22 + $0x1528] sm:$0xff] }
 0x197   : > { %v10041_v52 = vrot.slane %v282_v42, %v9658_v53  ;;  %v1029_v42 = vld [vmem:[%s9623_s22 + $0x1548] sm:$0xff] }
 0x198   : > { %6715 = vmatpush1.bf16.msra.mxu0 %v8608_v48  ;;  %7043 = vmatpush1.bf16.msra.mxu1 %v8610_v49  ;;  %v8665_v48 = vcombine.high %v980_v55, %v984_v40  ;;  %v8667_v49 = vcombine.high %v981_v43, %v985_v45  ;;  %v1028_v55 = vld [vmem:[%s9623_s22 + $0x1540] sm:$0xff]  ;;  %v1033_v43 = vld [vmem:[%s9623_s22 + $0x1568] sm:$0xff]  ;;  %v8704_v45 = vcombine.low %v1020_v30, %v1024_v32 }
 0x199   : > { %6716 = vmatprep.subr.bf16.mxu0 %v8617_v50  ;;  %7044 = vmatprep.subr.bf16.mxu1 %v8619_v16  ;;  %v988_v50 = vld [vmem:[%s9623_s22 + $0x1400] sm:$0xff]  ;;  %v298_v62 = vcombine.high %v10041_v52, %v10041_v52 }
 0x19a   : > { %v992_v16 = vld [vmem:[%s9623_s22 + $0x1420] sm:$0xff] }
 0x19b   : > { %v10057_v31 = vpack.c.bf16 %v298_v62, %v298_v62  ;;  %v1032_v40 = vld [vmem:[%s9623_s22 + $0x1560] sm:$0xff]  ;;  %v1049_v62 = vld [vmem:[%s9623_s22 + $0x15e8] sm:$0xff] }
 0x19c   : > { %6717 = vmatpush1.bf16.msra.mxu0 %v8616_v57  ;;  %7045 = vmatpush1.bf16.msra.mxu1 %v8618_v58  ;;  %v8673_v57 = vcombine.high %v988_v50, %v992_v16  ;;  %v8675_v58 = vcombine.high %v989_v10, %v993_v54 }
 0x19d   : > { %6718 = vmatprep.subr.bf16.mxu0 %v8625_v60  ;;  %7046 = vmatprep.subr.bf16.mxu1 %v8627_v61  ;;  %v996_v60 = vld [vmem:[%s9623_s22 + $0x1440] sm:$0xff] }
 0x19e   : > { %v1000_v61 = vld [vmem:[%s9623_s22 + $0x1460] sm:$0xff] }
 0x1a0   : > { %6719 = vmatpush1.bf16.msra.mxu0 %v8624_v4  ;;  %7047 = vmatpush1.bf16.msra.mxu1 %v8626_v5  ;;  %v8672_v4 = vcombine.low %v988_v50, %v992_v16  ;;  %v8674_v5 = vcombine.low %v989_v10, %v993_v54  ;;  %v1040_v50 = vld [vmem:[%s9623_s22 + $0x15a0] sm:$0xff]  ;;  %v1037_v16 = vld [vmem:[%s9623_s22 + $0x1588] sm:$0xff]  ;;  %v8712_v54 = vcombine.low %v1028_v55, %v1032_v40 }
 0x1a1   : > { %6720 = vmatprep.subr.bf16.mxu0 %v8633_v6  ;;  %7048 = vmatprep.subr.bf16.mxu1 %v8635_v7  ;;  %v8681_v6 = vcombine.high %v996_v60, %v1000_v61  ;;  %v8683_v7 = vcombine.high %v997_v1, %v1001_v3  ;;  %v1041_v10 = vld [vmem:[%s9623_s22 + $0x15a8] sm:$0xff] }
 0x1a4   : > { %6721 = vmatpush1.bf16.msra.mxu0 %v8632_v14  ;;  %7049 = vmatpush1.bf16.msra.mxu1 %v8634_v15  ;;  %v8680_v14 = vcombine.low %v996_v60, %v1000_v61  ;;  %v8682_v15 = vcombine.low %v997_v1, %v1001_v3  ;;  %v1048_v60 = vld [vmem:[%s9623_s22 + $0x15e0] sm:$0xff]  ;;  %v1045_v61 = vld [vmem:[%s9623_s22 + $0x15c8] sm:$0xff]  ;;  %v8722_v3 = vcombine.low %v1037_v16, %v1041_v10 }
 0x1a5   : > { %6722 = vmatprep.subr.bf16.mxu0 %v8641_v59  ;;  %7050 = vmatprep.subr.bf16.mxu1 %v8643_v18  ;;  %v8689_v59 = vcombine.high %v1004_v8, %v1008_v11  ;;  %v8691_v18 = vcombine.high %v1005_v17, %v1009_v13 }
 0x1a8   : > { %6723 = vmatpush1.bf16.msra.mxu0 %v8640_v24  ;;  %7051 = vmatpush1.bf16.msra.mxu1 %v8642_v26  ;;  %v8688_v24 = vcombine.low %v1004_v8, %v1008_v11  ;;  %v8690_v26 = vcombine.low %v1005_v17, %v1009_v13  ;;  %v1053_v8 = vld [vmem:[%s9623_s22 + $0x1608] sm:$0xff]  ;;  %v8730_v13 = vcombine.low %v1045_v61, %v1049_v62 }
 0x1a9   : > { %6724 = vmatprep.subr.bf16.mxu0 %v8649_v27  ;;  %7052 = vmatprep.subr.bf16.mxu1 %v8651_v28  ;;  %v8697_v27 = vcombine.high %v1012_v19, %v1016_v20  ;;  %v8699_v28 = vcombine.high %v1013_v21, %v1017_v22  ;;  %v1057_v11 = vld [vmem:[%s9623_s22 + $0x1628] sm:$0xff] }
 0x1ac   : > { %6725 = vmatpush1.bf16.msra.mxu0 %v8648_v35  ;;  %7053 = vmatpush1.bf16.msra.mxu1 %v8650_v36  ;;  %v8696_v35 = vcombine.low %v1012_v19, %v1016_v20  ;;  %v8698_v36 = vcombine.low %v1013_v21, %v1017_v22  ;;  %v1061_v19 = vld [vmem:[%s9623_s22 + $0x1648] sm:$0xff]  ;;  %v8738_v22 = vcombine.low %v1053_v8, %v1057_v11 }
 0x1ad   : > { %6726 = vmatprep.subr.bf16.mxu0 %v8657_v37  ;;  %7054 = vmatprep.subr.bf16.mxu1 %v8659_v38  ;;  %v8705_v37 = vcombine.high %v1020_v30, %v1024_v32  ;;  %v8707_v38 = vcombine.high %v1021_v33, %v1025_v63  ;;  %v1065_v20 = vld [vmem:[%s9623_s22 + $0x1668] sm:$0xff] }
 0x1ae   : > { %v1069_v30 = vld [vmem:[%s9623_s22 + $0x1688] sm:$0xff] }
 0x1af   : > { %v1073_v32 = vld [vmem:[%s9623_s22 + $0x16a8] sm:$0xff] }
 0x1b0   : > { %6727 = vmatpush1.bf16.msra.mxu0 %v8656_v46  ;;  %7055 = vmatpush1.bf16.msra.mxu1 %v8658_v47  ;;  %v8706_v46 = vcombine.low %v1021_v33, %v1025_v63  ;;  %v8713_v47 = vcombine.high %v1028_v55, %v1032_v40  ;;  %v8746_v63 = vcombine.low %v1061_v19, %v1065_v20  ;;  %v1077_v55 = vld [vmem:[%s9623_s22 + $0x16c8] sm:$0xff] }
 0x1b1   : > { %6728 = vmatprep.subr.bf16.mxu0 %v8665_v48  ;;  %7056 = vmatprep.subr.bf16.mxu1 %v8667_v49  ;;  %v8715_v48 = vcombine.high %v1029_v42, %v1033_v43  ;;  %v1036_v49 = vld [vmem:[%s9623_s22 + $0x1580] sm:$0xff]  ;;  %v1081_v40 = vld [vmem:[%s9623_s22 + $0x16e8] sm:$0xff] }
 0x1b2   : > { %v8720_v1 = vcombine.low %v1036_v49, %v1040_v50 }
 0x1b4   : > { %6729 = vmatpush1.bf16.msra.mxu0 %v8664_v23  ;;  %7057 = vmatpush1.bf16.msra.mxu1 %v8666_v56  ;;  %v8714_v23 = vcombine.low %v1029_v42, %v1033_v43  ;;  %v8721_v56 = vcombine.high %v1036_v49, %v1040_v50  ;;  %v8754_v43 = vcombine.low %v1069_v30, %v1073_v32  ;;  %v1085_v49 = vld [vmem:[%s9623_s22 + $0x1708] sm:$0xff] }
 0x1b5   : > { %6739 = vmatprep.subr.bf16.mxu0 %v8673_v57  ;;  %7067 = vmatprep.subr.bf16.mxu1 %v8675_v58  ;;  %v8723_v57 = vcombine.high %v1037_v16, %v1041_v10  ;;  %v1044_v58 = vld [vmem:[%s9623_s22 + $0x15c0] sm:$0xff]  ;;  %v1089_v50 = vld [vmem:[%s9623_s22 + $0x1728] sm:$0xff]  ;;  %v8762_v10 = vcombine.low %v1077_v55, %v1081_v40 }
 0x1b6   : > { %v8728_v17 = vcombine.low %v1044_v58, %v1048_v60 }
 0x1b7   : > { %6731 = vmatmul.mubr.bf16.vlgmr.msra.gmra.mrb[0].mxu0 %v10051_v0  ;;  %7059 = vmatmul.mubr.bf16.vlgmr.msra.gmra.mrb[0].mxu1 %v10051_v0 }
 0x1b8   : > { %6740 = vmatpush1.bf16.msra.mxu0 %v8672_v4  ;;  %7068 = vmatpush1.bf16.msra.mxu1 %v8674_v5  ;;  %v8729_v4 = vcombine.high %v1044_v58, %v1048_v60  ;;  %v8731_v5 = vcombine.high %v1045_v61, %v1049_v62  ;;  %v1093_v58 = vld [vmem:[%s9623_s22 + $0x1748] sm:$0xff]  ;;  %v8770_v62 = vcombine.low %v1085_v49, %v1089_v50 }
 0x1b9   : > { %6741 = vmatprep.subr.bf16.mxu0 %v8681_v6  ;;  %7069 = vmatprep.subr.bf16.mxu1 %v8683_v7  ;;  %v1052_v6 = vld [vmem:[%s9623_s22 + $0x1600] sm:$0xff]  ;;  %v1097_v60 = vld [vmem:[%s9623_s22 + $0x1768] sm:$0xff] }
 0x1ba   : > { %6771 = vmatprep.mubr.bf16.mxu0 %v10057_v31  ;;  %7099 = vmatprep.mubr.bf16.mxu1 %v10057_v31  ;;  %v1056_v7 = vld [vmem:[%s9623_s22 + $0x1620] sm:$0xff] }
 0x1bb   : > { %v8736_v21 = vcombine.low %v1052_v6, %v1056_v7 }
 0x1bc   : > { %6742 = vmatpush1.bf16.msra.mxu0 %v8680_v14  ;;  %7070 = vmatpush1.bf16.msra.mxu1 %v8682_v15  ;;  %v8737_v14 = vcombine.high %v1052_v6, %v1056_v7  ;;  %v8739_v15 = vcombine.high %v1053_v8, %v1057_v11  ;;  %v1101_v6 = vld [vmem:[%s9623_s22 + $0x1788] sm:$0xff]  ;;  %v8778_v11 = vcombine.low %v1093_v58, %v1097_v60 }
 0x1bd   : > { %6743 = vmatprep.subr.bf16.mxu0 %v8689_v59  ;;  %7071 = vmatprep.subr.bf16.mxu1 %v8691_v18  ;;  %v1060_v59 = vld [vmem:[%s9623_s22 + $0x1640] sm:$0xff]  ;;  %v1105_v7 = vld [vmem:[%s9623_s22 + $0x17a8] sm:$0xff] }
 0x1be   : > { %v1064_v18 = vld [vmem:[%s9623_s22 + $0x1660] sm:$0xff] }
 0x1bf   : > { %v8744_v33 = vcombine.low %v1060_v59, %v1064_v18 }
 0x1c0   : > { %6744 = vmatpush1.bf16.msra.mxu0 %v8688_v24  ;;  %7072 = vmatpush1.bf16.msra.mxu1 %v8690_v26  ;;  %v8745_v24 = vcombine.high %v1060_v59, %v1064_v18  ;;  %v8747_v26 = vcombine.high %v1061_v19, %v1065_v20  ;;  %v1109_v59 = vld [vmem:[%s9623_s22 + $0x17c8] sm:$0xff]  ;;  %v10117_v19 = vld [vmem:[#allocation2 + $0x18] sm:$0xff] }
 0x1c1   : > { %6745 = vmatprep.subr.bf16.mxu0 %v8697_v27  ;;  %7073 = vmatprep.subr.bf16.mxu1 %v8699_v28  ;;  %v1068_v27 = vld [vmem:[%s9623_s22 + $0x1680] sm:$0xff]  ;;  %v1113_v18 = vld [vmem:[%s9623_s22 + $0x17e8] sm:$0xff] }
 0x1c2   : > { %v1072_v28 = vld [vmem:[%s9623_s22 + $0x16a0] sm:$0xff] }
 0x1c3   : > { %v8752_v42 = vcombine.low %v1068_v27, %v1072_v28 }
 0x1c4   : > { %6746 = vmatpush1.bf16.msra.mxu0 %v8696_v35  ;;  %7074 = vmatpush1.bf16.msra.mxu1 %v8698_v36  ;;  %v8753_v35 = vcombine.high %v1068_v27, %v1072_v28  ;;  %v8755_v36 = vcombine.high %v1069_v30, %v1073_v32  ;;  %v1120_v27 = vld [vmem:[%s9623_s22 + $0x1820] sm:$0xff]  ;;  %v10123_v28 = vrot.slane %v10117_v19, %v9658_v53  ;;  %v1117_v30 = vld [vmem:[%s9623_s22 + $0x1808] sm:$0xff] }
 0x1c5   : > { %6747 = vmatprep.subr.bf16.mxu0 %v8705_v37  ;;  %7075 = vmatprep.subr.bf16.mxu1 %v8707_v38  ;;  %v1076_v37 = vld [vmem:[%s9623_s22 + $0x16c0] sm:$0xff]  ;;  %v1121_v32 = vld [vmem:[%s9623_s22 + $0x1828] sm:$0xff] }
 0x1c6   : > { %v1080_v38 = vld [vmem:[%s9623_s22 + $0x16e0] sm:$0xff] }
 0x1c7   : > { %v8760_v16 = vcombine.low %v1076_v37, %v1080_v38 }
 0x1c8   : > { %6748 = vmatpush1.bf16.msra.mxu0 %v8704_v45  ;;  %7076 = vmatpush1.bf16.msra.mxu1 %v8706_v46  ;;  %v8761_v45 = vcombine.high %v1076_v37, %v1080_v38  ;;  %v8763_v46 = vcombine.high %v1077_v55, %v1081_v40  ;;  %v1124_v37 = vld [vmem:[%s9623_s22 + $0x1840] sm:$0xff]  ;;  %v314_v55 = vcombine.high %v10123_v28, %v10123_v28 }
 0x1c9   : > { %6749 = vmatprep.subr.bf16.mxu0 %v8713_v47  ;;  %7077 = vmatprep.subr.bf16.mxu1 %v8715_v48  ;;  %v1084_v47 = vld [vmem:[%s9623_s22 + $0x1700] sm:$0xff]  ;;  %v10133_v40 = vpack.c.bf16 %v10041_v52, %v10041_v52  ;;  %v1133_v52 = vld [vmem:[%s9623_s22 + $0x1888] sm:$0xff] }
 0x1ca   : > { %v1088_v48 = vld [vmem:[%s9623_s22 + $0x1720] sm:$0xff] }
 0x1cb   : > { %v8768_v61 = vcombine.low %v1084_v47, %v1088_v48  ;;  %v1128_v38 = vld [vmem:[%s9623_s22 + $0x1860] sm:$0xff] }
 0x1cc   : > { %6750 = vmatpush1.bf16.msra.mxu0 %v8712_v54  ;;  %7078 = vmatpush1.bf16.msra.mxu1 %v8714_v23  ;;  %v8769_v54 = vcombine.high %v1084_v47, %v1088_v48  ;;  %v8771_v23 = vcombine.high %v1085_v49, %v1089_v50  ;;  %v8809_v47 = vcombine.high %v1124_v37, %v1128_v38  ;;  %v1132_v49 = vld [vmem:[%s9623_s22 + $0x1880] sm:$0xff] }
 0x1cd   : > { %6751 = vmatprep.subr.bf16.mxu0 %v8721_v56  ;;  %7079 = vmatprep.subr.bf16.mxu1 %v8723_v57  ;;  %v1092_v56 = vld [vmem:[%s9623_s22 + $0x1740] sm:$0xff] }
 0x1ce   : > { %v1096_v57 = vld [vmem:[%s9623_s22 + $0x1760] sm:$0xff] }
 0x1cf   : > { %v8776_v8 = vcombine.low %v1092_v56, %v1096_v57  ;;  %v1136_v50 = vld [vmem:[%s9623_s22 + $0x18a0] sm:$0xff] }
 0x1d0   : > { %6752 = vmatpush1.bf16.msra.mxu0 %v8720_v1  ;;  %7080 = vmatpush1.bf16.msra.mxu1 %v8722_v3  ;;  %v8777_v1 = vcombine.high %v1092_v56, %v1096_v57  ;;  %v8779_v3 = vcombine.high %v1093_v58, %v1097_v60  ;;  %v8817_v56 = vcombine.high %v1132_v49, %v1136_v50  ;;  %v1140_v58 = vld [vmem:[%s9623_s22 + $0x18c0] sm:$0xff] }
 0x1d1   : > { %6753 = vmatprep.subr.bf16.mxu0 %v8729_v4  ;;  %7081 = vmatprep.subr.bf16.mxu1 %v8731_v5  ;;  %v1100_v4 = vld [vmem:[%s9623_s22 + $0x1780] sm:$0xff] }
 0x1d2   : > { %v1104_v5 = vld [vmem:[%s9623_s22 + $0x17a0] sm:$0xff] }
 0x1d3   : > { %v8784_v20 = vcombine.low %v1100_v4, %v1104_v5  ;;  %v1144_v60 = vld [vmem:[%s9623_s22 + $0x18e0] sm:$0xff] }
 0x1d4   : > { %6754 = vmatpush1.bf16.msra.mxu0 %v8728_v17  ;;  %7082 = vmatpush1.bf16.msra.mxu1 %v8730_v13  ;;  %v8785_v17 = vcombine.high %v1100_v4, %v1104_v5  ;;  %v8787_v13 = vcombine.high %v1101_v6, %v1105_v7  ;;  %v8825_v4 = vcombine.high %v1140_v58, %v1144_v60 }
 0x1d5   : > { %6755 = vmatprep.subr.bf16.mxu0 %v8737_v14  ;;  %7083 = vmatprep.subr.bf16.mxu1 %v8739_v15  ;;  %v1108_v14 = vld [vmem:[%s9623_s22 + $0x17c0] sm:$0xff] }
 0x1d6   : > { %v1112_v15 = vld [vmem:[%s9623_s22 + $0x17e0] sm:$0xff] }
 0x1d8   : > { %6756 = vmatpush1.bf16.msra.mxu0 %v8736_v21  ;;  %7084 = vmatpush1.bf16.msra.mxu1 %v8738_v22  ;;  %v8786_v21 = vcombine.low %v1101_v6, %v1105_v7  ;;  %v8793_v22 = vcombine.high %v1108_v14, %v1112_v15  ;;  %v1148_v6 = vld [vmem:[%s9623_s22 + $0x1900] sm:$0xff] }
 0x1d9   : > { %6757 = vmatprep.subr.bf16.mxu0 %v8745_v24  ;;  %7085 = vmatprep.subr.bf16.mxu1 %v8747_v26  ;;  %v8795_v24 = vcombine.high %v1109_v59, %v1113_v18  ;;  %v1116_v26 = vld [vmem:[%s9623_s22 + $0x1800] sm:$0xff] }
 0x1da   : > { %v1152_v7 = vld [vmem:[%s9623_s22 + $0x1920] sm:$0xff] }
 0x1dc   : > { %6758 = vmatpush1.bf16.msra.mxu0 %v8744_v33  ;;  %7086 = vmatpush1.bf16.msra.mxu1 %v8746_v63  ;;  %v8792_v33 = vcombine.low %v1108_v14, %v1112_v15  ;;  %v8794_v63 = vcombine.low %v1109_v59, %v1113_v18  ;;  %v8833_v14 = vcombine.high %v1148_v6, %v1152_v7  ;;  %v1156_v59 = vld [vmem:[%s9623_s22 + $0x1940] sm:$0xff] }
 0x1dd   : > { %6759 = vmatprep.subr.bf16.mxu0 %v8753_v35  ;;  %7087 = vmatprep.subr.bf16.mxu1 %v8755_v36  ;;  %v8801_v35 = vcombine.high %v1116_v26, %v1120_v27  ;;  %v8803_v36 = vcombine.high %v1117_v30, %v1121_v32  ;;  %v1160_v18 = vld [vmem:[%s9623_s22 + $0x1960] sm:$0xff] }
 0x1e0   : > { %6760 = vmatpush1.bf16.msra.mxu0 %v8752_v42  ;;  %7088 = vmatpush1.bf16.msra.mxu1 %v8754_v43  ;;  %v1125_v42 = vld [vmem:[%s9623_s22 + $0x1848] sm:$0xff] }
 0x1e1   : > { %6761 = vmatprep.subr.bf16.mxu0 %v8761_v45  ;;  %7089 = vmatprep.subr.bf16.mxu1 %v8763_v46  ;;  %v1129_v43 = vld [vmem:[%s9623_s22 + $0x1868] sm:$0xff]  ;;  %v8800_v45 = vcombine.low %v1116_v26, %v1120_v27  ;;  %v8802_v46 = vcombine.low %v1117_v30, %v1121_v32  ;;  %v8841_v26 = vcombine.high %v1156_v59, %v1160_v18  ;;  %v1164_v30 = vld [vmem:[%s9623_s22 + $0x1980] sm:$0xff] }
 0x1e2   : > { %v8811_v48 = vcombine.high %v1125_v42, %v1129_v43  ;;  %v1168_v32 = vld [vmem:[%s9623_s22 + $0x19a0] sm:$0xff] }
 0x1e4   : > { %6762 = vmatpush1.bf16.msra.mxu0 %v8760_v16  ;;  %7090 = vmatpush1.bf16.msra.mxu1 %v8762_v10  ;;  %v10139_v16 = vpack.c.bf16 %v314_v55, %v314_v55  ;;  %v1137_v10 = vld [vmem:[%s9623_s22 + $0x18a8] sm:$0xff]  ;;  %v1172_v55 = vld [vmem:[%s9623_s22 + $0x19c0] sm:$0xff] }
 0x1e5   : > { %6763 = vmatprep.subr.bf16.mxu0 %v8769_v54  ;;  %7091 = vmatprep.subr.bf16.mxu1 %v8771_v23  ;;  %v8808_v54 = vcombine.low %v1124_v37, %v1128_v38  ;;  %v8810_v23 = vcombine.low %v1125_v42, %v1129_v43  ;;  %v8819_v57 = vcombine.high %v1133_v52, %v1137_v10  ;;  %v1176_v42 = vld [vmem:[%s9623_s22 + $0x19e0] sm:$0xff]  ;;  %v1173_v43 = vld [vmem:[%s9623_s22 + $0x19c8] sm:$0xff] }
 0x1e6   : > { %v8849_v37 = vcombine.high %v1164_v30, %v1168_v32 }
 0x1e8   : > { %6764 = vmatpush1.bf16.msra.mxu0 %v8768_v61  ;;  %7092 = vmatpush1.bf16.msra.mxu1 %v8770_v62  ;;  %v1141_v61 = vld [vmem:[%s9623_s22 + $0x18c8] sm:$0xff] }
 0x1e9   : > { %6765 = vmatprep.subr.bf16.mxu0 %v8777_v1  ;;  %7093 = vmatprep.subr.bf16.mxu1 %v8779_v3  ;;  %v1145_v62 = vld [vmem:[%s9623_s22 + $0x18e8] sm:$0xff]  ;;  %v8816_v1 = vcombine.low %v1132_v49, %v1136_v50  ;;  %v8818_v3 = vcombine.low %v1133_v52, %v1137_v10  ;;  %v1180_v50 = vld [vmem:[%s9623_s22 + $0x1a00] sm:$0xff] }
 0x1ea   : > { %v8827_v5 = vcombine.high %v1141_v61, %v1145_v62  ;;  %v1184_v52 = vld [vmem:[%s9623_s22 + $0x1a20] sm:$0xff]  ;;  %v1181_v10 = vld [vmem:[%s9623_s22 + $0x1a08] sm:$0xff] }
 0x1ec   : > { %6766 = vmatpush1.bf16.msra.mxu0 %v8776_v8  ;;  %7094 = vmatpush1.bf16.msra.mxu1 %v8778_v11  ;;  %v1149_v8 = vld [vmem:[%s9623_s22 + $0x1908] sm:$0xff] }
 0x1ed   : > { %6767 = vmatprep.subr.bf16.mxu0 %v8785_v17  ;;  %7095 = vmatprep.subr.bf16.mxu1 %v8787_v13  ;;  %v1153_v11 = vld [vmem:[%s9623_s22 + $0x1928] sm:$0xff]  ;;  %v8824_v17 = vcombine.low %v1140_v58, %v1144_v60  ;;  %v8826_v13 = vcombine.low %v1141_v61, %v1145_v62  ;;  %v1188_v60 = vld [vmem:[%s9623_s22 + $0x1a40] sm:$0xff] }
 0x1ee   : > { %v8835_v15 = vcombine.high %v1149_v8, %v1153_v11  ;;  %v1192_v61 = vld [vmem:[%s9623_s22 + $0x1a60] sm:$0xff]  ;;  %v1189_v62 = vld [vmem:[%s9623_s22 + $0x1a48] sm:$0xff] }
 0x1f0   : > { %6768 = vmatpush1.bf16.msra.mxu0 %v8784_v20  ;;  %7096 = vmatpush1.bf16.msra.mxu1 %v8786_v21  ;;  %v1157_v20 = vld [vmem:[%s9623_s22 + $0x1948] sm:$0xff] }
 0x1f1   : > { %6769 = vmatprep.subr.bf16.mxu0 %v8793_v22  ;;  %7097 = vmatprep.subr.bf16.mxu1 %v8795_v24  ;;  %v1161_v21 = vld [vmem:[%s9623_s22 + $0x1968] sm:$0xff]  ;;  %v8832_v22 = vcombine.low %v1148_v6, %v1152_v7  ;;  %v8834_v24 = vcombine.low %v1149_v8, %v1153_v11  ;;  %v1196_v7 = vld [vmem:[%s9623_s22 + $0x1a80] sm:$0xff] }
 0x1f2   : > { %v8843_v27 = vcombine.high %v1157_v20, %v1161_v21  ;;  %v1200_v8 = vld [vmem:[%s9623_s22 + $0x1aa0] sm:$0xff]  ;;  %v1197_v11 = vld [vmem:[%s9623_s22 + $0x1a88] sm:$0xff] }
 0x1f4   : > { %6770 = vmatpush1.bf16.msra.mxu0 %v8792_v33  ;;  %7098 = vmatpush1.bf16.msra.mxu1 %v8794_v63  ;;  %v1165_v33 = vld [vmem:[%s9623_s22 + $0x1988] sm:$0xff] }
 0x1f5   : > { %6780 = vmatprep.subr.bf16.mxu0 %v8801_v35  ;;  %7108 = vmatprep.subr.bf16.mxu1 %v8803_v36  ;;  %v1169_v63 = vld [vmem:[%s9623_s22 + $0x19a8] sm:$0xff]  ;;  %v8840_v35 = vcombine.low %v1156_v59, %v1160_v18  ;;  %v8842_v36 = vcombine.low %v1157_v20, %v1161_v21  ;;  %v1204_v18 = vld [vmem:[%s9623_s22 + $0x1ac0] sm:$0xff] }
 0x1f6   : > { %v8851_v38 = vcombine.high %v1165_v33, %v1169_v63  ;;  %v1208_v20 = vld [vmem:[%s9623_s22 + $0x1ae0] sm:$0xff]  ;;  %v1205_v21 = vld [vmem:[%s9623_s22 + $0x1ac8] sm:$0xff] }
 0x1f7   : > { %6772 = vmatmul.mubr.bf16.vlgmr.msra.gmra.mrb[0].mxu0 %v10133_v40  ;;  %7100 = vmatmul.mubr.bf16.vlgmr.msra.gmra.mrb[0].mxu1 %v10133_v40 }
 0x1f8   : > { %6781 = vmatpush1.bf16.msra.mxu0 %v8800_v45  ;;  %7109 = vmatpush1.bf16.msra.mxu1 %v8802_v46  ;;  %v1177_v45 = vld [vmem:[%s9623_s22 + $0x19e8] sm:$0xff]  ;;  %v8848_v46 = vcombine.low %v1164_v30, %v1168_v32  ;;  %v1212_v32 = vld [vmem:[%s9623_s22 + $0x1b00] sm:$0xff] }
 0x1f9   : > { %6782 = vmatprep.subr.bf16.mxu0 %v8809_v47  ;;  %7110 = vmatprep.subr.bf16.mxu1 %v8811_v48  ;;  %v8850_v47 = vcombine.low %v1165_v33, %v1169_v63  ;;  %v8857_v48 = vcombine.high %v1172_v55, %v1176_v42  ;;  %v8859_v49 = vcombine.high %v1173_v43, %v1177_v45  ;;  %v1216_v33 = vld [vmem:[%s9623_s22 + $0x1b20] sm:$0xff]  ;;  %v1213_v63 = vld [vmem:[%s9623_s22 + $0x1b08] sm:$0xff] }
 0x1fa   : > { %6812 = vmatprep.mubr.bf16.mxu0 %v10139_v16  ;;  %7140 = vmatprep.mubr.bf16.mxu1 %v10139_v16 }
 0x1fc   : > { %6783 = vmatpush1.bf16.msra.mxu0 %v8808_v54  ;;  %7111 = vmatpush1.bf16.msra.mxu1 %v8810_v23  ;;  %v1185_v54 = vld [vmem:[%s9623_s22 + $0x1a28] sm:$0xff]  ;;  %v8856_v23 = vcombine.low %v1172_v55, %v1176_v42  ;;  %v1220_v42 = vld [vmem:[%s9623_s22 + $0x1b40] sm:$0xff] }
 0x1fd   : > { %6784 = vmatprep.subr.bf16.mxu0 %v8817_v56  ;;  %7112 = vmatprep.subr.bf16.mxu1 %v8819_v57  ;;  %v8858_v56 = vcombine.low %v1173_v43, %v1177_v45  ;;  %v8865_v57 = vcombine.high %v1180_v50, %v1184_v52  ;;  %v8867_v58 = vcombine.high %v1181_v10, %v1185_v54  ;;  %v1224_v43 = vld [vmem:[%s9623_s22 + $0x1b60] sm:$0xff]  ;;  %v1221_v45 = vld [vmem:[%s9623_s22 + $0x1b48] sm:$0xff] }
 0x200   : > { %6785 = vmatpush1.bf16.msra.mxu0 %v8816_v1  ;;  %7113 = vmatpush1.bf16.msra.mxu1 %v8818_v3  ;;  %v1193_v1 = vld [vmem:[%s9623_s22 + $0x1a68] sm:$0xff]  ;;  %v8864_v3 = vcombine.low %v1180_v50, %v1184_v52  ;;  %v1228_v52 = vld [vmem:[%s9623_s22 + $0x1b80] sm:$0xff] }
 0x201   : > { %6786 = vmatprep.subr.bf16.mxu0 %v8825_v4  ;;  %7114 = vmatprep.subr.bf16.mxu1 %v8827_v5  ;;  %v8866_v4 = vcombine.low %v1181_v10, %v1185_v54  ;;  %v8873_v5 = vcombine.high %v1188_v60, %v1192_v61  ;;  %v8875_v6 = vcombine.high %v1189_v62, %v1193_v1  ;;  %v1232_v10 = vld [vmem:[%s9623_s22 + $0x1ba0] sm:$0xff]  ;;  %v1229_v54 = vld [vmem:[%s9623_s22 + $0x1b88] sm:$0xff] }
 0x204   : > { %6787 = vmatpush1.bf16.msra.mxu0 %v8824_v17  ;;  %7115 = vmatpush1.bf16.msra.mxu1 %v8826_v13  ;;  %v1201_v17 = vld [vmem:[%s9623_s22 + $0x1aa8] sm:$0xff]  ;;  %v8872_v13 = vcombine.low %v1188_v60, %v1192_v61  ;;  %v1236_v61 = vld [vmem:[%s9623_s22 + $0x1bc0] sm:$0xff] }
 0x205   : > { %6788 = vmatprep.subr.bf16.mxu0 %v8833_v14  ;;  %7116 = vmatprep.subr.bf16.mxu1 %v8835_v15  ;;  %v8874_v14 = vcombine.low %v1189_v62, %v1193_v1  ;;  %v8881_v15 = vcombine.high %v1196_v7, %v1200_v8  ;;  %v8883_v59 = vcombine.high %v1197_v11, %v1201_v17  ;;  %v1240_v62 = vld [vmem:[%s9623_s22 + $0x1be0] sm:$0xff] }
 0x206   : > { %v299_v1 = vcombine.high %v10117_v19, %v10117_v19  ;;  %v1245_v19 = vld [vmem:[%s9623_s22 + $0x1c08] sm:$0xff] }
 0x208   : > { %6789 = vmatpush1.bf16.msra.mxu0 %v8832_v22  ;;  %7117 = vmatpush1.bf16.msra.mxu1 %v8834_v24  ;;  %v1209_v22 = vld [vmem:[%s9623_s22 + $0x1ae8] sm:$0xff]  ;;  %v8880_v24 = vcombine.low %v1196_v7, %v1200_v8  ;;  %v8921_v7 = vcombine.high %v1236_v61, %v1240_v62 }
 0x209   : > { %6790 = vmatprep.subr.bf16.mxu0 %v8841_v26  ;;  %7118 = vmatprep.subr.bf16.mxu1 %v8843_v27  ;;  %v8882_v26 = vcombine.low %v1197_v11, %v1201_v17  ;;  %v8889_v27 = vcombine.high %v1204_v18, %v1208_v20  ;;  %v8891_v30 = vcombine.high %v1205_v21, %v1209_v22  ;;  %v1244_v11 = vld [vmem:[%s9623_s22 + $0x1c00] sm:$0xff] }
 0x20a   : > { %v1248_v17 = vld [vmem:[%s9623_s22 + $0x1c20] sm:$0xff] }
 0x20c   : > { %6791 = vmatpush1.bf16.msra.mxu0 %v8840_v35  ;;  %7119 = vmatpush1.bf16.msra.mxu1 %v8842_v36  ;;  %v1217_v35 = vld [vmem:[%s9623_s22 + $0x1b28] sm:$0xff]  ;;  %v8888_v36 = vcombine.low %v1204_v18, %v1208_v20  ;;  %v8929_v18 = vcombine.high %v1244_v11, %v1248_v17 }
 0x20d   : > { %6792 = vmatprep.subr.bf16.mxu0 %v8849_v37  ;;  %7120 = vmatprep.subr.bf16.mxu1 %v8851_v38  ;;  %v8890_v37 = vcombine.low %v1205_v21, %v1209_v22  ;;  %v8897_v38 = vcombine.high %v1212_v32, %v1216_v33  ;;  %v8899_v55 = vcombine.high %v1213_v63, %v1217_v35  ;;  %v1252_v21 = vld [vmem:[%s9623_s22 + $0x1c40] sm:$0xff] }
 0x20e   : > { %v1256_v22 = vld [vmem:[%s9623_s22 + $0x1c60] sm:$0xff] }
 0x210   : > { %6793 = vmatpush1.bf16.msra.mxu0 %v8848_v46  ;;  %7121 = vmatpush1.bf16.msra.mxu1 %v8850_v47  ;;  %v1225_v46 = vld [vmem:[%s9623_s22 + $0x1b68] sm:$0xff]  ;;  %v8896_v47 = vcombine.low %v1212_v32, %v1216_v33  ;;  %v8928_v32 = vcombine.low %v1244_v11, %v1248_v17 }
 0x211   : > { %6794 = vmatprep.subr.bf16.mxu0 %v8857_v48  ;;  %7122 = vmatprep.subr.bf16.mxu1 %v8859_v49  ;;  %v8898_v48 = vcombine.low %v1213_v63, %v1217_v35  ;;  %v8905_v49 = vcombine.high %v1220_v42, %v1224_v43  ;;  %v8907_v50 = vcombine.high %v1221_v45, %v1225_v46 }
 0x212   : > { %v8937_v63 = vcombine.high %v1252_v21, %v1256_v22 }
 0x214   : > { %6795 = vmatpush1.bf16.msra.mxu0 %v8856_v23  ;;  %7123 = vmatpush1.bf16.msra.mxu1 %v8858_v56  ;;  %v1233_v23 = vld [vmem:[%s9623_s22 + $0x1ba8] sm:$0xff]  ;;  %v8904_v56 = vcombine.low %v1220_v42, %v1224_v43  ;;  %v8936_v42 = vcombine.low %v1252_v21, %v1256_v22 }
 0x215   : > { %6796 = vmatprep.subr.bf16.mxu0 %v8865_v57  ;;  %7124 = vmatprep.subr.bf16.mxu1 %v8867_v58  ;;  %v8906_v57 = vcombine.low %v1221_v45, %v1225_v46  ;;  %v8913_v58 = vcombine.high %v1228_v52, %v1232_v10  ;;  %v8915_v60 = vcombine.high %v1229_v54, %v1233_v23 }
 0x218   : > { %6797 = vmatpush1.bf16.msra.mxu0 %v8864_v3  ;;  %7125 = vmatpush1.bf16.msra.mxu1 %v8866_v4  ;;  %v1237_v3 = vld [vmem:[%s9623_s22 + $0x1bc8] sm:$0xff] }
 0x219   : > { %6798 = vmatprep.subr.bf16.mxu0 %v8873_v5  ;;  %7126 = vmatprep.subr.bf16.mxu1 %v8875_v6  ;;  %v1241_v4 = vld [vmem:[%s9623_s22 + $0x1be8] sm:$0xff]  ;;  %v8912_v5 = vcombine.low %v1228_v52, %v1232_v10  ;;  %v8914_v6 = vcombine.low %v1229_v54, %v1233_v23 }
 0x21a   : > { %v8923_v8 = vcombine.high %v1237_v3, %v1241_v4 }
 0x21c   : > { %6799 = vmatpush1.bf16.msra.mxu0 %v8872_v13  ;;  %7127 = vmatpush1.bf16.msra.mxu1 %v8874_v14  ;;  %v10204_v13 = vrot.slane %v299_v1, %v9658_v53  ;;  %v1249_v14 = vld [vmem:[%s9623_s22 + $0x1c28] sm:$0xff] }
 0x21d   : > { %6800 = vmatprep.subr.bf16.mxu0 %v8881_v15  ;;  %7128 = vmatprep.subr.bf16.mxu1 %v8883_v59  ;;  %v8920_v15 = vcombine.low %v1236_v61, %v1240_v62  ;;  %v8922_v59 = vcombine.low %v1237_v3, %v1241_v4  ;;  %v8931_v20 = vcombine.high %v1245_v19, %v1249_v14  ;;  %v1284_v4 = vld [vmem:[%s9623_s22 + $0x1d40] sm:$0xff] }
 0x21e   : > { %v8930_v33 = vcombine.low %v1245_v19, %v1249_v14  ;;  %v1292_v14 = vld [vmem:[%s9623_s22 + $0x1d80] sm:$0xff] }
 0x220   : > { %6801 = vmatpush1.bf16.msra.mxu0 %v8880_v24  ;;  %7129 = vmatpush1.bf16.msra.mxu1 %v8882_v26  ;;  %v315_v24 = vcombine.high %v10204_v13, %v10204_v13  ;;  %v10214_v26 = vpack.c.bf16 %v10123_v28, %v10123_v28  ;;  %v1261_v28 = vld [vmem:[%s9623_s22 + $0x1c88] sm:$0xff] }
 0x221   : > { %6802 = vmatprep.subr.bf16.mxu0 %v8889_v27  ;;  %7130 = vmatprep.subr.bf16.mxu1 %v8891_v30  ;;  %v1253_v27 = vld [vmem:[%s9623_s22 + $0x1c48] sm:$0xff] }
 0x222   : > { %v1257_v30 = vld [vmem:[%s9623_s22 + $0x1c68] sm:$0xff] }
 0x223   : > { %v8939_v35 = vcombine.high %v1253_v27, %v1257_v30  ;;  %v8938_v43 = vcombine.low %v1253_v27, %v1257_v30  ;;  %v1300_v27 = vld [vmem:[%s9623_s22 + $0x1dc0] sm:$0xff] }
 0x224   : > { %6803 = vmatpush1.bf16.msra.mxu0 %v8888_v36  ;;  %7131 = vmatpush1.bf16.msra.mxu1 %v8890_v37  ;;  %v1260_v36 = vld [vmem:[%s9623_s22 + $0x1c80] sm:$0xff] }
 0x225   : > { %6804 = vmatprep.subr.bf16.mxu0 %v8897_v38  ;;  %7132 = vmatprep.subr.bf16.mxu1 %v8899_v55  ;;  %v1264_v37 = vld [vmem:[%s9623_s22 + $0x1ca0] sm:$0xff]  ;;  %v10220_v38 = vpack.c.bf16 %v315_v24, %v315_v24  ;;  %v1265_v55 = vld [vmem:[%s9623_s22 + $0x1ca8] sm:$0xff] }
 0x226   : > { %v8945_v45 = vcombine.high %v1260_v36, %v1264_v37  ;;  %v8947_v46 = vcombine.high %v1261_v28, %v1265_v55  ;;  %v8944_v52 = vcombine.low %v1260_v36, %v1264_v37  ;;  %v8946_v10 = vcombine.low %v1261_v28, %v1265_v55  ;;  %v1304_v30 = vld [vmem:[%s9623_s22 + $0x1de0] sm:$0xff] }
 0x227   : > { %v8985_v36 = vcombine.high %v1300_v27, %v1304_v30  ;;  %v1308_v28 = vld [vmem:[%s9623_s22 + $0x1e00] sm:$0xff] }
 0x228   : > { %6805 = vmatpush1.bf16.msra.mxu0 %v8896_v47  ;;  %7133 = vmatpush1.bf16.msra.mxu1 %v8898_v48  ;;  %v1268_v47 = vld [vmem:[%s9623_s22 + $0x1cc0] sm:$0xff] }
 0x229   : > { %6806 = vmatprep.subr.bf16.mxu0 %v8905_v49  ;;  %7134 = vmatprep.subr.bf16.mxu1 %v8907_v50  ;;  %v1272_v48 = vld [vmem:[%s9623_s22 + $0x1ce0] sm:$0xff]  ;;  %v1269_v49 = vld [vmem:[%s9623_s22 + $0x1cc8] sm:$0xff] }
 0x22a   : > { %v1273_v50 = vld [vmem:[%s9623_s22 + $0x1ce8] sm:$0xff]  ;;  %v8953_v54 = vcombine.high %v1268_v47, %v1272_v48  ;;  %v8952_v61 = vcombine.low %v1268_v47, %v1272_v48  ;;  %v1312_v55 = vld [vmem:[%s9623_s22 + $0x1e20] sm:$0xff] }
 0x22b   : > { %v8955_v23 = vcombine.high %v1269_v49, %v1273_v50  ;;  %v8954_v62 = vcombine.low %v1269_v49, %v1273_v50  ;;  %v8993_v47 = vcombine.high %v1308_v28, %v1312_v55  ;;  %v1316_v49 = vld [vmem:[%s9623_s22 + $0x1e40] sm:$0xff] }
 0x22c   : > { %6807 = vmatpush1.bf16.msra.mxu0 %v8904_v56  ;;  %7135 = vmatpush1.bf16.msra.mxu1 %v8906_v57  ;;  %v1276_v56 = vld [vmem:[%s9623_s22 + $0x1d00] sm:$0xff] }
 0x22d   : > { %6808 = vmatprep.subr.bf16.mxu0 %v8913_v58  ;;  %7136 = vmatprep.subr.bf16.mxu1 %v8915_v60  ;;  %v1280_v57 = vld [vmem:[%s9623_s22 + $0x1d20] sm:$0xff]  ;;  %v1277_v58 = vld [vmem:[%s9623_s22 + $0x1d08] sm:$0xff] }
 0x22e   : > { %v1281_v60 = vld [vmem:[%s9623_s22 + $0x1d28] sm:$0xff]  ;;  %v8961_v1 = vcombine.high %v1276_v56, %v1280_v57  ;;  %v1320_v50 = vld [vmem:[%s9623_s22 + $0x1e60] sm:$0xff] }
 0x22f   : > { %v8963_v3 = vcombine.high %v1277_v58, %v1281_v60  ;;  %v8962_v11 = vcombine.low %v1277_v58, %v1281_v60  ;;  %v1324_v58 = vld [vmem:[%s9623_s22 + $0x1e80] sm:$0xff] }
 0x230   : > { %6809 = vmatpush1.bf16.msra.mxu0 %v8912_v5  ;;  %7137 = vmatpush1.bf16.msra.mxu1 %v8914_v6  ;;  %v1288_v5 = vld [vmem:[%s9623_s22 + $0x1d60] sm:$0xff]  ;;  %v1285_v6 = vld [vmem:[%s9623_s22 + $0x1d48] sm:$0xff] }
 0x231   : > { %6810 = vmatprep.subr.bf16.mxu0 %v8921_v7  ;;  %7138 = vmatprep.subr.bf16.mxu1 %v8923_v8  ;;  %v1289_v7 = vld [vmem:[%s9623_s22 + $0x1d68] sm:$0xff]  ;;  %v8960_v8 = vcombine.low %v1276_v56, %v1280_v57  ;;  %v8969_v17 = vcombine.high %v1284_v4, %v1288_v5  ;;  %v9001_v56 = vcombine.high %v1316_v49, %v1320_v50  ;;  %v1328_v60 = vld [vmem:[%s9623_s22 + $0x1ea0] sm:$0xff] }
 0x232   : > { %v8971_v19 = vcombine.high %v1285_v6, %v1289_v7  ;;  %v8970_v21 = vcombine.low %v1285_v6, %v1289_v7  ;;  %v1332_v6 = vld [vmem:[%s9623_s22 + $0x1ec0] sm:$0xff] }
 0x233   : > { %v1336_v7 = vld [vmem:[%s9623_s22 + $0x1ee0] sm:$0xff] }
 0x234   : > { %6811 = vmatpush1.bf16.msra.mxu0 %v8920_v15  ;;  %7139 = vmatpush1.bf16.msra.mxu1 %v8922_v59  ;;  %v1296_v15 = vld [vmem:[%s9623_s22 + $0x1da0] sm:$0xff]  ;;  %v1293_v59 = vld [vmem:[%s9623_s22 + $0x1d88] sm:$0xff] }
 0x235   : > { %6821 = vmatprep.subr.bf16.mxu0 %v8929_v18  ;;  %7149 = vmatprep.subr.bf16.mxu1 %v8931_v20  ;;  %v1297_v18 = vld [vmem:[%s9623_s22 + $0x1da8] sm:$0xff]  ;;  %v8968_v20 = vcombine.low %v1284_v4, %v1288_v5  ;;  %v8977_v22 = vcombine.high %v1292_v14, %v1296_v15  ;;  %v9009_v4 = vcombine.high %v1324_v58, %v1328_v60 }
 0x236   : > { %v8979_v24 = vcombine.high %v1293_v59, %v1297_v18 }
 0x237   : > { %6813 = vmatmul.mubr.bf16.vlgmr.msra.gmra.mrb[0].mxu0 %v10214_v26  ;;  %7141 = vmatmul.mubr.bf16.vlgmr.msra.gmra.mrb[0].mxu1 %v10214_v26 }
 0x238   : > { %6822 = vmatpush1.bf16.msra.mxu0 %v8928_v32  ;;  %7150 = vmatpush1.bf16.msra.mxu1 %v8930_v33  ;;  %v1301_v32 = vld [vmem:[%s9623_s22 + $0x1dc8] sm:$0xff] }
 0x239   : > { %6823 = vmatprep.subr.bf16.mxu0 %v8937_v63  ;;  %7151 = vmatprep.subr.bf16.mxu1 %v8939_v35  ;;  %v1305_v33 = vld [vmem:[%s9623_s22 + $0x1de8] sm:$0xff]  ;;  %v8976_v63 = vcombine.low %v1292_v14, %v1296_v15  ;;  %v8978_v35 = vcombine.low %v1293_v59, %v1297_v18  ;;  %v9017_v14 = vcombine.high %v1332_v6, %v1336_v7  ;;  %v1340_v59 = vld [vmem:[%s9623_s22 + $0x1f00] sm:$0xff] }
 0x23a   : > { %6853 = vmatprep.mubr.bf16.mxu0 %v10220_v38  ;;  %7181 = vmatprep.mubr.bf16.mxu1 %v10220_v38  ;;  %v8987_v37 = vcombine.high %v1301_v32, %v1305_v33  ;;  %v1344_v18 = vld [vmem:[%s9623_s22 + $0x1f20] sm:$0xff] }
 0x23c   : > { %6824 = vmatpush1.bf16.msra.mxu0 %v8936_v42  ;;  %7152 = vmatpush1.bf16.msra.mxu1 %v8938_v43  ;;  %v1309_v42 = vld [vmem:[%s9623_s22 + $0x1e08] sm:$0xff] }
 0x23d   : > { %6825 = vmatprep.subr.bf16.mxu0 %v8945_v45  ;;  %7153 = vmatprep.subr.bf16.mxu1 %v8947_v46  ;;  %v1313_v43 = vld [vmem:[%s9623_s22 + $0x1e28] sm:$0xff]  ;;  %v8984_v45 = vcombine.low %v1300_v27, %v1304_v30  ;;  %v8986_v46 = vcombine.low %v1301_v32, %v1305_v33  ;;  %v9025_v27 = vcombine.high %v1340_v59, %v1344_v18  ;;  %v1348_v32 = vld [vmem:[%s9623_s22 + $0x1f40] sm:$0xff] }
 0x23e   : > { %v8995_v48 = vcombine.high %v1309_v42, %v1313_v43  ;;  %v1352_v33 = vld [vmem:[%s9623_s22 + $0x1f60] sm:$0xff] }
 0x240   : > { %6826 = vmatpush1.bf16.msra.mxu0 %v8944_v52  ;;  %7154 = vmatpush1.bf16.msra.mxu1 %v8946_v10  ;;  %v1317_v52 = vld [vmem:[%s9623_s22 + $0x1e48] sm:$0xff] }
 0x241   : > { %6827 = vmatprep.subr.bf16.mxu0 %v8953_v54  ;;  %7155 = vmatprep.subr.bf16.mxu1 %v8955_v23  ;;  %v1321_v10 = vld [vmem:[%s9623_s22 + $0x1e68] sm:$0xff]  ;;  %v8992_v54 = vcombine.low %v1308_v28, %v1312_v55  ;;  %v8994_v23 = vcombine.low %v1309_v42, %v1313_v43  ;;  %v9033_v28 = vcombine.high %v1348_v32, %v1352_v33  ;;  %v1356_v42 = vld [vmem:[%s9623_s22 + $0x1f80] sm:$0xff] }
 0x242   : > { %v9003_v57 = vcombine.high %v1317_v52, %v1321_v10  ;;  %v1360_v43 = vld [vmem:[%s9623_s22 + $0x1fa0] sm:$0xff] }
 0x244   : > { %6828 = vmatpush1.bf16.msra.mxu0 %v8952_v61  ;;  %7156 = vmatpush1.bf16.msra.mxu1 %v8954_v62  ;;  %v1325_v61 = vld [vmem:[%s9623_s22 + $0x1e88] sm:$0xff] }
 0x245   : > { %6829 = vmatprep.subr.bf16.mxu0 %v8961_v1  ;;  %7157 = vmatprep.subr.bf16.mxu1 %v8963_v3  ;;  %v1329_v62 = vld [vmem:[%s9623_s22 + $0x1ea8] sm:$0xff]  ;;  %v9000_v1 = vcombine.low %v1316_v49, %v1320_v50  ;;  %v9002_v3 = vcombine.low %v1317_v52, %v1321_v10  ;;  %v9041_v49 = vcombine.high %v1356_v42, %v1360_v43  ;;  %v1364_v52 = vld [vmem:[%s9623_s22 + $0x1fc0] sm:$0xff] }
 0x246   : > { %v9011_v5 = vcombine.high %v1325_v61, %v1329_v62  ;;  %v1368_v10 = vld [vmem:[%s9623_s22 + $0x1fe0] sm:$0xff] }
 0x248   : > { %6830 = vmatpush1.bf16.msra.mxu0 %v8960_v8  ;;  %7158 = vmatpush1.bf16.msra.mxu1 %v8962_v11  ;;  %v1333_v8 = vld [vmem:[%s9623_s22 + $0x1ec8] sm:$0xff] }
 0x249   : > { %6831 = vmatprep.subr.bf16.mxu0 %v8969_v17  ;;  %7159 = vmatprep.subr.bf16.mxu1 %v8971_v19  ;;  %v1337_v11 = vld [vmem:[%s9623_s22 + $0x1ee8] sm:$0xff]  ;;  %v9008_v17 = vcombine.low %v1324_v58, %v1328_v60  ;;  %v9010_v19 = vcombine.low %v1325_v61, %v1329_v62  ;;  %v9049_v58 = vcombine.high %v1364_v52, %v1368_v10  ;;  %v350_v61 = vld [vmem:[%s9623_s22 + $0x10] sm:$0xff] }
 0x24a   : > { %v9019_v15 = vcombine.high %v1333_v8, %v1337_v11  ;;  %v354_v62 = vld [vmem:[%s9623_s22 + $0x30] sm:$0xff] }
 0x24c   : > { %6832 = vmatpush1.bf16.msra.mxu0 %v8968_v20  ;;  %7160 = vmatpush1.bf16.msra.mxu1 %v8970_v21  ;;  %v1341_v20 = vld [vmem:[%s9623_s22 + $0x1f08] sm:$0xff] }
 0x24d   : > { %6833 = vmatprep.subr.bf16.mxu0 %v8977_v22  ;;  %7161 = vmatprep.subr.bf16.mxu1 %v8979_v24  ;;  %v1345_v21 = vld [vmem:[%s9623_s22 + $0x1f28] sm:$0xff]  ;;  %v9016_v22 = vcombine.low %v1332_v6, %v1336_v7  ;;  %v9018_v24 = vcombine.low %v1333_v8, %v1337_v11  ;;  %v8037_v6 = vcombine.high %v350_v61, %v354_v62  ;;  %v358_v8 = vld [vmem:[%s9623_s22 + $0x50] sm:$0xff] }
 0x24e   : > { %v9027_v30 = vcombine.high %v1341_v20, %v1345_v21  ;;  %v362_v11 = vld [vmem:[%s9623_s22 + $0x70] sm:$0xff] }
 0x250   : > { %6834 = vmatpush1.bf16.msra.mxu0 %v8976_v63  ;;  %7162 = vmatpush1.bf16.msra.mxu1 %v8978_v35  ;;  %v1349_v63 = vld [vmem:[%s9623_s22 + $0x1f48] sm:$0xff] }
 0x251   : > { %6835 = vmatprep.subr.bf16.mxu0 %v8985_v36  ;;  %7163 = vmatprep.subr.bf16.mxu1 %v8987_v37  ;;  %v1353_v35 = vld [vmem:[%s9623_s22 + $0x1f68] sm:$0xff]  ;;  %v9024_v36 = vcombine.low %v1340_v59, %v1344_v18  ;;  %v9026_v37 = vcombine.low %v1341_v20, %v1345_v21  ;;  %v8045_v18 = vcombine.high %v358_v8, %v362_v11  ;;  %v366_v21 = vld [vmem:[%s9623_s22 + $0x90] sm:$0xff] }
 0x252   : > { %v9035_v55 = vcombine.high %v1349_v63, %v1353_v35 }
 0x254   : > { %6836 = vmatpush1.bf16.msra.mxu0 %v8984_v45  ;;  %7164 = vmatpush1.bf16.msra.mxu1 %v8986_v46  ;;  %v1357_v45 = vld [vmem:[%s9623_s22 + $0x1f88] sm:$0xff] }
 0x255   : > { %6837 = vmatprep.subr.bf16.mxu0 %v8993_v47  ;;  %7165 = vmatprep.subr.bf16.mxu1 %v8995_v48  ;;  %v1361_v46 = vld [vmem:[%s9623_s22 + $0x1fa8] sm:$0xff]  ;;  %v9032_v47 = vcombine.low %v1348_v32, %v1352_v33  ;;  %v9034_v48 = vcombine.low %v1349_v63, %v1353_v35  ;;  %v374_v63 = vld [vmem:[%s9623_s22 + $0xd0] sm:$0xff] }
 0x256   : > { %v9043_v50 = vcombine.high %v1357_v45, %v1361_v46  ;;  %v378_v35 = vld [vmem:[%s9623_s22 + $0xf0] sm:$0xff] }
 0x258   : > { %6838 = vmatpush1.bf16.msra.mxu0 %v8992_v54  ;;  %7166 = vmatpush1.bf16.msra.mxu1 %v8994_v23  ;;  %v1365_v54 = vld [vmem:[%s9623_s22 + $0x1fc8] sm:$0xff] }
 0x259   : > { %6839 = vmatprep.subr.bf16.mxu0 %v9001_v56  ;;  %7167 = vmatprep.subr.bf16.mxu1 %v9003_v57  ;;  %v1369_v23 = vld [vmem:[%s9623_s22 + $0x1fe8] sm:$0xff]  ;;  %v9040_v56 = vcombine.low %v1356_v42, %v1360_v43  ;;  %v9042_v57 = vcombine.low %v1357_v45, %v1361_v46  ;;  %v8061_v42 = vcombine.high %v374_v63, %v378_v35  ;;  %v382_v45 = vld [vmem:[%s9623_s22 + $0x110] sm:$0xff] }
 0x25a   : > { %v9051_v60 = vcombine.high %v1365_v54, %v1369_v23  ;;  %v386_v46 = vld [vmem:[%s9623_s22 + $0x130] sm:$0xff] }
 0x25c   : > { %6840 = vmatpush1.bf16.msra.mxu0 %v9000_v1  ;;  %7168 = vmatpush1.bf16.msra.mxu1 %v9002_v3  ;;  %v351_v1 = vld [vmem:[%s9623_s22 + $0x18] sm:$0xff] }
 0x25d   : > { %6841 = vmatprep.subr.bf16.mxu0 %v9009_v4  ;;  %7169 = vmatprep.subr.bf16.mxu1 %v9011_v5  ;;  %v355_v3 = vld [vmem:[%s9623_s22 + $0x38] sm:$0xff]  ;;  %v9048_v4 = vcombine.low %v1364_v52, %v1368_v10  ;;  %v9050_v5 = vcombine.low %v1365_v54, %v1369_v23  ;;  %v390_v10 = vld [vmem:[%s9623_s22 + $0x150] sm:$0xff] }
 0x25e   : > { %v8039_v7 = vcombine.high %v351_v1, %v355_v3  ;;  %v8038_v59 = vcombine.low %v351_v1, %v355_v3  ;;  %v394_v54 = vld [vmem:[%s9623_s22 + $0x170] sm:$0xff]  ;;  %v391_v23 = vld [vmem:[%s9623_s22 + $0x158] sm:$0xff] }
 0x25f   : > { %v402_v1 = vld [vmem:[%s9623_s22 + $0x1b0] sm:$0xff]  ;;  %v399_v3 = vld [vmem:[%s9623_s22 + $0x198] sm:$0xff] }
 0x260   : > { %6842 = vmatpush1.bf16.msra.mxu0 %v9008_v17  ;;  %7170 = vmatpush1.bf16.msra.mxu1 %v9010_v19  ;;  %v10288_v17 = vpack.c.bf16 %v10204_v13, %v10204_v13  ;;  %v359_v19 = vld [vmem:[%s9623_s22 + $0x58] sm:$0xff] }
 0x261   : > { %6843 = vmatprep.subr.bf16.mxu0 %v9017_v14  ;;  %7171 = vmatprep.subr.bf16.mxu1 %v9019_v15  ;;  %v363_v14 = vld [vmem:[%s9623_s22 + $0x78] sm:$0xff]  ;;  %v8036_v15 = vcombine.low %v350_v61, %v354_v62  ;;  %v398_v62 = vld [vmem:[%s9623_s22 + $0x190] sm:$0xff] }
 0x262   : > { %v8047_v20 = vcombine.high %v359_v19, %v363_v14  ;;  %v367_v13 = vld [vmem:[%s9623_s22 + $0x98] sm:$0xff] }
 0x264   : > { %6844 = vmatpush1.bf16.msra.mxu0 %v9016_v22  ;;  %7172 = vmatpush1.bf16.msra.mxu1 %v9018_v24  ;;  %v370_v22 = vld [vmem:[%s9623_s22 + $0xb0] sm:$0xff]  ;;  %v371_v24 = vld [vmem:[%s9623_s22 + $0xb8] sm:$0xff] }
 0x265   : > { %6845 = vmatprep.subr.bf16.mxu0 %v9025_v27  ;;  %7173 = vmatprep.subr.bf16.mxu1 %v9027_v30  ;;  %v8044_v27 = vcombine.low %v358_v8, %v362_v11  ;;  %v8046_v30 = vcombine.low %v359_v19, %v363_v14  ;;  %v8053_v32 = vcombine.high %v366_v21, %v370_v22  ;;  %v406_v11 = vld [vmem:[%s9623_s22 + $0x1d0] sm:$0xff]  ;;  %v407_v14 = vld [vmem:[%s9623_s22 + $0x1d8] sm:$0xff] }
 0x266   : > { %v8055_v33 = vcombine.high %v367_v13, %v371_v24  ;;  %v410_v19 = vld [vmem:[%s9623_s22 + $0x1f0] sm:$0xff] }
 0x268   : > { %6846 = vmatpush1.bf16.msra.mxu0 %v9024_v36  ;;  %7174 = vmatpush1.bf16.msra.mxu1 %v9026_v37  ;;  %v375_v36 = vld [vmem:[%s9623_s22 + $0xd8] sm:$0xff] }
 0x269   : > { %6847 = vmatprep.subr.bf16.mxu0 %v9033_v28  ;;  %7175 = vmatprep.subr.bf16.mxu1 %v9035_v55  ;;  %v379_v37 = vld [vmem:[%s9623_s22 + $0xf8] sm:$0xff]  ;;  %v8052_v28 = vcombine.low %v366_v21, %v370_v22  ;;  %v8054_v55 = vcombine.low %v367_v13, %v371_v24  ;;  %v414_v22 = vld [vmem:[%s9623_s22 + $0x210] sm:$0xff] }
 0x26a   : > { %v8063_v43 = vcombine.high %v375_v36, %v379_v37  ;;  %v418_v13 = vld [vmem:[%s9623_s22 + $0x230] sm:$0xff]  ;;  %v415_v24 = vld [vmem:[%s9623_s22 + $0x218] sm:$0xff] }
 0x26c   : > { %6848 = vmatpush1.bf16.msra.mxu0 %v9032_v47  ;;  %7176 = vmatpush1.bf16.msra.mxu1 %v9034_v48  ;;  %v383_v47 = vld [vmem:[%s9623_s22 + $0x118] sm:$0xff] }
 0x26d   : > { %6849 = vmatprep.subr.bf16.mxu0 %v9041_v49  ;;  %7177 = vmatprep.subr.bf16.mxu1 %v9043_v50  ;;  %v387_v48 = vld [vmem:[%s9623_s22 + $0x138] sm:$0xff]  ;;  %v8060_v49 = vcombine.low %v374_v63, %v378_v35  ;;  %v8069_v50 = vcombine.high %v382_v45, %v386_v46  ;;  %v422_v35 = vld [vmem:[%s9623_s22 + $0x250] sm:$0xff] }
 0x26e   : > { %v8071_v52 = vcombine.high %v383_v47, %v387_v48 }
 0x270   : > { %6850 = vmatpush1.bf16.msra.mxu0 %v9040_v56  ;;  %7178 = vmatpush1.bf16.msra.mxu1 %v9042_v57  ;;  %v395_v56 = vld [vmem:[%s9623_s22 + $0x178] sm:$0xff]  ;;  %v8068_v57 = vcombine.low %v382_v45, %v386_v46  ;;  %v430_v46 = vld [vmem:[%s9623_s22 + $0x290] sm:$0xff] }
 0x271   : > { %6851 = vmatprep.subr.bf16.mxu0 %v9049_v58  ;;  %7179 = vmatprep.subr.bf16.mxu1 %v9051_v60  ;;  %v8070_v58 = vcombine.low %v383_v47, %v387_v48  ;;  %v8077_v60 = vcombine.high %v390_v10, %v394_v54  ;;  %v8079_v61 = vcombine.high %v391_v23, %v395_v56  ;;  %v434_v47 = vld [vmem:[%s9623_s22 + $0x2b0] sm:$0xff]  ;;  %v431_v48 = vld [vmem:[%s9623_s22 + $0x298] sm:$0xff] }
 0x274   : > { %6852 = vmatpush1.bf16.msra.mxu0 %v9048_v4  ;;  %7180 = vmatpush1.bf16.msra.mxu1 %v9050_v5  ;;  %v403_v4 = vld [vmem:[%s9623_s22 + $0x1b8] sm:$0xff]  ;;  %v8076_v5 = vcombine.low %v390_v10, %v394_v54  ;;  %v438_v54 = vld [vmem:[%s9623_s22 + $0x2d0] sm:$0xff] }
 0x275   : > { %7190 = vmatprep.subr.bf16.mxu0 %v8037_v6  ;;  %7518 = vmatprep.subr.bf16.mxu1 %v8039_v7  ;;  %v8078_v6 = vcombine.low %v391_v23, %v395_v56  ;;  %v8085_v7 = vcombine.high %v398_v62, %v402_v1  ;;  %v8087_v8 = vcombine.high %v399_v3, %v403_v4  ;;  %v442_v23 = vld [vmem:[%s9623_s22 + $0x2f0] sm:$0xff]  ;;  %v439_v56 = vld [vmem:[%s9623_s22 + $0x2d8] sm:$0xff] }
 0x277   : > { %6854 = vmatmul.mubr.bf16.vlgmr.msra.gmra.mrb[0].mxu0 %v10288_v17  ;;  %7182 = vmatmul.mubr.bf16.vlgmr.msra.gmra.mrb[0].mxu1 %v10288_v17 }
 0x278   : > { %7191 = vmatpush1.bf16.msra.mxu0 %v8036_v15  ;;  %7519 = vmatpush1.bf16.msra.mxu1 %v8038_v59  ;;  %v411_v15 = vld [vmem:[%s9623_s22 + $0x1f8] sm:$0xff]  ;;  %v8084_v59 = vcombine.low %v398_v62, %v402_v1  ;;  %v446_v1 = vld [vmem:[%s9623_s22 + $0x310] sm:$0xff] }
 0x279   : > { %7192 = vmatprep.subr.bf16.mxu0 %v8045_v18  ;;  %7520 = vmatprep.subr.bf16.mxu1 %v8047_v20  ;;  %v8086_v18 = vcombine.low %v399_v3, %v403_v4  ;;  %v8093_v20 = vcombine.high %v406_v11, %v410_v19  ;;  %v8095_v21 = vcombine.high %v407_v14, %v411_v15  ;;  %v450_v3 = vld [vmem:[%s9623_s22 + $0x330] sm:$0xff]  ;;  %v447_v4 = vld [vmem:[%s9623_s22 + $0x318] sm:$0xff] }
 0x27a   : > { %7222 = vmatprep.mubr.bf16.mxu0 %v9676_v9  ;;  %7550 = vmatprep.mubr.bf16.mxu1 %v9676_v9  ;;  %v8062_v9 = vcombine.low %v375_v36, %v379_v37  ;;  %v426_v36 = vld [vmem:[%s9623_s22 + $0x270] sm:$0xff]  ;;  %v423_v37 = vld [vmem:[%s9623_s22 + $0x258] sm:$0xff] }
 0x27c   : > { %7193 = vmatpush1.bf16.msra.mxu0 %v8044_v27  ;;  %7521 = vmatpush1.bf16.msra.mxu1 %v8046_v30  ;;  %v419_v27 = vld [vmem:[%s9623_s22 + $0x238] sm:$0xff]  ;;  %v8092_v30 = vcombine.low %v406_v11, %v410_v19  ;;  %v454_v19 = vld [vmem:[%s9623_s22 + $0x350] sm:$0xff] }
 0x27d   : > { %7194 = vmatprep.subr.bf16.mxu0 %v8053_v32  ;;  %7522 = vmatprep.subr.bf16.mxu1 %v8055_v33  ;;  %v8094_v32 = vcombine.low %v407_v14, %v411_v15  ;;  %v8101_v33 = vcombine.high %v414_v22, %v418_v13  ;;  %v8103_v63 = vcombine.high %v415_v24, %v419_v27  ;;  %v458_v14 = vld [vmem:[%s9623_s22 + $0x370] sm:$0xff]  ;;  %v455_v15 = vld [vmem:[%s9623_s22 + $0x358] sm:$0xff] }
 0x280   : > { %7195 = vmatpush1.bf16.msra.mxu0 %v8052_v28  ;;  %7523 = vmatpush1.bf16.msra.mxu1 %v8054_v55  ;;  %v427_v28 = vld [vmem:[%s9623_s22 + $0x278] sm:$0xff]  ;;  %v8100_v55 = vcombine.low %v414_v22, %v418_v13  ;;  %v462_v13 = vld [vmem:[%s9623_s22 + $0x390] sm:$0xff] }
 0x281   : > { %7196 = vmatprep.subr.bf16.mxu0 %v8061_v42  ;;  %7524 = vmatprep.subr.bf16.mxu1 %v8063_v43  ;;  %v8102_v42 = vcombine.low %v415_v24, %v419_v27  ;;  %v8109_v43 = vcombine.high %v422_v35, %v426_v36  ;;  %v8111_v45 = vcombine.high %v423_v37, %v427_v28  ;;  %v466_v24 = vld [vmem:[%s9623_s22 + $0x3b0] sm:$0xff]  ;;  %v463_v27 = vld [vmem:[%s9623_s22 + $0x398] sm:$0xff] }
 0x284   : > { %7197 = vmatpush1.bf16.msra.mxu0 %v8060_v49  ;;  %7525 = vmatpush1.bf16.msra.mxu1 %v8062_v9  ;;  %v435_v49 = vld [vmem:[%s9623_s22 + $0x2b8] sm:$0xff]  ;;  %v8108_v9 = vcombine.low %v422_v35, %v426_v36  ;;  %v470_v36 = vld [vmem:[%s9623_s22 + $0x3d0] sm:$0xff] }
 0x285   : > { %7198 = vmatprep.subr.bf16.mxu0 %v8069_v50  ;;  %7526 = vmatprep.subr.bf16.mxu1 %v8071_v52  ;;  %v8110_v50 = vcombine.low %v423_v37, %v427_v28  ;;  %v8117_v52 = vcombine.high %v430_v46, %v434_v47  ;;  %v8119_v10 = vcombine.high %v431_v48, %v435_v49  ;;  %v474_v37 = vld [vmem:[%s9623_s22 + $0x3f0] sm:$0xff]  ;;  %v471_v28 = vld [vmem:[%s9623_s22 + $0x3d8] sm:$0xff] }
 0x288   : > { %7199 = vmatpush1.bf16.msra.mxu0 %v8068_v57  ;;  %7527 = vmatpush1.bf16.msra.mxu1 %v8070_v58  ;;  %v443_v57 = vld [vmem:[%s9623_s22 + $0x2f8] sm:$0xff]  ;;  %v8116_v58 = vcombine.low %v430_v46, %v434_v47  ;;  %v478_v47 = vld [vmem:[%s9623_s22 + $0x410] sm:$0xff] }
 0x289   : > { %7200 = vmatprep.subr.bf16.mxu0 %v8077_v60  ;;  %7528 = vmatprep.subr.bf16.mxu1 %v8079_v61  ;;  %v8118_v60 = vcombine.low %v431_v48, %v435_v49  ;;  %v8125_v61 = vcombine.high %v438_v54, %v442_v23  ;;  %v8127_v62 = vcombine.high %v439_v56, %v443_v57  ;;  %v482_v48 = vld [vmem:[%s9623_s22 + $0x430] sm:$0xff]  ;;  %v479_v49 = vld [vmem:[%s9623_s22 + $0x418] sm:$0xff] }
 0x28c   : > { %7201 = vmatpush1.bf16.msra.mxu0 %v8076_v5  ;;  %7529 = vmatpush1.bf16.msra.mxu1 %v8078_v6  ;;  %v451_v5 = vld [vmem:[%s9623_s22 + $0x338] sm:$0xff]  ;;  %v8124_v6 = vcombine.low %v438_v54, %v442_v23  ;;  %v486_v23 = vld [vmem:[%s9623_s22 + $0x450] sm:$0xff] }
 0x28d   : > { %7202 = vmatprep.subr.bf16.mxu0 %v8085_v7  ;;  %7530 = vmatprep.subr.bf16.mxu1 %v8087_v8  ;;  %v8126_v7 = vcombine.low %v439_v56, %v443_v57  ;;  %v8133_v8 = vcombine.high %v446_v1, %v450_v3  ;;  %v8135_v11 = vcombine.high %v447_v4, %v451_v5  ;;  %v490_v56 = vld [vmem:[%s9623_s22 + $0x470] sm:$0xff]  ;;  %v487_v57 = vld [vmem:[%s9623_s22 + $0x458] sm:$0xff] }
 0x290   : > { %7203 = vmatpush1.bf16.msra.mxu0 %v8084_v59  ;;  %7531 = vmatpush1.bf16.msra.mxu1 %v8086_v18  ;;  %v459_v59 = vld [vmem:[%s9623_s22 + $0x378] sm:$0xff]  ;;  %v8132_v18 = vcombine.low %v446_v1, %v450_v3  ;;  %v494_v3 = vld [vmem:[%s9623_s22 + $0x490] sm:$0xff] }
 0x291   : > { %7204 = vmatprep.subr.bf16.mxu0 %v8093_v20  ;;  %7532 = vmatprep.subr.bf16.mxu1 %v8095_v21  ;;  %v8134_v20 = vcombine.low %v447_v4, %v451_v5  ;;  %v8141_v21 = vcombine.high %v454_v19, %v458_v14  ;;  %v8143_v22 = vcombine.high %v455_v15, %v459_v59  ;;  %v498_v4 = vld [vmem:[%s9623_s22 + $0x4b0] sm:$0xff]  ;;  %v495_v5 = vld [vmem:[%s9623_s22 + $0x498] sm:$0xff] }
 0x294   : > { %7205 = vmatpush1.bf16.msra.mxu0 %v8092_v30  ;;  %7533 = vmatpush1.bf16.msra.mxu1 %v8094_v32  ;;  %v467_v30 = vld [vmem:[%s9623_s22 + $0x3b8] sm:$0xff]  ;;  %v8140_v32 = vcombine.low %v454_v19, %v458_v14  ;;  %v502_v14 = vld [vmem:[%s9623_s22 + $0x4d0] sm:$0xff] }
 0x295   : > { %7206 = vmatprep.subr.bf16.mxu0 %v8101_v33  ;;  %7534 = vmatprep.subr.bf16.mxu1 %v8103_v63  ;;  %v8142_v33 = vcombine.low %v455_v15, %v459_v59  ;;  %v8149_v63 = vcombine.high %v462_v13, %v466_v24  ;;  %v8151_v35 = vcombine.high %v463_v27, %v467_v30  ;;  %v506_v15 = vld [vmem:[%s9623_s22 + $0x4f0] sm:$0xff]  ;;  %v503_v59 = vld [vmem:[%s9623_s22 + $0x4d8] sm:$0xff] }
 0x298   : > { %7207 = vmatpush1.bf16.msra.mxu0 %v8100_v55  ;;  %7535 = vmatpush1.bf16.msra.mxu1 %v8102_v42  ;;  %v475_v55 = vld [vmem:[%s9623_s22 + $0x3f8] sm:$0xff]  ;;  %v8148_v42 = vcombine.low %v462_v13, %v466_v24  ;;  %v510_v13 = vld [vmem:[%s9623_s22 + $0x510] sm:$0xff] }
 0x299   : > { %7208 = vmatprep.subr.bf16.mxu0 %v8109_v43  ;;  %7536 = vmatprep.subr.bf16.mxu1 %v8111_v45  ;;  %v8150_v43 = vcombine.low %v463_v27, %v467_v30  ;;  %v8157_v45 = vcombine.high %v470_v36, %v474_v37  ;;  %v8159_v46 = vcombine.high %v471_v28, %v475_v55  ;;  %v514_v24 = vld [vmem:[%s9623_s22 + $0x530] sm:$0xff]  ;;  %v511_v27 = vld [vmem:[%s9623_s22 + $0x518] sm:$0xff] }
 0x29a   : > { %v515_v30 = vld [vmem:[%s9623_s22 + $0x538] sm:$0xff] }
 0x29c   : > { %7209 = vmatpush1.bf16.msra.mxu0 %v8108_v9  ;;  %7537 = vmatpush1.bf16.msra.mxu1 %v8110_v50  ;;  %v483_v9 = vld [vmem:[%s9623_s22 + $0x438] sm:$0xff]  ;;  %v8156_v50 = vcombine.low %v470_v36, %v474_v37  ;;  %v522_v36 = vld [vmem:[%s9623_s22 + $0x570] sm:$0xff] }
 0x29d   : > { %7210 = vmatprep.subr.bf16.mxu0 %v8117_v52  ;;  %7538 = vmatprep.subr.bf16.mxu1 %v8119_v10  ;;  %v8158_v52 = vcombine.low %v471_v28, %v475_v55  ;;  %v8165_v10 = vcombine.high %v478_v47, %v482_v48  ;;  %v8167_v54 = vcombine.high %v479_v49, %v483_v9  ;;  %v519_v37 = vld [vmem:[%s9623_s22 + $0x558] sm:$0xff] }
 0x29e   : > { %v523_v28 = vld [vmem:[%s9623_s22 + $0x578] sm:$0xff]  ;;  %v8196_v55 = vcombine.low %v510_v13, %v514_v24 }
 0x2a0   : > { %7211 = vmatpush1.bf16.msra.mxu0 %v8116_v58  ;;  %7539 = vmatpush1.bf16.msra.mxu1 %v8118_v60  ;;  %v491_v58 = vld [vmem:[%s9623_s22 + $0x478] sm:$0xff]  ;;  %v8164_v60 = vcombine.low %v478_v47, %v482_v48  ;;  %v530_v47 = vld [vmem:[%s9623_s22 + $0x5b0] sm:$0xff] }
 0x2a1   : > { %7212 = vmatprep.subr.bf16.mxu0 %v8125_v61  ;;  %7540 = vmatprep.subr.bf16.mxu1 %v8127_v62  ;;  %v8166_v61 = vcombine.low %v479_v49, %v483_v9  ;;  %v8173_v62 = vcombine.high %v486_v23, %v490_v56  ;;  %v8175_v1 = vcombine.high %v487_v57, %v491_v58  ;;  %v527_v48 = vld [vmem:[%s9623_s22 + $0x598] sm:$0xff] }
 0x2a2   : > { %v531_v49 = vld [vmem:[%s9623_s22 + $0x5b8] sm:$0xff] }
 0x2a4   : > { %7213 = vmatpush1.bf16.msra.mxu0 %v8124_v6  ;;  %7541 = vmatpush1.bf16.msra.mxu1 %v8126_v7  ;;  %v499_v6 = vld [vmem:[%s9623_s22 + $0x4b8] sm:$0xff]  ;;  %v8172_v7 = vcombine.low %v486_v23, %v490_v56  ;;  %v538_v23 = vld [vmem:[%s9623_s22 + $0x5f0] sm:$0xff] }
 0x2a5   : > { %7214 = vmatprep.subr.bf16.mxu0 %v8133_v8  ;;  %7542 = vmatprep.subr.bf16.mxu1 %v8135_v11  ;;  %v8174_v8 = vcombine.low %v487_v57, %v491_v58  ;;  %v8181_v11 = vcombine.high %v494_v3, %v498_v4  ;;  %v8183_v19 = vcombine.high %v495_v5, %v499_v6  ;;  %v535_v56 = vld [vmem:[%s9623_s22 + $0x5d8] sm:$0xff] }
 0x2a6   : > { %v539_v57 = vld [vmem:[%s9623_s22 + $0x5f8] sm:$0xff] }
 0x2a8   : > { %7215 = vmatpush1.bf16.msra.mxu0 %v8132_v18  ;;  %7543 = vmatpush1.bf16.msra.mxu1 %v8134_v20  ;;  %v507_v18 = vld [vmem:[%s9623_s22 + $0x4f8] sm:$0xff]  ;;  %v8182_v20 = vcombine.low %v495_v5, %v499_v6 }
 0x2a9   : > { %7216 = vmatprep.subr.bf16.mxu0 %v8141_v21  ;;  %7544 = vmatprep.subr.bf16.mxu1 %v8143_v22  ;;  %v8189_v21 = vcombine.high %v502_v14, %v506_v15  ;;  %v8191_v22 = vcombine.high %v503_v59, %v507_v18  ;;  %v547_v5 = vld [vmem:[%s9623_s22 + $0x638] sm:$0xff] }
 0x2ac   : > { %7217 = vmatpush1.bf16.msra.mxu0 %v8140_v32  ;;  %7545 = vmatpush1.bf16.msra.mxu1 %v8142_v33  ;;  %v8188_v32 = vcombine.low %v502_v14, %v506_v15  ;;  %v8197_v33 = vcombine.high %v510_v13, %v514_v24  ;;  %v554_v14 = vld [vmem:[%s9623_s22 + $0x670] sm:$0xff]  ;;  %v551_v15 = vld [vmem:[%s9623_s22 + $0x658] sm:$0xff] }
 0x2ad   : > { %7218 = vmatprep.subr.bf16.mxu0 %v8149_v63  ;;  %7546 = vmatprep.subr.bf16.mxu1 %v8151_v35  ;;  %v8199_v63 = vcombine.high %v511_v27, %v515_v30  ;;  %v518_v35 = vld [vmem:[%s9623_s22 + $0x550] sm:$0xff]  ;;  %v559_v24 = vld [vmem:[%s9623_s22 + $0x698] sm:$0xff] }
 0x2ae   : > { %v8204_v9 = vcombine.low %v518_v35, %v522_v36  ;;  %v562_v13 = vld [vmem:[%s9623_s22 + $0x6b0] sm:$0xff] }
 0x2b0   : > { %7219 = vmatpush1.bf16.msra.mxu0 %v8148_v42  ;;  %7547 = vmatpush1.bf16.msra.mxu1 %v8150_v43  ;;  %v8198_v42 = vcombine.low %v511_v27, %v515_v30  ;;  %v8205_v43 = vcombine.high %v518_v35, %v522_v36  ;;  %v563_v27 = vld [vmem:[%s9623_s22 + $0x6b8] sm:$0xff]  ;;  %v570_v35 = vld [vmem:[%s9623_s22 + $0x6f0] sm:$0xff] }
 0x2b1   : > { %7220 = vmatprep.subr.bf16.mxu0 %v8157_v45  ;;  %7548 = vmatprep.subr.bf16.mxu1 %v8159_v46  ;;  %v8207_v45 = vcombine.high %v519_v37, %v523_v28  ;;  %v526_v46 = vld [vmem:[%s9623_s22 + $0x590] sm:$0xff]  ;;  %v567_v36 = vld [vmem:[%s9623_s22 + $0x6d8] sm:$0xff] }
 0x2b2   : > { %v8212_v58 = vcombine.low %v526_v46, %v530_v47 }
 0x2b4   : > { %7221 = vmatpush1.bf16.msra.mxu0 %v8156_v50  ;;  %7549 = vmatpush1.bf16.msra.mxu1 %v8158_v52  ;;  %v8206_v50 = vcombine.low %v519_v37, %v523_v28  ;;  %v8213_v52 = vcombine.high %v526_v46, %v530_v47  ;;  %v571_v37 = vld [vmem:[%s9623_s22 + $0x6f8] sm:$0xff]  ;;  %v578_v46 = vld [vmem:[%s9623_s22 + $0x730] sm:$0xff] }
 0x2b5   : > { %7231 = vmatprep.subr.bf16.mxu0 %v8165_v10  ;;  %7559 = vmatprep.subr.bf16.mxu1 %v8167_v54  ;;  %v8215_v10 = vcombine.high %v527_v48, %v531_v49  ;;  %v534_v54 = vld [vmem:[%s9623_s22 + $0x5d0] sm:$0xff]  ;;  %v575_v47 = vld [vmem:[%s9623_s22 + $0x718] sm:$0xff] }
 0x2b6   : > { %v8220_v6 = vcombine.low %v534_v54, %v538_v23 }
 0x2b7   : > { %7223 = vmatmul.mubr.bf16.vlgmr.msra.gmra.mrb[4].mxu0 %v9725_v25  ;;  %7551 = vmatmul.mubr.bf16.vlgmr.msra.gmra.mrb[4].mxu1 %v9725_v25  ;;  %v8180_v25 = vcombine.low %v494_v3, %v498_v4  ;;  %v546_v3 = vld [vmem:[%s9623_s22 + $0x630] sm:$0xff]  ;;  %v543_v4 = vld [vmem:[%s9623_s22 + $0x618] sm:$0xff] }
 0x2b8   : > { %7232 = vmatpush1.bf16.msra.mxu0 %v8164_v60  ;;  %7560 = vmatpush1.bf16.msra.mxu1 %v8166_v61  ;;  %v8214_v60 = vcombine.low %v527_v48, %v531_v49  ;;  %v8221_v61 = vcombine.high %v534_v54, %v538_v23  ;;  %v579_v48 = vld [vmem:[%s9623_s22 + $0x738] sm:$0xff]  ;;  %v586_v54 = vld [vmem:[%s9623_s22 + $0x770] sm:$0xff] }
 0x2b9   : > { %7233 = vmatprep.subr.bf16.mxu0 %v8173_v62  ;;  %7561 = vmatprep.subr.bf16.mxu1 %v8175_v1  ;;  %v8223_v62 = vcombine.high %v535_v56, %v539_v57  ;;  %v542_v1 = vld [vmem:[%s9623_s22 + $0x610] sm:$0xff]  ;;  %v583_v23 = vld [vmem:[%s9623_s22 + $0x758] sm:$0xff] }
 0x2ba   : > { %7263 = vmatprep.mubr.bf16.mxu0 %v9731_v34  ;;  %7591 = vmatprep.mubr.bf16.mxu1 %v9731_v34  ;;  %v8190_v34 = vcombine.low %v503_v59, %v507_v18  ;;  %v555_v59 = vld [vmem:[%s9623_s22 + $0x678] sm:$0xff]  ;;  %v8228_v18 = vcombine.low %v542_v1, %v546_v3 }
 0x2bc   : > { %7234 = vmatpush1.bf16.msra.mxu0 %v8172_v7  ;;  %7562 = vmatpush1.bf16.msra.mxu1 %v8174_v8  ;;  %v8222_v7 = vcombine.low %v535_v56, %v539_v57  ;;  %v8229_v8 = vcombine.high %v542_v1, %v546_v3  ;;  %v587_v56 = vld [vmem:[%s9623_s22 + $0x778] sm:$0xff]  ;;  %v594_v1 = vld [vmem:[%s9623_s22 + $0x7b0] sm:$0xff] }
 0x2bd   : > { %7235 = vmatprep.subr.bf16.mxu0 %v8181_v11  ;;  %7563 = vmatprep.subr.bf16.mxu1 %v8183_v19  ;;  %v8231_v11 = vcombine.high %v543_v4, %v547_v5  ;;  %v550_v19 = vld [vmem:[%s9623_s22 + $0x650] sm:$0xff]  ;;  %v591_v3 = vld [vmem:[%s9623_s22 + $0x798] sm:$0xff] }
 0x2be   : > { %v8236_v30 = vcombine.low %v550_v19, %v554_v14 }
 0x2c0   : > { %7236 = vmatpush1.bf16.msra.mxu0 %v8180_v25  ;;  %7564 = vmatpush1.bf16.msra.mxu1 %v8182_v20  ;;  %v8230_v25 = vcombine.low %v543_v4, %v547_v5  ;;  %v8237_v20 = vcombine.high %v550_v19, %v554_v14  ;;  %v595_v4 = vld [vmem:[%s9623_s22 + $0x7b8] sm:$0xff]  ;;  %v602_v19 = vld [vmem:[%s9623_s22 + $0x7f0] sm:$0xff] }
 0x2c1   : > { %7237 = vmatprep.subr.bf16.mxu0 %v8189_v21  ;;  %7565 = vmatprep.subr.bf16.mxu1 %v8191_v22  ;;  %v8239_v21 = vcombine.high %v551_v15, %v555_v59  ;;  %v558_v22 = vld [vmem:[%s9623_s22 + $0x690] sm:$0xff]  ;;  %v599_v14 = vld [vmem:[%s9623_s22 + $0x7d8] sm:$0xff] }
 0x2c2   : > { %v8244_v28 = vcombine.low %v558_v22, %v562_v13 }
 0x2c4   : > { %7238 = vmatpush1.bf16.msra.mxu0 %v8188_v32  ;;  %7566 = vmatpush1.bf16.msra.mxu1 %v8190_v34  ;;  %v8238_v32 = vcombine.low %v551_v15, %v555_v59  ;;  %v8245_v34 = vcombine.high %v558_v22, %v562_v13  ;;  %v603_v15 = vld [vmem:[%s9623_s22 + $0x7f8] sm:$0xff]  ;;  %v610_v22 = vld [vmem:[%s9623_s22 + $0x830] sm:$0xff] }
 0x2c5   : > { %7239 = vmatprep.subr.bf16.mxu0 %v8197_v33  ;;  %7567 = vmatprep.subr.bf16.mxu1 %v8199_v63  ;;  %v8247_v33 = vcombine.high %v559_v24, %v563_v27  ;;  %v566_v63 = vld [vmem:[%s9623_s22 + $0x6d0] sm:$0xff]  ;;  %v607_v13 = vld [vmem:[%s9623_s22 + $0x818] sm:$0xff] }
 0x2c6   : > { %v8252_v49 = vcombine.low %v566_v63, %v570_v35 }
 0x2c8   : > { %7240 = vmatpush1.bf16.msra.mxu0 %v8196_v55  ;;  %7568 = vmatpush1.bf16.msra.mxu1 %v8198_v42  ;;  %v8246_v55 = vcombine.low %v559_v24, %v563_v27  ;;  %v8253_v42 = vcombine.high %v566_v63, %v570_v35  ;;  %v611_v24 = vld [vmem:[%s9623_s22 + $0x838] sm:$0xff]  ;;  %v618_v63 = vld [vmem:[%s9623_s22 + $0x870] sm:$0xff] }
 0x2c9   : > { %7241 = vmatprep.subr.bf16.mxu0 %v8205_v43  ;;  %7569 = vmatprep.subr.bf16.mxu1 %v8207_v45  ;;  %v8255_v43 = vcombine.high %v567_v36, %v571_v37  ;;  %v574_v45 = vld [vmem:[%s9623_s22 + $0x710] sm:$0xff]  ;;  %v615_v35 = vld [vmem:[%s9623_s22 + $0x858] sm:$0xff] }
 0x2ca   : > { %v8260_v57 = vcombine.low %v574_v45, %v578_v46 }
 0x2cc   : > { %7242 = vmatpush1.bf16.msra.mxu0 %v8204_v9  ;;  %7570 = vmatpush1.bf16.msra.mxu1 %v8206_v50  ;;  %v8254_v9 = vcombine.low %v567_v36, %v571_v37  ;;  %v8261_v50 = vcombine.high %v574_v45, %v578_v46  ;;  %v619_v36 = vld [vmem:[%s9623_s22 + $0x878] sm:$0xff]  ;;  %v626_v45 = vld [vmem:[%s9623_s22 + $0x8b0] sm:$0xff] }
 0x2cd   : > { %7243 = vmatprep.subr.bf16.mxu0 %v8213_v52  ;;  %7571 = vmatprep.subr.bf16.mxu1 %v8215_v10  ;;  %v8263_v52 = vcombine.high %v575_v47, %v579_v48  ;;  %v582_v10 = vld [vmem:[%s9623_s22 + $0x750] sm:$0xff]  ;;  %v623_v46 = vld [vmem:[%s9623_s22 + $0x898] sm:$0xff] }
 0x2ce   : > { %v8268_v5 = vcombine.low %v582_v10, %v586_v54 }
 0x2d0   : > { %7244 = vmatpush1.bf16.msra.mxu0 %v8212_v58  ;;  %7572 = vmatpush1.bf16.msra.mxu1 %v8214_v60  ;;  %v8262_v58 = vcombine.low %v575_v47, %v579_v48  ;;  %v8269_v60 = vcombine.high %v582_v10, %v586_v54  ;;  %v627_v47 = vld [vmem:[%s9623_s22 + $0x8b8] sm:$0xff]  ;;  %v634_v10 = vld [vmem:[%s9623_s22 + $0x8f0] sm:$0xff] }
 0x2d1   : > { %7245 = vmatprep.subr.bf16.mxu0 %v8221_v61  ;;  %7573 = vmatprep.subr.bf16.mxu1 %v8223_v62  ;;  %v8271_v61 = vcombine.high %v583_v23, %v587_v56  ;;  %v590_v62 = vld [vmem:[%s9623_s22 + $0x790] sm:$0xff]  ;;  %v631_v54 = vld [vmem:[%s9623_s22 + $0x8d8] sm:$0xff] }
 0x2d2   : > { %v8276_v59 = vcombine.low %v590_v62, %v594_v1 }
 0x2d4   : > { %7246 = vmatpush1.bf16.msra.mxu0 %v8220_v6  ;;  %7574 = vmatpush1.bf16.msra.mxu1 %v8222_v7  ;;  %v8270_v6 = vcombine.low %v583_v23, %v587_v56  ;;  %v8277_v7 = vcombine.high %v590_v62, %v594_v1  ;;  %v635_v23 = vld [vmem:[%s9623_s22 + $0x8f8] sm:$0xff]  ;;  %v8310_v56 = vcombine.low %v623_v46, %v627_v47 }
 0x2d5   : > { %7247 = vmatprep.subr.bf16.mxu0 %v8229_v8  ;;  %7575 = vmatprep.subr.bf16.mxu1 %v8231_v11  ;;  %v8279_v8 = vcombine.high %v591_v3, %v595_v4  ;;  %v598_v11 = vld [vmem:[%s9623_s22 + $0x7d0] sm:$0xff]  ;;  %v639_v62 = vld [vmem:[%s9623_s22 + $0x918] sm:$0xff] }
 0x2d6   : > { %v8284_v27 = vcombine.low %v598_v11, %v602_v19  ;;  %v643_v1 = vld [vmem:[%s9623_s22 + $0x938] sm:$0xff] }
 0x2d8   : > { %7248 = vmatpush1.bf16.msra.mxu0 %v8228_v18  ;;  %7576 = vmatpush1.bf16.msra.mxu1 %v8230_v25  ;;  %v8278_v18 = vcombine.low %v591_v3, %v595_v4  ;;  %v8285_v25 = vcombine.high %v598_v11, %v602_v19  ;;  %v651_v11 = vld [vmem:[%s9623_s22 + $0x978] sm:$0xff] }
 0x2d9   : > { %7249 = vmatprep.subr.bf16.mxu0 %v8237_v20  ;;  %7577 = vmatprep.subr.bf16.mxu1 %v8239_v21  ;;  %v8287_v20 = vcombine.high %v599_v14, %v603_v15  ;;  %v606_v21 = vld [vmem:[%s9623_s22 + $0x810] sm:$0xff] }
 0x2da   : > { %v8292_v37 = vcombine.low %v606_v21, %v610_v22 }
 0x2dc   : > { %7250 = vmatpush1.bf16.msra.mxu0 %v8236_v30  ;;  %7578 = vmatpush1.bf16.msra.mxu1 %v8238_v32  ;;  %v8286_v30 = vcombine.low %v599_v14, %v603_v15  ;;  %v8293_v32 = vcombine.high %v606_v21, %v610_v22  ;;  %v8326_v14 = vcombine.low %v639_v62, %v643_v1  ;;  %v659_v21 = vld [vmem:[%s9623_s22 + $0x9b8] sm:$0xff] }
 0x2dd   : > { %7251 = vmatprep.subr.bf16.mxu0 %v8245_v34  ;;  %7579 = vmatprep.subr.bf16.mxu1 %v8247_v33  ;;  %v8295_v34 = vcombine.high %v607_v13, %v611_v24  ;;  %v614_v33 = vld [vmem:[%s9623_s22 + $0x850] sm:$0xff] }
 0x2de   : > { %v8300_v48 = vcombine.low %v614_v33, %v618_v63 }
 0x2e0   : > { %7252 = vmatpush1.bf16.msra.mxu0 %v8244_v28  ;;  %7580 = vmatpush1.bf16.msra.mxu1 %v8246_v55  ;;  %v8294_v28 = vcombine.low %v607_v13, %v611_v24  ;;  %v8301_v55 = vcombine.high %v614_v33, %v618_v63  ;;  %v667_v33 = vld [vmem:[%s9623_s22 + $0x9f8] sm:$0xff] }
 0x2e1   : > { %7253 = vmatprep.subr.bf16.mxu0 %v8253_v42  ;;  %7581 = vmatprep.subr.bf16.mxu1 %v8255_v43  ;;  %v8303_v42 = vcombine.high %v615_v35, %v619_v36  ;;  %v622_v43 = vld [vmem:[%s9623_s22 + $0x890] sm:$0xff] }
 0x2e4   : > { %7254 = vmatpush1.bf16.msra.mxu0 %v8252_v49  ;;  %7582 = vmatpush1.bf16.msra.mxu1 %v8254_v9  ;;  %v8302_v49 = vcombine.low %v615_v35, %v619_v36  ;;  %v8309_v9 = vcombine.high %v622_v43, %v626_v45 }
 0x2e5   : > { %7255 = vmatprep.subr.bf16.mxu0 %v8261_v50  ;;  %7583 = vmatprep.subr.bf16.mxu1 %v8263_v52  ;;  %v8311_v50 = vcombine.high %v623_v46, %v627_v47  ;;  %v630_v52 = vld [vmem:[%s9623_s22 + $0x8d0] sm:$0xff] }
 0x2e6   : > { %v8316_v3 = vcombine.low %v630_v52, %v634_v10 }
 0x2e8   : > { %7256 = vmatpush1.bf16.msra.mxu0 %v8260_v57  ;;  %7584 = vmatpush1.bf16.msra.mxu1 %v8262_v58  ;;  %v8317_v57 = vcombine.high %v630_v52, %v634_v10  ;;  %v8319_v58 = vcombine.high %v631_v54, %v635_v23  ;;  %v683_v52 = vld [vmem:[%s9623_s22 + $0xa78] sm:$0xff] }
 0x2e9   : > { %7257 = vmatprep.subr.bf16.mxu0 %v8269_v60  ;;  %7585 = vmatprep.subr.bf16.mxu1 %v8271_v61  ;;  %v638_v60 = vld [vmem:[%s9623_s22 + $0x910] sm:$0xff] }
 0x2ea   : > { %v642_v61 = vld [vmem:[%s9623_s22 + $0x930] sm:$0xff] }
 0x2eb   : > { %v8325_v4 = vcombine.high %v638_v60, %v642_v61  ;;  %v8324_v19 = vcombine.low %v638_v60, %v642_v61  ;;  %v691_v60 = vld [vmem:[%s9623_s22 + $0xab8] sm:$0xff] }
 0x2ec   : > { %7258 = vmatpush1.bf16.msra.mxu0 %v8268_v5  ;;  %7586 = vmatpush1.bf16.msra.mxu1 %v8270_v6  ;;  %v8327_v5 = vcombine.high %v639_v62, %v643_v1  ;;  %v646_v6 = vld [vmem:[%s9623_s22 + $0x950] sm:$0xff] }
 0x2ed   : > { %7259 = vmatprep.subr.bf16.mxu0 %v8277_v7  ;;  %7587 = vmatprep.subr.bf16.mxu1 %v8279_v8  ;;  %v650_v7 = vld [vmem:[%s9623_s22 + $0x970] sm:$0xff]  ;;  %v647_v8 = vld [vmem:[%s9623_s22 + $0x958] sm:$0xff] }
 0x2ee   : > { %v8333_v15 = vcombine.high %v646_v6, %v650_v7  ;;  %v8332_v22 = vcombine.low %v646_v6, %v650_v7  ;;  %v8334_v13 = vcombine.low %v647_v8, %v651_v11  ;;  %v699_v6 = vld [vmem:[%s9623_s22 + $0xaf8] sm:$0xff] }
 0x2f0   : > { %7260 = vmatpush1.bf16.msra.mxu0 %v8276_v59  ;;  %7588 = vmatpush1.bf16.msra.mxu1 %v8278_v18  ;;  %v8335_v59 = vcombine.high %v647_v8, %v651_v11  ;;  %v654_v18 = vld [vmem:[%s9623_s22 + $0x990] sm:$0xff] }
 0x2f1   : > { %7261 = vmatprep.subr.bf16.mxu0 %v8285_v25  ;;  %7589 = vmatprep.subr.bf16.mxu1 %v8287_v20  ;;  %v658_v25 = vld [vmem:[%s9623_s22 + $0x9b0] sm:$0xff]  ;;  %v655_v20 = vld [vmem:[%s9623_s22 + $0x998] sm:$0xff] }
 0x2f2   : > { %v8341_v24 = vcombine.high %v654_v18, %v658_v25  ;;  %v8340_v63 = vcombine.low %v654_v18, %v658_v25  ;;  %v8342_v35 = vcombine.low %v655_v20, %v659_v21  ;;  %v707_v18 = vld [vmem:[%s9623_s22 + $0xb38] sm:$0xff] }
 0x2f4   : > { %7262 = vmatpush1.bf16.msra.mxu0 %v8284_v27  ;;  %7590 = vmatpush1.bf16.msra.mxu1 %v8286_v30  ;;  %v8343_v27 = vcombine.high %v655_v20, %v659_v21  ;;  %v662_v30 = vld [vmem:[%s9623_s22 + $0x9d0] sm:$0xff] }
 0x2f5   : > { %7272 = vmatprep.subr.bf16.mxu0 %v8293_v32  ;;  %7600 = vmatprep.subr.bf16.mxu1 %v8295_v34  ;;  %v666_v32 = vld [vmem:[%s9623_s22 + $0x9f0] sm:$0xff]  ;;  %v663_v34 = vld [vmem:[%s9623_s22 + $0x9d8] sm:$0xff] }
 0x2f6   : > { %v8349_v36 = vcombine.high %v662_v30, %v666_v32  ;;  %v8350_v46 = vcombine.low %v663_v34, %v667_v33 }
 0x2f7   : > { %7264 = vmatmul.mubr.bf16.vlgmr.msra.gmra.mrb[4].mxu0 %v9807_v41  ;;  %7592 = vmatmul.mubr.bf16.vlgmr.msra.gmra.mrb[4].mxu1 %v9807_v41  ;;  %v8308_v41 = vcombine.low %v622_v43, %v626_v45  ;;  %v675_v43 = vld [vmem:[%s9623_s22 + $0xa38] sm:$0xff]  ;;  %v8348_v45 = vcombine.low %v662_v30, %v666_v32 }
 0x2f8   : > { %7273 = vmatpush1.bf16.msra.mxu0 %v8292_v37  ;;  %7601 = vmatpush1.bf16.msra.mxu1 %v8294_v28  ;;  %v8351_v37 = vcombine.high %v663_v34, %v667_v33  ;;  %v670_v28 = vld [vmem:[%s9623_s22 + $0xa10] sm:$0xff]  ;;  %v715_v30 = vld [vmem:[%s9623_s22 + $0xb78] sm:$0xff] }
 0x2f9   : > { %7274 = vmatprep.subr.bf16.mxu0 %v8301_v55  ;;  %7602 = vmatprep.subr.bf16.mxu1 %v8303_v42  ;;  %v674_v55 = vld [vmem:[%s9623_s22 + $0xa30] sm:$0xff]  ;;  %v671_v42 = vld [vmem:[%s9623_s22 + $0xa18] sm:$0xff] }
 0x2fa   : > { %7304 = vmatprep.mubr.bf16.mxu0 %v9813_v51  ;;  %7632 = vmatprep.mubr.bf16.mxu1 %v9813_v51  ;;  %v8318_v51 = vcombine.low %v631_v54, %v635_v23  ;;  %v8357_v47 = vcombine.high %v670_v28, %v674_v55  ;;  %v8356_v10 = vcombine.low %v670_v28, %v674_v55  ;;  %v723_v28 = vld [vmem:[%s9623_s22 + $0xbb8] sm:$0xff] }
 0x2fb   : > { %v8358_v54 = vcombine.low %v671_v42, %v675_v43 }
 0x2fc   : > { %7275 = vmatpush1.bf16.msra.mxu0 %v8300_v48  ;;  %7603 = vmatpush1.bf16.msra.mxu1 %v8302_v49  ;;  %v8359_v48 = vcombine.high %v671_v42, %v675_v43  ;;  %v678_v49 = vld [vmem:[%s9623_s22 + $0xa50] sm:$0xff] }
 0x2fd   : > { %7276 = vmatprep.subr.bf16.mxu0 %v8309_v9  ;;  %7604 = vmatprep.subr.bf16.mxu1 %v8311_v50  ;;  %v682_v9 = vld [vmem:[%s9623_s22 + $0xa70] sm:$0xff]  ;;  %v679_v50 = vld [vmem:[%s9623_s22 + $0xa58] sm:$0xff] }
 0x2fe   : > { %v8365_v23 = vcombine.high %v678_v49, %v682_v9  ;;  %v8364_v61 = vcombine.low %v678_v49, %v682_v9  ;;  %v8366_v62 = vcombine.low %v679_v50, %v683_v52  ;;  %v731_v49 = vld [vmem:[%s9623_s22 + $0xbf8] sm:$0xff] }
 0x300   : > { %7277 = vmatpush1.bf16.msra.mxu0 %v8308_v41  ;;  %7605 = vmatpush1.bf16.msra.mxu1 %v8310_v56  ;;  %v8367_v41 = vcombine.high %v679_v50, %v683_v52  ;;  %v686_v56 = vld [vmem:[%s9623_s22 + $0xa90] sm:$0xff] }
 0x301   : > { %7278 = vmatprep.subr.bf16.mxu0 %v8317_v57  ;;  %7606 = vmatprep.subr.bf16.mxu1 %v8319_v58  ;;  %v690_v57 = vld [vmem:[%s9623_s22 + $0xab0] sm:$0xff]  ;;  %v687_v58 = vld [vmem:[%s9623_s22 + $0xa98] sm:$0xff] }
 0x302   : > { %v8373_v1 = vcombine.high %v686_v56, %v690_v57  ;;  %v8372_v7 = vcombine.low %v686_v56, %v690_v57  ;;  %v8374_v8 = vcombine.low %v687_v58, %v691_v60  ;;  %v739_v56 = vld [vmem:[%s9623_s22 + $0xc38] sm:$0xff] }
 0x304   : > { %7279 = vmatpush1.bf16.msra.mxu0 %v8316_v3  ;;  %7607 = vmatpush1.bf16.msra.mxu1 %v8318_v51  ;;  %v8375_v3 = vcombine.high %v687_v58, %v691_v60  ;;  %v694_v51 = vld [vmem:[%s9623_s22 + $0xad0] sm:$0xff] }
 0x305   : > { %7280 = vmatprep.subr.bf16.mxu0 %v8325_v4  ;;  %7608 = vmatprep.subr.bf16.mxu1 %v8327_v5  ;;  %v698_v4 = vld [vmem:[%s9623_s22 + $0xaf0] sm:$0xff]  ;;  %v695_v5 = vld [vmem:[%s9623_s22 + $0xad8] sm:$0xff] }
 0x306   : > { %v8381_v11 = vcombine.high %v694_v51, %v698_v4  ;;  %v8380_v25 = vcombine.low %v694_v51, %v698_v4  ;;  %v8382_v20 = vcombine.low %v695_v5, %v699_v6  ;;  %v747_v51 = vld [vmem:[%s9623_s22 + $0xc78] sm:$0xff] }
 0x308   : > { %7281 = vmatpush1.bf16.msra.mxu0 %v8324_v19  ;;  %7609 = vmatpush1.bf16.msra.mxu1 %v8326_v14  ;;  %v8383_v19 = vcombine.high %v695_v5, %v699_v6  ;;  %v702_v14 = vld [vmem:[%s9623_s22 + $0xb10] sm:$0xff] }
 0x309   : > { %7282 = vmatprep.subr.bf16.mxu0 %v8333_v15  ;;  %7610 = vmatprep.subr.bf16.mxu1 %v8335_v59  ;;  %v706_v15 = vld [vmem:[%s9623_s22 + $0xb30] sm:$0xff]  ;;  %v703_v59 = vld [vmem:[%s9623_s22 + $0xb18] sm:$0xff] }
 0x30a   : > { %v8389_v21 = vcombine.high %v702_v14, %v706_v15  ;;  %v8388_v32 = vcombine.low %v702_v14, %v706_v15  ;;  %v8390_v34 = vcombine.low %v703_v59, %v707_v18  ;;  %v755_v14 = vld [vmem:[%s9623_s22 + $0xcb8] sm:$0xff] }
 0x30c   : > { %7283 = vmatpush1.bf16.msra.mxu0 %v8332_v22  ;;  %7611 = vmatpush1.bf16.msra.mxu1 %v8334_v13  ;;  %v8391_v22 = vcombine.high %v703_v59, %v707_v18  ;;  %v710_v13 = vld [vmem:[%s9623_s22 + $0xb50] sm:$0xff] }
 0x30d   : > { %7284 = vmatprep.subr.bf16.mxu0 %v8341_v24  ;;  %7612 = vmatprep.subr.bf16.mxu1 %v8343_v27  ;;  %v714_v24 = vld [vmem:[%s9623_s22 + $0xb70] sm:$0xff]  ;;  %v711_v27 = vld [vmem:[%s9623_s22 + $0xb58] sm:$0xff] }
 0x30e   : > { %v8397_v33 = vcombine.high %v710_v13, %v714_v24  ;;  %v8396_v55 = vcombine.low %v710_v13, %v714_v24  ;;  %v8398_v42 = vcombine.low %v711_v27, %v715_v30  ;;  %v763_v13 = vld [vmem:[%s9623_s22 + $0xcf8] sm:$0xff] }
 0x310   : > { %7285 = vmatpush1.bf16.msra.mxu0 %v8340_v63  ;;  %7613 = vmatpush1.bf16.msra.mxu1 %v8342_v35  ;;  %v8399_v63 = vcombine.high %v711_v27, %v715_v30  ;;  %v718_v35 = vld [vmem:[%s9623_s22 + $0xb90] sm:$0xff] }
 0x311   : > { %7286 = vmatprep.subr.bf16.mxu0 %v8349_v36  ;;  %7614 = vmatprep.subr.bf16.mxu1 %v8351_v37  ;;  %v722_v36 = vld [vmem:[%s9623_s22 + $0xbb0] sm:$0xff]  ;;  %v719_v37 = vld [vmem:[%s9623_s22 + $0xb98] sm:$0xff] }
 0x312   : > { %v8405_v43 = vcombine.high %v718_v35, %v722_v36  ;;  %v8404_v9 = vcombine.low %v718_v35, %v722_v36  ;;  %v8406_v50 = vcombine.low %v719_v37, %v723_v28 }
 0x314   : > { %7287 = vmatpush1.bf16.msra.mxu0 %v8348_v45  ;;  %7615 = vmatpush1.bf16.msra.mxu1 %v8350_v46  ;;  %v8407_v45 = vcombine.high %v719_v37, %v723_v28  ;;  %v726_v46 = vld [vmem:[%s9623_s22 + $0xbd0] sm:$0xff] }
 0x315   : > { %7288 = vmatprep.subr.bf16.mxu0 %v8357_v47  ;;  %7616 = vmatprep.subr.bf16.mxu1 %v8359_v48  ;;  %v730_v47 = vld [vmem:[%s9623_s22 + $0xbf0] sm:$0xff]  ;;  %v727_v48 = vld [vmem:[%s9623_s22 + $0xbd8] sm:$0xff] }
 0x316   : > { %v8413_v52 = vcombine.high %v726_v46, %v730_v47  ;;  %v8412_v57 = vcombine.low %v726_v46, %v730_v47  ;;  %v8414_v58 = vcombine.low %v727_v48, %v731_v49  ;;  %v774_v28 = vld [vmem:[%s9623_s22 + $0xd50] sm:$0xff]  ;;  %v1372_v47 = vld [vmem:[%s10518_s27] sm:$0xff] }
 0x318   : > { %7289 = vmatpush1.bf16.msra.mxu0 %v8356_v10  ;;  %7617 = vmatpush1.bf16.msra.mxu1 %v8358_v54  ;;  %v8415_v10 = vcombine.high %v727_v48, %v731_v49  ;;  %v734_v54 = vld [vmem:[%s9623_s22 + $0xc10] sm:$0xff]  ;;  %v1384_v48 = vsub.s32 2, %v9651_v44  ;;  %v1380_v49 = vsub.s32 1, %v9651_v44 }
 0x319   : > { %7290 = vmatprep.subr.bf16.mxu0 %v8365_v23  ;;  %7618 = vmatprep.subr.bf16.mxu1 %v8367_v41  ;;  %v738_v23 = vld [vmem:[%s9623_s22 + $0xc30] sm:$0xff]  ;;  %v735_v41 = vld [vmem:[%s9623_s22 + $0xc18] sm:$0xff] }
 0x31a   : > { %v8421_v60 = vcombine.high %v734_v54, %v738_v23  ;;  %v8420_v4 = vcombine.low %v734_v54, %v738_v23  ;;  %v8422_v5 = vcombine.low %v735_v41, %v739_v56  ;;  %v782_v54 = vld [vmem:[%s9623_s22 + $0xd90] sm:$0xff] }
 0x31b   : > { %v786_v23 = vld [vmem:[%s9623_s22 + $0xdb0] sm:$0xff] }
 0x31c   : > { %7291 = vmatpush1.bf16.msra.mxu0 %v8364_v61  ;;  %7619 = vmatpush1.bf16.msra.mxu1 %v8366_v62  ;;  %v8423_v61 = vcombine.high %v735_v41, %v739_v56  ;;  %v742_v62 = vld [vmem:[%s9623_s22 + $0xc50] sm:$0xff]  ;;  %v783_v56 = vld [vmem:[%s9623_s22 + $0xd98] sm:$0xff] }
 0x31d   : > { %7292 = vmatprep.subr.bf16.mxu0 %v8373_v1  ;;  %7620 = vmatprep.subr.bf16.mxu1 %v8375_v3  ;;  %v746_v1 = vld [vmem:[%s9623_s22 + $0xc70] sm:$0xff]  ;;  %v743_v3 = vld [vmem:[%s9623_s22 + $0xc58] sm:$0xff] }
 0x31e   : > { %v8429_v6 = vcombine.high %v742_v62, %v746_v1  ;;  %v8428_v15 = vcombine.low %v742_v62, %v746_v1  ;;  %v8430_v59 = vcombine.low %v743_v3, %v747_v51 }
 0x320   : > { %7293 = vmatpush1.bf16.msra.mxu0 %v8372_v7  ;;  %7621 = vmatpush1.bf16.msra.mxu1 %v8374_v8  ;;  %v8431_v7 = vcombine.high %v743_v3, %v747_v51  ;;  %v750_v8 = vld [vmem:[%s9623_s22 + $0xc90] sm:$0xff]  ;;  %v8469_v3 = vcombine.high %v782_v54, %v786_v23 }
 0x321   : > { %7294 = vmatprep.subr.bf16.mxu0 %v8381_v11  ;;  %7622 = vmatprep.subr.bf16.mxu1 %v8383_v19  ;;  %v754_v11 = vld [vmem:[%s9623_s22 + $0xcb0] sm:$0xff]  ;;  %v751_v19 = vld [vmem:[%s9623_s22 + $0xc98] sm:$0xff] }
 0x322   : > { %v8437_v18 = vcombine.high %v750_v8, %v754_v11  ;;  %v8438_v24 = vcombine.low %v751_v19, %v755_v14 }
 0x324   : > { %7295 = vmatpush1.bf16.msra.mxu0 %v8380_v25  ;;  %7623 = vmatpush1.bf16.msra.mxu1 %v8382_v20  ;;  %v8439_v25 = vcombine.high %v751_v19, %v755_v14  ;;  %v758_v20 = vld [vmem:[%s9623_s22 + $0xcd0] sm:$0xff]  ;;  %v791_v19 = vld [vmem:[%s9623_s22 + $0xdd8] sm:$0xff] }
 0x325   : > { %7296 = vmatprep.subr.bf16.mxu0 %v8389_v21  ;;  %7624 = vmatprep.subr.bf16.mxu1 %v8391_v22  ;;  %v762_v21 = vld [vmem:[%s9623_s22 + $0xcf0] sm:$0xff]  ;;  %v759_v22 = vld [vmem:[%s9623_s22 + $0xcd8] sm:$0xff] }
 0x326   : > { %v8445_v27 = vcombine.high %v758_v20, %v762_v21  ;;  %v8447_v30 = vcombine.high %v759_v22, %v763_v13  ;;  %v8444_v35 = vcombine.low %v758_v20, %v762_v21  ;;  %v795_v14 = vld [vmem:[%s9623_s22 + $0xdf8] sm:$0xff]  ;;  %v8468_v20 = vcombine.low %v782_v54, %v786_v23 }
 0x328   : > { %7297 = vmatpush1.bf16.msra.mxu0 %v8388_v32  ;;  %7625 = vmatpush1.bf16.msra.mxu1 %v8390_v34  ;;  %v766_v32 = vld [vmem:[%s9623_s22 + $0xd10] sm:$0xff] }
 0x329   : > { %7298 = vmatprep.subr.bf16.mxu0 %v8397_v33  ;;  %7626 = vmatprep.subr.bf16.mxu1 %v8399_v63  ;;  %v770_v34 = vld [vmem:[%s9623_s22 + $0xd30] sm:$0xff]  ;;  %v767_v33 = vld [vmem:[%s9623_s22 + $0xd18] sm:$0xff] }
 0x32a   : > { %v771_v63 = vld [vmem:[%s9623_s22 + $0xd38] sm:$0xff]  ;;  %v8453_v36 = vcombine.high %v766_v32, %v770_v34  ;;  %v8452_v46 = vcombine.low %v766_v32, %v770_v34 }
 0x32b   : > { %v8455_v37 = vcombine.high %v767_v33, %v771_v63 }
 0x32c   : > { %7299 = vmatpush1.bf16.msra.mxu0 %v8396_v55  ;;  %7627 = vmatpush1.bf16.msra.mxu1 %v8398_v42  ;;  %v778_v55 = vld [vmem:[%s9623_s22 + $0xd70] sm:$0xff]  ;;  %v1376_v42 = vsub.s32 0, %v9651_v44 }
 0x32d   : > { %7300 = vmatprep.subr.bf16.mxu0 %v8405_v43  ;;  %7628 = vmatprep.subr.bf16.mxu1 %v8407_v45  ;;  %v775_v43 = vld [vmem:[%s9623_s22 + $0xd58] sm:$0xff] }
 0x32e   : > { %v779_v45 = vld [vmem:[%s9623_s22 + $0xd78] sm:$0xff]  ;;  %v1377_v41 = vrot.slane %v1372_v47, %v1376_v42 }
 0x32f   : > { %v8462_v1 = vcombine.low %v775_v43, %v779_v45 }
 0x330   : > { %7301 = vmatpush1.bf16.msra.mxu0 %v8404_v9  ;;  %7629 = vmatpush1.bf16.msra.mxu1 %v8406_v50  ;;  %v8454_v9 = vcombine.low %v767_v33, %v771_v63  ;;  %v1388_v50 = vsub.s32 3, %v9651_v44  ;;  %v8479_v33 = vcombine.high %v791_v19, %v795_v14  ;;  %v798_v63 = vld [vmem:[%s9623_s22 + $0xe10] sm:$0xff] }
 0x331   : > { %7302 = vmatprep.subr.bf16.mxu0 %v8413_v52  ;;  %7630 = vmatprep.subr.bf16.mxu1 %v8415_v10  ;;  %v8461_v52 = vcombine.high %v774_v28, %v778_v55  ;;  %v8463_v10 = vcombine.high %v775_v43, %v779_v45  ;;  %v8478_v43 = vcombine.low %v791_v19, %v795_v14 }
 0x332   : > { %v1389_v62 = vrot.slane %v1372_v47, %v1388_v50  ;;  %v807_v50 = vld [vmem:[%s9623_s22 + $0xe58] sm:$0xff] }
 0x334   : > { %7303 = vmatpush1.bf16.msra.mxu0 %v8412_v57  ;;  %7631 = vmatpush1.bf16.msra.mxu1 %v8414_v58  ;;  %v787_v57 = vld [vmem:[%s9623_s22 + $0xdb8] sm:$0xff]  ;;  %v1385_v58 = vrot.slane %v1372_v47, %v1384_v48  ;;  %v806_v48 = vld [vmem:[%s9623_s22 + $0xe50] sm:$0xff] }
 0x335   : > { %7313 = vmatprep.subr.bf16.mxu0 %v8421_v60  ;;  %7641 = vmatprep.subr.bf16.mxu1 %v8423_v61  ;;  %v1381_v60 = vrot.slane %v1372_v47, %v1380_v49  ;;  %v8460_v61 = vcombine.low %v774_v28, %v778_v55  ;;  %v810_v49 = vld [vmem:[%s9623_s22 + $0xe70] sm:$0xff] }
 0x337   : > { %7305 = vmatmul.mubr.bf16.vlgmr.msra.gmra.mrb[4].mxu0 %v9888_v2  ;;  %7633 = vmatmul.mubr.bf16.vlgmr.msra.gmra.mrb[4].mxu1 %v9888_v2  ;;  %v8436_v2 = vcombine.low %v750_v8, %v754_v11 }
 0x338   : > { %7314 = vmatpush1.bf16.msra.mxu0 %v8420_v4  ;;  %7642 = vmatpush1.bf16.msra.mxu1 %v8422_v5  ;;  %v8471_v4 = vcombine.high %v783_v56, %v787_v57  ;;  %v790_v5 = vld [vmem:[%s9623_s22 + $0xdd0] sm:$0xff] }
 0x339   : > { %7315 = vmatprep.subr.bf16.mxu0 %v8429_v6  ;;  %7643 = vmatprep.subr.bf16.mxu1 %v8431_v7  ;;  %v794_v6 = vld [vmem:[%s9623_s22 + $0xdf0] sm:$0xff] }
 0x33a   : > { %7345 = vmatprep.mubr.bf16.mxu0 %v9894_v12  ;;  %7673 = vmatprep.mubr.bf16.mxu1 %v9894_v12  ;;  %v8446_v12 = vcombine.low %v759_v22, %v763_v13  ;;  %v8476_v55 = vcombine.low %v790_v5, %v794_v6 }
 0x33c   : > { %7316 = vmatpush1.bf16.msra.mxu0 %v8428_v15  ;;  %7644 = vmatpush1.bf16.msra.mxu1 %v8430_v59 }
 0x33d   : > { %7317 = vmatprep.subr.bf16.mxu0 %v8437_v18  ;;  %7645 = vmatprep.subr.bf16.mxu1 %v8439_v25 }
 0x340   : > { %7318 = vmatpush1.bf16.msra.mxu0 %v8436_v2  ;;  %7646 = vmatpush1.bf16.msra.mxu1 %v8438_v24  ;;  %v8470_v24 = vcombine.low %v783_v56, %v787_v57  ;;  %v814_v57 = vld [vmem:[%s9623_s22 + $0xe90] sm:$0xff] }
 0x341   : > { %7319 = vmatprep.subr.bf16.mxu0 %v8445_v27  ;;  %7647 = vmatprep.subr.bf16.mxu1 %v8447_v30  ;;  %v8477_v27 = vcombine.high %v790_v5, %v794_v6  ;;  %v826_v5 = vld [vmem:[%s9623_s22 + $0xef0] sm:$0xff]  ;;  %v823_v6 = vld [vmem:[%s9623_s22 + $0xed8] sm:$0xff] }
 0x344   : > { %7320 = vmatpush1.bf16.msra.mxu0 %v8444_v35  ;;  %7648 = vmatpush1.bf16.msra.mxu1 %v8446_v12  ;;  %v802_v35 = vld [vmem:[%s9623_s22 + $0xe30] sm:$0xff] }
 0x345   : > { %7321 = vmatprep.subr.bf16.mxu0 %v8453_v36  ;;  %7649 = vmatprep.subr.bf16.mxu1 %v8455_v37  ;;  %v799_v36 = vld [vmem:[%s9623_s22 + $0xe18] sm:$0xff]  ;;  %v8485_v45 = vcombine.high %v798_v63, %v802_v35 }
 0x346   : > { %v803_v37 = vld [vmem:[%s9623_s22 + $0xe38] sm:$0xff] }
 0x347   : > { %v8487_v47 = vcombine.high %v799_v36, %v803_v37  ;;  %v8486_v23 = vcombine.low %v799_v36, %v803_v37  ;;  %v847_v36 = vld [vmem:[%s9623_s22 + $0xf98] sm:$0xff] }
 0x348   : > { %7322 = vmatpush1.bf16.msra.mxu0 %v8452_v46  ;;  %7650 = vmatpush1.bf16.msra.mxu1 %v8454_v9  ;;  %v851_v37 = vld [vmem:[%s9623_s22 + $0xfb8] sm:$0xff] }
 0x349   : > { %7323 = vmatprep.subr.bf16.mxu0 %v8461_v52  ;;  %7651 = vmatprep.subr.bf16.mxu1 %v8463_v10  ;;  %v811_v52 = vld [vmem:[%s9623_s22 + $0xe78] sm:$0xff]  ;;  %v8484_v10 = vcombine.low %v798_v63, %v802_v35  ;;  %v846_v35 = vld [vmem:[%s9623_s22 + $0xf90] sm:$0xff] }
 0x34a   : > { %v6855_v51 = vpop.f32.mrb[0].mxu0  ;;  %v7183_v8 = vpop.f32.mrb[0].mxu1  ;;  %v8495_v56 = vcombine.high %v807_v50, %v811_v52 }
 0x34b   : > { %v9064_v7 = vadd.f32 %v6855_v51, %v1377_v41  ;;  %v6857_v11 = vpop.f32.mrb[1].mxu0  ;;  %v9066_v15 = vadd.f32 %v7183_v8, %v1385_v58  ;;  %v7185_v18 = vpop.f32.mrb[1].mxu1  ;;  %v8493_v41 = vcombine.high %v806_v48, %v810_v49  ;;  %v818_v58 = vld [vmem:[%s9623_s22 + $0xeb0] sm:$0xff] }
 0x34c   : > { %v9065_v59 = vadd.f32 %v6857_v11, %v1381_v60  ;;  %v6859_v25 = vpop.f32.mrb[2].mxu0  ;;  %7324 = vmatpush1.bf16.msra.mxu0 %v8460_v61  ;;  %v9067_v22 = vadd.f32 %v7185_v18, %v1389_v62  ;;  %v7187_v13 = vpop.f32.mrb[2].mxu1  ;;  %7652 = vmatpush1.bf16.msra.mxu1 %v8462_v1  ;;  %v815_v60 = vld [vmem:[%s9623_s22 + $0xe98] sm:$0xff]  ;;  %v8492_v62 = vcombine.low %v806_v48, %v810_v49 }
 0x34d   : > { %v7846_v21 = vmax.f32 %v9064_v7, 0.0  ;;  %v6860_v2 = vpop.f32.mrb[3].mxu0  ;;  %7325 = vmatprep.subr.bf16.mxu0 %v8469_v3  ;;  %v7848_v30 = vmax.f32 %v9066_v15, 0.0  ;;  %v7188_v34 = vpop.f32.mrb[3].mxu1  ;;  %7653 = vmatprep.subr.bf16.mxu1 %v8471_v4  ;;  %v819_v61 = vld [vmem:[%s9623_s22 + $0xeb8] sm:$0xff]  ;;  %v8494_v1 = vcombine.low %v807_v50, %v811_v52  ;;  %v8501_v3 = vcombine.high %v814_v57, %v818_v58  ;;  %v822_v4 = vld [vmem:[%s9623_s22 + $0xed0] sm:$0xff] }
 0x34e   : > { %v7847_v32 = vmax.f32 %v9065_v59, 0.0  ;;  %v7849_v12 = vmax.f32 %v9067_v22, 0.0  ;;  %v8503_v51 = vcombine.high %v815_v60, %v819_v61  ;;  %v827_v7 = vld [vmem:[%s9623_s22 + $0xef8] sm:$0xff]  ;;  %v8500_v8 = vcombine.low %v814_v57, %v818_v58  ;;  %v830_v15 = vld [vmem:[%s9623_s22 + $0xf10] sm:$0xff] }
 0x34f   : > { %v8502_v11 = vcombine.low %v815_v60, %v819_v61  ;;  %v8509_v19 = vcombine.high %v822_v4, %v826_v5  ;;  %v8511_v14 = vcombine.high %v823_v6, %v827_v7  ;;  %v834_v59 = vld [vmem:[%s9623_s22 + $0xf30] sm:$0xff]  ;;  %v831_v18 = vld [vmem:[%s9623_s22 + $0xf18] sm:$0xff] }
 0x350   : > { %v7862_v28 = vcombine.low %v7846_v21, %v7847_v32  ;;  %7326 = vmatpush1.bf16.msra.mxu0 %v8468_v20  ;;  %v7863_v42 = vcombine.low %v7848_v30, %v7849_v12  ;;  %7654 = vmatpush1.bf16.msra.mxu1 %v8470_v24  ;;  %v835_v25 = vld [vmem:[%s9623_s22 + $0xf38] sm:$0xff]  ;;  %v8508_v20 = vcombine.low %v822_v4, %v826_v5  ;;  %v838_v2 = vld [vmem:[%s9623_s22 + $0xf50] sm:$0xff] }
 0x351   : > { %7327 = vmatprep.subr.bf16.mxu0 %v8477_v27  ;;  %7655 = vmatprep.subr.bf16.mxu1 %v8479_v33  ;;  %v8510_v21 = vcombine.low %v823_v6, %v827_v7  ;;  %v8517_v22 = vcombine.high %v830_v15, %v834_v59  ;;  %v8519_v13 = vcombine.high %v831_v18, %v835_v25  ;;  %v842_v24 = vld [vmem:[%s9623_s22 + $0xf70] sm:$0xff]  ;;  %v839_v27 = vld [vmem:[%s9623_s22 + $0xf58] sm:$0xff] }
 0x352   : > { %v7870_v46 = vrot.slane %v7862_v28, %v9658_v53  ;;  %v7877_v9 = vrot.slane %v7863_v42, %v9658_v53  ;;  %v843_v30 = vld [vmem:[%s9623_s22 + $0xf78] sm:$0xff]  ;;  %v8516_v32 = vcombine.low %v830_v15, %v834_v59  ;;  %v8518_v34 = vcombine.low %v831_v18, %v835_v25  ;;  %v850_v12 = vld [vmem:[%s9623_s22 + $0xfb0] sm:$0xff] }
 0x353   : > { %v8525_v33 = vcombine.high %v838_v2, %v842_v24  ;;  %v8527_v63 = vcombine.high %v839_v27, %v843_v30  ;;  %v8524_v28 = vcombine.low %v838_v2, %v842_v24  ;;  %v8533_v42 = vcombine.high %v846_v35, %v850_v12  ;;  %v859_v48 = vld [vmem:[%s9623_s22 + $0xff8] sm:$0xff]  ;;  %v870_v61 = vld [vmem:[%s9623_s22 + $0x1050] sm:$0xff] }
 0x354   : > { %7328 = vmatpush1.bf16.msra.mxu0 %v8476_v55  ;;  %v7878_v54 = vcombine.low %v7870_v46, %v7877_v9  ;;  %7656 = vmatpush1.bf16.msra.mxu1 %v8478_v43  ;;  %v8526_v55 = vcombine.low %v839_v27, %v843_v30  ;;  %v8535_v43 = vcombine.high %v847_v36, %v851_v37  ;;  %v858_v46 = vld [vmem:[%s9623_s22 + $0xff0] sm:$0xff] }
 0x355   : > { %7329 = vmatprep.subr.bf16.mxu0 %v8485_v45  ;;  %7657 = vmatprep.subr.bf16.mxu1 %v8487_v47  ;;  %v854_v45 = vld [vmem:[%s9623_s22 + $0xfd0] sm:$0xff]  ;;  %v855_v47 = vld [vmem:[%s9623_s22 + $0xfd8] sm:$0xff]  ;;  %v8532_v49 = vcombine.low %v846_v35, %v850_v12  ;;  %v8534_v9 = vcombine.low %v847_v36, %v851_v37 }
 0x356   : > { %7898 = vst [vmem:[%s10547_s10] sm:$0xff] %v7878_v54  ;;  %v8541_v50 = vcombine.high %v854_v45, %v858_v46  ;;  %v8543_v52 = vcombine.high %v855_v47, %v859_v48  ;;  %v866_v54 = vld [vmem:[%s9623_s22 + $0x1030] sm:$0xff]  ;;  %v8542_v57 = vcombine.low %v855_v47, %v859_v48  ;;  %v903_v37 = vld [vmem:[%s9623_s22 + $0x1158] sm:$0xff] }
 0x357   : > { %v878_v7 = vld [vmem:[%s9623_s22 + $0x1090] sm:$0xff]  ;;  %v911_v48 = vld [vmem:[%s9623_s22 + $0x1198] sm:$0xff] }
 0x358   : > { %7330 = vmatpush1.bf16.msra.mxu0 %v8484_v10  ;;  %7658 = vmatpush1.bf16.msra.mxu1 %v8486_v23  ;;  %v862_v10 = vld [vmem:[%s9623_s22 + $0x1010] sm:$0xff]  ;;  %v863_v23 = vld [vmem:[%s9623_s22 + $0x1018] sm:$0xff] }
 0x359   : > { %7331 = vmatprep.subr.bf16.mxu0 %v8493_v41  ;;  %7659 = vmatprep.subr.bf16.mxu1 %v8495_v56  ;;  %v867_v41 = vld [vmem:[%s9623_s22 + $0x1038] sm:$0xff]  ;;  %v8540_v56 = vcombine.low %v854_v45, %v858_v46  ;;  %v8549_v58 = vcombine.high %v862_v10, %v866_v54  ;;  %v886_v25 = vld [vmem:[%s9623_s22 + $0x10d0] sm:$0xff] }
 0x35a   : > { %v8551_v60 = vcombine.high %v863_v23, %v867_v41  ;;  %v8550_v4 = vcombine.low %v863_v23, %v867_v41  ;;  %v894_v27 = vld [vmem:[%s9623_s22 + $0x1110] sm:$0xff]  ;;  %v919_v41 = vld [vmem:[%s9623_s22 + $0x11d8] sm:$0xff] }
 0x35b   : > { %v898_v30 = vld [vmem:[%s9623_s22 + $0x1130] sm:$0xff] }
 0x35c   : > { %7332 = vmatpush1.bf16.msra.mxu0 %v8492_v62  ;;  %7660 = vmatpush1.bf16.msra.mxu1 %v8494_v1  ;;  %v874_v62 = vld [vmem:[%s9623_s22 + $0x1070] sm:$0xff]  ;;  %v871_v1 = vld [vmem:[%s9623_s22 + $0x1058] sm:$0xff] }
 0x35d   : > { %7333 = vmatprep.subr.bf16.mxu0 %v8501_v3  ;;  %7661 = vmatprep.subr.bf16.mxu1 %v8503_v51  ;;  %v875_v3 = vld [vmem:[%s9623_s22 + $0x1078] sm:$0xff]  ;;  %v8548_v51 = vcombine.low %v862_v10, %v866_v54  ;;  %v8557_v5 = vcombine.high %v870_v61, %v874_v62  ;;  %v902_v12 = vld [vmem:[%s9623_s22 + $0x1150] sm:$0xff] }
 0x35e   : > { %v8559_v6 = vcombine.high %v871_v1, %v875_v3  ;;  %v8558_v15 = vcombine.low %v871_v1, %v875_v3  ;;  %v906_v36 = vld [vmem:[%s9623_s22 + $0x1170] sm:$0xff]  ;;  %v927_v3 = vld [vmem:[%s9623_s22 + $0x1218] sm:$0xff] }
 0x35f   : > { %v910_v46 = vld [vmem:[%s9623_s22 + $0x1190] sm:$0xff] }
 0x360   : > { %7334 = vmatpush1.bf16.msra.mxu0 %v8500_v8  ;;  %7662 = vmatpush1.bf16.msra.mxu1 %v8502_v11  ;;  %v882_v8 = vld [vmem:[%s9623_s22 + $0x10b0] sm:$0xff]  ;;  %v879_v11 = vld [vmem:[%s9623_s22 + $0x1098] sm:$0xff] }
 0x361   : > { %7335 = vmatprep.subr.bf16.mxu0 %v8509_v19  ;;  %7663 = vmatprep.subr.bf16.mxu1 %v8511_v14  ;;  %v883_v19 = vld [vmem:[%s9623_s22 + $0x10b8] sm:$0xff]  ;;  %v8556_v14 = vcombine.low %v870_v61, %v874_v62  ;;  %v8565_v59 = vcombine.high %v878_v7, %v882_v8  ;;  %v914_v47 = vld [vmem:[%s9623_s22 + $0x11b0] sm:$0xff] }
 0x362   : > { %v8567_v18 = vcombine.high %v879_v11, %v883_v19  ;;  %v918_v54 = vld [vmem:[%s9623_s22 + $0x11d0] sm:$0xff] }
 0x363   : > { %v922_v23 = vld [vmem:[%s9623_s22 + $0x11f0] sm:$0xff] }
 0x364   : > { %7336 = vmatpush1.bf16.msra.mxu0 %v8508_v20  ;;  %7664 = vmatpush1.bf16.msra.mxu1 %v8510_v21  ;;  %v890_v20 = vld [vmem:[%s9623_s22 + $0x10f0] sm:$0xff]  ;;  %v887_v21 = vld [vmem:[%s9623_s22 + $0x10d8] sm:$0xff] }
 0x365   : > { %7337 = vmatprep.subr.bf16.mxu0 %v8517_v22  ;;  %7665 = vmatprep.subr.bf16.mxu1 %v8519_v13  ;;  %v891_v22 = vld [vmem:[%s9623_s22 + $0x10f8] sm:$0xff]  ;;  %v8566_v13 = vcombine.low %v879_v11, %v883_v19  ;;  %v8573_v2 = vcombine.high %v886_v25, %v890_v20  ;;  %v926_v62 = vld [vmem:[%s9623_s22 + $0x1210] sm:$0xff] }
 0x366   : > { %v8575_v24 = vcombine.high %v887_v21, %v891_v22  ;;  %v930_v1 = vld [vmem:[%s9623_s22 + $0x1230] sm:$0xff]  ;;  %v935_v19 = vld [vmem:[%s9623_s22 + $0x1258] sm:$0xff] }
 0x367   : > { %v938_v11 = vld [vmem:[%s9623_s22 + $0x1270] sm:$0xff] }
 0x368   : > { %7338 = vmatpush1.bf16.msra.mxu0 %v8516_v32  ;;  %7666 = vmatpush1.bf16.msra.mxu1 %v8518_v34  ;;  %v895_v32 = vld [vmem:[%s9623_s22 + $0x1118] sm:$0xff] }
 0x369   : > { %7339 = vmatprep.subr.bf16.mxu0 %v8525_v33  ;;  %7667 = vmatprep.subr.bf16.mxu1 %v8527_v63  ;;  %v899_v34 = vld [vmem:[%s9623_s22 + $0x1138] sm:$0xff]  ;;  %v8572_v33 = vcombine.low %v886_v25, %v890_v20  ;;  %v8581_v63 = vcombine.high %v894_v27, %v898_v30  ;;  %v942_v20 = vld [vmem:[%s9623_s22 + $0x1290] sm:$0xff] }
 0x36a   : > { %v8583_v35 = vcombine.high %v895_v32, %v899_v34 }
 0x36c   : > { %7340 = vmatpush1.bf16.msra.mxu0 %v8524_v28  ;;  %7668 = vmatpush1.bf16.msra.mxu1 %v8526_v55  ;;  %v907_v28 = vld [vmem:[%s9623_s22 + $0x1178] sm:$0xff]  ;;  %v8580_v55 = vcombine.low %v894_v27, %v898_v30  ;;  %v950_v30 = vld [vmem:[%s9623_s22 + $0x12d0] sm:$0xff] }
 0x36d   : > { %7341 = vmatprep.subr.bf16.mxu0 %v8533_v42  ;;  %7669 = vmatprep.subr.bf16.mxu1 %v8535_v43  ;;  %v8582_v42 = vcombine.low %v895_v32, %v899_v34  ;;  %v8589_v43 = vcombine.high %v902_v12, %v906_v36  ;;  %v8591_v45 = vcombine.high %v903_v37, %v907_v28  ;;  %v954_v32 = vld [vmem:[%s9623_s22 + $0x12f0] sm:$0xff]  ;;  %v951_v34 = vld [vmem:[%s9623_s22 + $0x12d8] sm:$0xff] }
 0x370   : > { %7342 = vmatpush1.bf16.msra.mxu0 %v8532_v49  ;;  %7670 = vmatpush1.bf16.msra.mxu1 %v8534_v9  ;;  %v915_v49 = vld [vmem:[%s9623_s22 + $0x11b8] sm:$0xff]  ;;  %v8588_v9 = vcombine.low %v902_v12, %v906_v36  ;;  %v958_v36 = vld [vmem:[%s9623_s22 + $0x1310] sm:$0xff] }
 0x371   : > { %7343 = vmatprep.subr.bf16.mxu0 %v8541_v50  ;;  %7671 = vmatprep.subr.bf16.mxu1 %v8543_v52  ;;  %v8590_v50 = vcombine.low %v903_v37, %v907_v28  ;;  %v8597_v52 = vcombine.high %v910_v46, %v914_v47  ;;  %v8599_v10 = vcombine.high %v911_v48, %v915_v49  ;;  %v962_v37 = vld [vmem:[%s9623_s22 + $0x1330] sm:$0xff]  ;;  %v959_v28 = vld [vmem:[%s9623_s22 + $0x1318] sm:$0xff] }
 0x374   : > { %7344 = vmatpush1.bf16.msra.mxu0 %v8540_v56  ;;  %7672 = vmatpush1.bf16.msra.mxu1 %v8542_v57  ;;  %v923_v56 = vld [vmem:[%s9623_s22 + $0x11f8] sm:$0xff]  ;;  %v8596_v57 = vcombine.low %v910_v46, %v914_v47  ;;  %v966_v47 = vld [vmem:[%s9623_s22 + $0x1350] sm:$0xff] }
 0x375   : > { %7354 = vmatprep.subr.bf16.mxu0 %v8549_v58  ;;  %7682 = vmatprep.subr.bf16.mxu1 %v8551_v60  ;;  %v8598_v58 = vcombine.low %v911_v48, %v915_v49  ;;  %v8605_v60 = vcombine.high %v918_v54, %v922_v23  ;;  %v8607_v61 = vcombine.high %v919_v41, %v923_v56  ;;  %v970_v48 = vld [vmem:[%s9623_s22 + $0x1370] sm:$0xff]  ;;  %v967_v49 = vld [vmem:[%s9623_s22 + $0x1358] sm:$0xff] }
 0x377   : > { %7346 = vmatmul.mubr.bf16.vlgmr.msra.gmra.mrb[4].mxu0 %v9970_v29  ;;  %7674 = vmatmul.mubr.bf16.vlgmr.msra.gmra.mrb[4].mxu1 %v9970_v29  ;;  %v8564_v29 = vcombine.low %v878_v7, %v882_v8  ;;  %v934_v8 = vld [vmem:[%s9623_s22 + $0x1250] sm:$0xff] }
 0x378   : > { %7355 = vmatpush1.bf16.msra.mxu0 %v8548_v51  ;;  %7683 = vmatpush1.bf16.msra.mxu1 %v8550_v4  ;;  %v931_v51 = vld [vmem:[%s9623_s22 + $0x1238] sm:$0xff]  ;;  %v8604_v4 = vcombine.low %v918_v54, %v922_v23  ;;  %v974_v23 = vld [vmem:[%s9623_s22 + $0x1390] sm:$0xff] }
 0x379   : > { %7356 = vmatprep.subr.bf16.mxu0 %v8557_v5  ;;  %7684 = vmatprep.subr.bf16.mxu1 %v8559_v6  ;;  %v8606_v5 = vcombine.low %v919_v41, %v923_v56  ;;  %v8613_v6 = vcombine.high %v926_v62, %v930_v1  ;;  %v8615_v7 = vcombine.high %v927_v3, %v931_v51  ;;  %v978_v41 = vld [vmem:[%s9623_s22 + $0x13b0] sm:$0xff]  ;;  %v975_v56 = vld [vmem:[%s9623_s22 + $0x1398] sm:$0xff] }
 0x37a   : > { %7386 = vmatprep.mubr.bf16.mxu0 %v9976_v39  ;;  %7714 = vmatprep.mubr.bf16.mxu1 %v9976_v39  ;;  %v8574_v39 = vcombine.low %v887_v21, %v891_v22  ;;  %v946_v21 = vld [vmem:[%s9623_s22 + $0x12b0] sm:$0xff]  ;;  %v943_v22 = vld [vmem:[%s9623_s22 + $0x1298] sm:$0xff] }
 0x37c   : > { %7357 = vmatpush1.bf16.msra.mxu0 %v8556_v14  ;;  %7685 = vmatpush1.bf16.msra.mxu1 %v8558_v15  ;;  %v939_v14 = vld [vmem:[%s9623_s22 + $0x1278] sm:$0xff]  ;;  %v8612_v15 = vcombine.low %v926_v62, %v930_v1  ;;  %v982_v1 = vld [vmem:[%s9623_s22 + $0x13d0] sm:$0xff] }
 0x37d   : > { %7358 = vmatprep.subr.bf16.mxu0 %v8565_v59  ;;  %7686 = vmatprep.subr.bf16.mxu1 %v8567_v18  ;;  %v8614_v59 = vcombine.low %v927_v3, %v931_v51  ;;  %v8621_v18 = vcombine.high %v934_v8, %v938_v11  ;;  %v8623_v25 = vcombine.high %v935_v19, %v939_v14  ;;  %v986_v3 = vld [vmem:[%s9623_s22 + $0x13f0] sm:$0xff]  ;;  %v983_v51 = vld [vmem:[%s9623_s22 + $0x13d8] sm:$0xff] }
 0x380   : > { %7359 = vmatpush1.bf16.msra.mxu0 %v8564_v29  ;;  %7687 = vmatpush1.bf16.msra.mxu1 %v8566_v13  ;;  %v947_v29 = vld [vmem:[%s9623_s22 + $0x12b8] sm:$0xff]  ;;  %v8620_v13 = vcombine.low %v934_v8, %v938_v11  ;;  %v990_v11 = vld [vmem:[%s9623_s22 + $0x1410] sm:$0xff] }
 0x381   : > { %7360 = vmatprep.subr.bf16.mxu0 %v8573_v2  ;;  %7688 = vmatprep.subr.bf16.mxu1 %v8575_v24  ;;  %v8622_v2 = vcombine.low %v935_v19, %v939_v14  ;;  %v8629_v24 = vcombine.high %v942_v20, %v946_v21  ;;  %v8631_v27 = vcombine.high %v943_v22, %v947_v29  ;;  %v994_v19 = vld [vmem:[%s9623_s22 + $0x1430] sm:$0xff]  ;;  %v991_v14 = vld [vmem:[%s9623_s22 + $0x1418] sm:$0xff] }
 0x384   : > { %7361 = vmatpush1.bf16.msra.mxu0 %v8572_v33  ;;  %7689 = vmatpush1.bf16.msra.mxu1 %v8574_v39  ;;  %v955_v33 = vld [vmem:[%s9623_s22 + $0x12f8] sm:$0xff]  ;;  %v8628_v39 = vcombine.low %v942_v20, %v946_v21  ;;  %v998_v21 = vld [vmem:[%s9623_s22 + $0x1450] sm:$0xff] }
 0x385   : > { %7362 = vmatprep.subr.bf16.mxu0 %v8581_v63  ;;  %7690 = vmatprep.subr.bf16.mxu1 %v8583_v35  ;;  %v8630_v63 = vcombine.low %v943_v22, %v947_v29  ;;  %v8637_v35 = vcombine.high %v950_v30, %v954_v32  ;;  %v8639_v12 = vcombine.high %v951_v34, %v955_v33  ;;  %v1002_v22 = vld [vmem:[%s9623_s22 + $0x1470] sm:$0xff]  ;;  %v999_v29 = vld [vmem:[%s9623_s22 + $0x1458] sm:$0xff] }
 0x388   : > { %7363 = vmatpush1.bf16.msra.mxu0 %v8580_v55  ;;  %7691 = vmatpush1.bf16.msra.mxu1 %v8582_v42  ;;  %v963_v55 = vld [vmem:[%s9623_s22 + $0x1338] sm:$0xff]  ;;  %v8636_v42 = vcombine.low %v950_v30, %v954_v32  ;;  %v1006_v32 = vld [vmem:[%s9623_s22 + $0x1490] sm:$0xff] }
 0x389   : > { %7364 = vmatprep.subr.bf16.mxu0 %v8589_v43  ;;  %7692 = vmatprep.subr.bf16.mxu1 %v8591_v45  ;;  %v8638_v43 = vcombine.low %v951_v34, %v955_v33  ;;  %v8645_v45 = vcombine.high %v958_v36, %v962_v37  ;;  %v8647_v46 = vcombine.high %v959_v28, %v963_v55  ;;  %v1010_v34 = vld [vmem:[%s9623_s22 + $0x14b0] sm:$0xff]  ;;  %v1007_v33 = vld [vmem:[%s9623_s22 + $0x1498] sm:$0xff] }
 0x38c   : > { %7365 = vmatpush1.bf16.msra.mxu0 %v8588_v9  ;;  %7693 = vmatpush1.bf16.msra.mxu1 %v8590_v50  ;;  %v971_v9 = vld [vmem:[%s9623_s22 + $0x1378] sm:$0xff]  ;;  %v8644_v50 = vcombine.low %v958_v36, %v962_v37  ;;  %v1014_v37 = vld [vmem:[%s9623_s22 + $0x14d0] sm:$0xff] }
 0x38d   : > { %7366 = vmatprep.subr.bf16.mxu0 %v8597_v52  ;;  %7694 = vmatprep.subr.bf16.mxu1 %v8599_v10  ;;  %v8646_v52 = vcombine.low %v959_v28, %v963_v55  ;;  %v8653_v10 = vcombine.high %v966_v47, %v970_v48  ;;  %v8655_v54 = vcombine.high %v967_v49, %v971_v9  ;;  %v1018_v28 = vld [vmem:[%s9623_s22 + $0x14f0] sm:$0xff]  ;;  %v1015_v55 = vld [vmem:[%s9623_s22 + $0x14d8] sm:$0xff] }
 0x390   : > { %7367 = vmatpush1.bf16.msra.mxu0 %v8596_v57  ;;  %7695 = vmatpush1.bf16.msra.mxu1 %v8598_v58  ;;  %v979_v57 = vld [vmem:[%s9623_s22 + $0x13b8] sm:$0xff]  ;;  %v8652_v58 = vcombine.low %v966_v47, %v970_v48  ;;  %v1022_v47 = vld [vmem:[%s9623_s22 + $0x1510] sm:$0xff] }
 0x391   : > { %7368 = vmatprep.subr.bf16.mxu0 %v8605_v60  ;;  %7696 = vmatprep.subr.bf16.mxu1 %v8607_v61  ;;  %v8654_v60 = vcombine.low %v967_v49, %v971_v9  ;;  %v8661_v61 = vcombine.high %v974_v23, %v978_v41  ;;  %v8663_v62 = vcombine.high %v975_v56, %v979_v57  ;;  %v1026_v48 = vld [vmem:[%s9623_s22 + $0x1530] sm:$0xff]  ;;  %v1023_v49 = vld [vmem:[%s9623_s22 + $0x1518] sm:$0xff] }
 0x392   : > { %v1027_v9 = vld [vmem:[%s9623_s22 + $0x1538] sm:$0xff] }
 0x394   : > { %7369 = vmatpush1.bf16.msra.mxu0 %v8604_v4  ;;  %7697 = vmatpush1.bf16.msra.mxu1 %v8606_v5  ;;  %v987_v4 = vld [vmem:[%s9623_s22 + $0x13f8] sm:$0xff]  ;;  %v8660_v5 = vcombine.low %v974_v23, %v978_v41  ;;  %v1034_v23 = vld [vmem:[%s9623_s22 + $0x1570] sm:$0xff] }
 0x395   : > { %7370 = vmatprep.subr.bf16.mxu0 %v8613_v6  ;;  %7698 = vmatprep.subr.bf16.mxu1 %v8615_v7  ;;  %v8662_v6 = vcombine.low %v975_v56, %v979_v57  ;;  %v8669_v7 = vcombine.high %v982_v1, %v986_v3  ;;  %v8671_v8 = vcombine.high %v983_v51, %v987_v4  ;;  %v1031_v41 = vld [vmem:[%s9623_s22 + $0x1558] sm:$0xff] }
 0x396   : > { %v1035_v56 = vld [vmem:[%s9623_s22 + $0x1578] sm:$0xff]  ;;  %v8708_v57 = vcombine.low %v1022_v47, %v1026_v48 }
 0x398   : > { %7371 = vmatpush1.bf16.msra.mxu0 %v8612_v15  ;;  %7699 = vmatpush1.bf16.msra.mxu1 %v8614_v59  ;;  %v995_v15 = vld [vmem:[%s9623_s22 + $0x1438] sm:$0xff]  ;;  %v8668_v59 = vcombine.low %v982_v1, %v986_v3  ;;  %v1042_v1 = vld [vmem:[%s9623_s22 + $0x15b0] sm:$0xff] }
 0x399   : > { %7372 = vmatprep.subr.bf16.mxu0 %v8621_v18  ;;  %7700 = vmatprep.subr.bf16.mxu1 %v8623_v25  ;;  %v8670_v18 = vcombine.low %v983_v51, %v987_v4  ;;  %v8677_v25 = vcombine.high %v990_v11, %v994_v19  ;;  %v8679_v20 = vcombine.high %v991_v14, %v995_v15  ;;  %v1039_v3 = vld [vmem:[%s9623_s22 + $0x1598] sm:$0xff] }
 0x39a   : > { %v1043_v51 = vld [vmem:[%s9623_s22 + $0x15b8] sm:$0xff] }
 0x39c   : > { %7373 = vmatpush1.bf16.msra.mxu0 %v8620_v13  ;;  %7701 = vmatpush1.bf16.msra.mxu1 %v8622_v2  ;;  %v1003_v13 = vld [vmem:[%s9623_s22 + $0x1478] sm:$0xff]  ;;  %v8676_v2 = vcombine.low %v990_v11, %v994_v19  ;;  %v1050_v11 = vld [vmem:[%s9623_s22 + $0x15f0] sm:$0xff] }
 0x39d   : > { %7374 = vmatprep.subr.bf16.mxu0 %v8629_v24  ;;  %7702 = vmatprep.subr.bf16.mxu1 %v8631_v27  ;;  %v8678_v24 = vcombine.low %v991_v14, %v995_v15  ;;  %v8685_v27 = vcombine.high %v998_v21, %v1002_v22  ;;  %v8687_v30 = vcombine.high %v999_v29, %v1003_v13  ;;  %v1047_v19 = vld [vmem:[%s9623_s22 + $0x15d8] sm:$0xff] }
 0x39e   : > { %v1051_v14 = vld [vmem:[%s9623_s22 + $0x15f8] sm:$0xff] }
 0x3a0   : > { %7375 = vmatpush1.bf16.msra.mxu0 %v8628_v39  ;;  %7703 = vmatpush1.bf16.msra.mxu1 %v8630_v63  ;;  %v1011_v39 = vld [vmem:[%s9623_s22 + $0x14b8] sm:$0xff]  ;;  %v8684_v63 = vcombine.low %v998_v21, %v1002_v22  ;;  %v1058_v21 = vld [vmem:[%s9623_s22 + $0x1630] sm:$0xff] }
 0x3a1   : > { %7376 = vmatprep.subr.bf16.mxu0 %v8637_v35  ;;  %7704 = vmatprep.subr.bf16.mxu1 %v8639_v12  ;;  %v8686_v35 = vcombine.low %v999_v29, %v1003_v13  ;;  %v8693_v12 = vcombine.high %v1006_v32, %v1010_v34  ;;  %v8695_v36 = vcombine.high %v1007_v33, %v1011_v39  ;;  %v1055_v22 = vld [vmem:[%s9623_s22 + $0x1618] sm:$0xff] }
 0x3a2   : > { %v1059_v29 = vld [vmem:[%s9623_s22 + $0x1638] sm:$0xff] }
 0x3a4   : > { %7377 = vmatpush1.bf16.msra.mxu0 %v8636_v42  ;;  %7705 = vmatpush1.bf16.msra.mxu1 %v8638_v43  ;;  %v1019_v42 = vld [vmem:[%s9623_s22 + $0x14f8] sm:$0xff]  ;;  %v8694_v43 = vcombine.low %v1007_v33, %v1011_v39 }
 0x3a5   : > { %7378 = vmatprep.subr.bf16.mxu0 %v8645_v45  ;;  %7706 = vmatprep.subr.bf16.mxu1 %v8647_v46  ;;  %v8701_v45 = vcombine.high %v1014_v37, %v1018_v28  ;;  %v8703_v46 = vcombine.high %v1015_v55, %v1019_v42  ;;  %v1067_v33 = vld [vmem:[%s9623_s22 + $0x1678] sm:$0xff] }
 0x3a8   : > { %7379 = vmatpush1.bf16.msra.mxu0 %v8644_v50  ;;  %7707 = vmatpush1.bf16.msra.mxu1 %v8646_v52  ;;  %v8700_v50 = vcombine.low %v1014_v37, %v1018_v28  ;;  %v8709_v52 = vcombine.high %v1022_v47, %v1026_v48  ;;  %v1074_v37 = vld [vmem:[%s9623_s22 + $0x16b0] sm:$0xff]  ;;  %v1071_v28 = vld [vmem:[%s9623_s22 + $0x1698] sm:$0xff] }
 0x3a9   : > { %7380 = vmatprep.subr.bf16.mxu0 %v8653_v10  ;;  %7708 = vmatprep.subr.bf16.mxu1 %v8655_v54  ;;  %v8711_v10 = vcombine.high %v1023_v49, %v1027_v9  ;;  %v1030_v54 = vld [vmem:[%s9623_s22 + $0x1550] sm:$0xff]  ;;  %v1079_v48 = vld [vmem:[%s9623_s22 + $0x16d8] sm:$0xff] }
 0x3aa   : > { %v8716_v4 = vcombine.low %v1030_v54, %v1034_v23  ;;  %v1082_v47 = vld [vmem:[%s9623_s22 + $0x16f0] sm:$0xff] }
 0x3ac   : > { %7381 = vmatpush1.bf16.msra.mxu0 %v8652_v58  ;;  %7709 = vmatpush1.bf16.msra.mxu1 %v8654_v60  ;;  %v8710_v58 = vcombine.low %v1023_v49, %v1027_v9  ;;  %v8717_v60 = vcombine.high %v1030_v54, %v1034_v23  ;;  %v1083_v49 = vld [vmem:[%s9623_s22 + $0x16f8] sm:$0xff]  ;;  %v1090_v54 = vld [vmem:[%s9623_s22 + $0x1730] sm:$0xff] }
 0x3ad   : > { %7382 = vmatprep.subr.bf16.mxu0 %v8661_v61  ;;  %7710 = vmatprep.subr.bf16.mxu1 %v8663_v62  ;;  %v8719_v61 = vcombine.high %v1031_v41, %v1035_v56  ;;  %v1038_v62 = vld [vmem:[%s9623_s22 + $0x1590] sm:$0xff]  ;;  %v1087_v23 = vld [vmem:[%s9623_s22 + $0x1718] sm:$0xff] }
 0x3ae   : > { %v8724_v15 = vcombine.low %v1038_v62, %v1042_v1 }
 0x3b0   : > { %7383 = vmatpush1.bf16.msra.mxu0 %v8660_v5  ;;  %7711 = vmatpush1.bf16.msra.mxu1 %v8662_v6  ;;  %v8718_v5 = vcombine.low %v1031_v41, %v1035_v56  ;;  %v8725_v6 = vcombine.high %v1038_v62, %v1042_v1  ;;  %v1091_v41 = vld [vmem:[%s9623_s22 + $0x1738] sm:$0xff]  ;;  %v1098_v62 = vld [vmem:[%s9623_s22 + $0x1770] sm:$0xff] }
 0x3b1   : > { %7384 = vmatprep.subr.bf16.mxu0 %v8669_v7  ;;  %7712 = vmatprep.subr.bf16.mxu1 %v8671_v8  ;;  %v8727_v7 = vcombine.high %v1039_v3, %v1043_v51  ;;  %v1046_v8 = vld [vmem:[%s9623_s22 + $0x15d0] sm:$0xff]  ;;  %v1095_v1 = vld [vmem:[%s9623_s22 + $0x1758] sm:$0xff] }
 0x3b2   : > { %v8732_v13 = vcombine.low %v1046_v8, %v1050_v11 }
 0x3b4   : > { %7385 = vmatpush1.bf16.msra.mxu0 %v8668_v59  ;;  %7713 = vmatpush1.bf16.msra.mxu1 %v8670_v18  ;;  %v8726_v59 = vcombine.low %v1039_v3, %v1043_v51  ;;  %v8733_v18 = vcombine.high %v1046_v8, %v1050_v11  ;;  %v1099_v3 = vld [vmem:[%s9623_s22 + $0x1778] sm:$0xff]  ;;  %v1106_v8 = vld [vmem:[%s9623_s22 + $0x17b0] sm:$0xff] }
 0x3b5   : > { %7395 = vmatprep.subr.bf16.mxu0 %v8677_v25  ;;  %7723 = vmatprep.subr.bf16.mxu1 %v8679_v20  ;;  %v8735_v25 = vcombine.high %v1047_v19, %v1051_v14  ;;  %v1054_v20 = vld [vmem:[%s9623_s22 + $0x1610] sm:$0xff]  ;;  %v1103_v11 = vld [vmem:[%s9623_s22 + $0x1798] sm:$0xff] }
 0x3b6   : > { %v8740_v39 = vcombine.low %v1054_v20, %v1058_v21 }
 0x3b7   : > { %7387 = vmatmul.mubr.bf16.vlgmr.msra.gmra.mrb[4].mxu0 %v10051_v0  ;;  %7715 = vmatmul.mubr.bf16.vlgmr.msra.gmra.mrb[4].mxu1 %v10051_v0  ;;  %v8692_v0 = vcombine.low %v1006_v32, %v1010_v34  ;;  %v1066_v32 = vld [vmem:[%s9623_s22 + $0x1670] sm:$0xff]  ;;  %v1063_v34 = vld [vmem:[%s9623_s22 + $0x1658] sm:$0xff] }
 0x3b8   : > { %7396 = vmatpush1.bf16.msra.mxu0 %v8676_v2  ;;  %7724 = vmatpush1.bf16.msra.mxu1 %v8678_v24  ;;  %v8734_v2 = vcombine.low %v1047_v19, %v1051_v14  ;;  %v8741_v24 = vcombine.high %v1054_v20, %v1058_v21  ;;  %v1107_v19 = vld [vmem:[%s9623_s22 + $0x17b8] sm:$0xff]  ;;  %v1114_v20 = vld [vmem:[%s9623_s22 + $0x17f0] sm:$0xff] }
 0x3b9   : > { %7397 = vmatprep.subr.bf16.mxu0 %v8685_v27  ;;  %7725 = vmatprep.subr.bf16.mxu1 %v8687_v30  ;;  %v8743_v27 = vcombine.high %v1055_v22, %v1059_v29  ;;  %v1062_v30 = vld [vmem:[%s9623_s22 + $0x1650] sm:$0xff]  ;;  %v1111_v21 = vld [vmem:[%s9623_s22 + $0x17d8] sm:$0xff] }
 0x3ba   : > { %7427 = vmatprep.mubr.bf16.mxu0 %v10057_v31  ;;  %7755 = vmatprep.mubr.bf16.mxu1 %v10057_v31  ;;  %v8702_v31 = vcombine.low %v1015_v55, %v1019_v42  ;;  %v1075_v55 = vld [vmem:[%s9623_s22 + $0x16b8] sm:$0xff]  ;;  %v8748_v42 = vcombine.low %v1062_v30, %v1066_v32 }
 0x3bc   : > { %7398 = vmatpush1.bf16.msra.mxu0 %v8684_v63  ;;  %7726 = vmatpush1.bf16.msra.mxu1 %v8686_v35  ;;  %v8742_v63 = vcombine.low %v1055_v22, %v1059_v29  ;;  %v8749_v35 = vcombine.high %v1062_v30, %v1066_v32  ;;  %v1115_v22 = vld [vmem:[%s9623_s22 + $0x17f8] sm:$0xff]  ;;  %v1122_v30 = vld [vmem:[%s9623_s22 + $0x1830] sm:$0xff] }
 0x3bd   : > { %7399 = vmatprep.subr.bf16.mxu0 %v8693_v12  ;;  %7727 = vmatprep.subr.bf16.mxu1 %v8695_v36  ;;  %v8751_v12 = vcombine.high %v1063_v34, %v1067_v33  ;;  %v1070_v36 = vld [vmem:[%s9623_s22 + $0x1690] sm:$0xff]  ;;  %v1119_v32 = vld [vmem:[%s9623_s22 + $0x1818] sm:$0xff] }
 0x3be   : > { %v8756_v9 = vcombine.low %v1070_v36, %v1074_v37 }
 0x3c0   : > { %7400 = vmatpush1.bf16.msra.mxu0 %v8692_v0  ;;  %7728 = vmatpush1.bf16.msra.mxu1 %v8694_v43  ;;  %v8750_v0 = vcombine.low %v1063_v34, %v1067_v33  ;;  %v8757_v43 = vcombine.high %v1070_v36, %v1074_v37  ;;  %v1123_v34 = vld [vmem:[%s9623_s22 + $0x1838] sm:$0xff]  ;;  %v1130_v36 = vld [vmem:[%s9623_s22 + $0x1870] sm:$0xff] }
 0x3c1   : > { %7401 = vmatprep.subr.bf16.mxu0 %v8701_v45  ;;  %7729 = vmatprep.subr.bf16.mxu1 %v8703_v46  ;;  %v8759_v45 = vcombine.high %v1071_v28, %v1075_v55  ;;  %v1078_v46 = vld [vmem:[%s9623_s22 + $0x16d0] sm:$0xff]  ;;  %v1127_v37 = vld [vmem:[%s9623_s22 + $0x1858] sm:$0xff] }
 0x3c2   : > { %v8764_v56 = vcombine.low %v1078_v46, %v1082_v47 }
 0x3c4   : > { %7402 = vmatpush1.bf16.msra.mxu0 %v8700_v50  ;;  %7730 = vmatpush1.bf16.msra.mxu1 %v8702_v31  ;;  %v8758_v50 = vcombine.low %v1071_v28, %v1075_v55  ;;  %v8765_v31 = vcombine.high %v1078_v46, %v1082_v47  ;;  %v1131_v28 = vld [vmem:[%s9623_s22 + $0x1878] sm:$0xff]  ;;  %v1138_v46 = vld [vmem:[%s9623_s22 + $0x18b0] sm:$0xff] }
 0x3c5   : > { %7403 = vmatprep.subr.bf16.mxu0 %v8709_v52  ;;  %7731 = vmatprep.subr.bf16.mxu1 %v8711_v10  ;;  %v8767_v52 = vcombine.high %v1079_v48, %v1083_v49  ;;  %v1086_v10 = vld [vmem:[%s9623_s22 + $0x1710] sm:$0xff]  ;;  %v1135_v47 = vld [vmem:[%s9623_s22 + $0x1898] sm:$0xff] }
 0x3c6   : > { %v8772_v51 = vcombine.low %v1086_v10, %v1090_v54 }
 0x3c8   : > { %7404 = vmatpush1.bf16.msra.mxu0 %v8708_v57  ;;  %7732 = vmatpush1.bf16.msra.mxu1 %v8710_v58  ;;  %v8766_v57 = vcombine.low %v1079_v48, %v1083_v49  ;;  %v8773_v58 = vcombine.high %v1086_v10, %v1090_v54  ;;  %v1139_v48 = vld [vmem:[%s9623_s22 + $0x18b8] sm:$0xff]  ;;  %v1146_v10 = vld [vmem:[%s9623_s22 + $0x18f0] sm:$0xff] }
 0x3c9   : > { %7405 = vmatprep.subr.bf16.mxu0 %v8717_v60  ;;  %7733 = vmatprep.subr.bf16.mxu1 %v8719_v61  ;;  %v8775_v60 = vcombine.high %v1087_v23, %v1091_v41  ;;  %v1094_v61 = vld [vmem:[%s9623_s22 + $0x1750] sm:$0xff]  ;;  %v1143_v54 = vld [vmem:[%s9623_s22 + $0x18d8] sm:$0xff] }
 0x3ca   : > { %v8780_v14 = vcombine.low %v1094_v61, %v1098_v62 }
 0x3cc   : > { %7406 = vmatpush1.bf16.msra.mxu0 %v8716_v4  ;;  %7734 = vmatpush1.bf16.msra.mxu1 %v8718_v5  ;;  %v8774_v4 = vcombine.low %v1087_v23, %v1091_v41  ;;  %v8781_v5 = vcombine.high %v1094_v61, %v1098_v62  ;;  %v1147_v23 = vld [vmem:[%s9623_s22 + $0x18f8] sm:$0xff]  ;;  %v8822_v41 = vcombine.low %v1135_v47, %v1139_v48 }
 0x3cd   : > { %7407 = vmatprep.subr.bf16.mxu0 %v8725_v6  ;;  %7735 = vmatprep.subr.bf16.mxu1 %v8727_v7  ;;  %v8783_v6 = vcombine.high %v1095_v1, %v1099_v3  ;;  %v1102_v7 = vld [vmem:[%s9623_s22 + $0x1790] sm:$0xff]  ;;  %v1151_v61 = vld [vmem:[%s9623_s22 + $0x1918] sm:$0xff] }
 0x3ce   : > { %v8788_v29 = vcombine.low %v1102_v7, %v1106_v8  ;;  %v1155_v62 = vld [vmem:[%s9623_s22 + $0x1938] sm:$0xff] }
 0x3d0   : > { %7408 = vmatpush1.bf16.msra.mxu0 %v8724_v15  ;;  %7736 = vmatpush1.bf16.msra.mxu1 %v8726_v59  ;;  %v8782_v15 = vcombine.low %v1095_v1, %v1099_v3  ;;  %v8789_v59 = vcombine.high %v1102_v7, %v1106_v8  ;;  %v1163_v7 = vld [vmem:[%s9623_s22 + $0x1978] sm:$0xff] }
 0x3d1   : > { %7409 = vmatprep.subr.bf16.mxu0 %v8733_v18  ;;  %7737 = vmatprep.subr.bf16.mxu1 %v8735_v25  ;;  %v8791_v18 = vcombine.high %v1103_v11, %v1107_v19  ;;  %v1110_v25 = vld [vmem:[%s9623_s22 + $0x17d0] sm:$0xff] }
 0x3d2   : > { %v8796_v33 = vcombine.low %v1110_v25, %v1114_v20 }
 0x3d4   : > { %7410 = vmatpush1.bf16.msra.mxu0 %v8732_v13  ;;  %7738 = vmatpush1.bf16.msra.mxu1 %v8734_v2  ;;  %v8790_v13 = vcombine.low %v1103_v11, %v1107_v19  ;;  %v8797_v2 = vcombine.high %v1110_v25, %v1114_v20  ;;  %v8838_v11 = vcombine.low %v1151_v61, %v1155_v62  ;;  %v1171_v25 = vld [vmem:[%s9623_s22 + $0x19b8] sm:$0xff] }
 0x3d5   : > { %7411 = vmatprep.subr.bf16.mxu0 %v8741_v24  ;;  %7739 = vmatprep.subr.bf16.mxu1 %v8743_v27  ;;  %v8799_v24 = vcombine.high %v1111_v21, %v1115_v22  ;;  %v1118_v27 = vld [vmem:[%s9623_s22 + $0x1810] sm:$0xff] }
 0x3d6   : > { %v8804_v55 = vcombine.low %v1118_v27, %v1122_v30 }
 0x3d8   : > { %7412 = vmatpush1.bf16.msra.mxu0 %v8740_v39  ;;  %7740 = vmatpush1.bf16.msra.mxu1 %v8742_v63  ;;  %v8798_v39 = vcombine.low %v1111_v21, %v1115_v22  ;;  %v8805_v63 = vcombine.high %v1118_v27, %v1122_v30  ;;  %v1179_v27 = vld [vmem:[%s9623_s22 + $0x19f8] sm:$0xff] }
 0x3d9   : > { %7413 = vmatprep.subr.bf16.mxu0 %v8749_v35  ;;  %7741 = vmatprep.subr.bf16.mxu1 %v8751_v12  ;;  %v8807_v35 = vcombine.high %v1119_v32, %v1123_v34  ;;  %v1126_v12 = vld [vmem:[%s9623_s22 + $0x1850] sm:$0xff] }
 0x3da   : > { %v8812_v49 = vcombine.low %v1126_v12, %v1130_v36 }
 0x3dc   : > { %7414 = vmatpush1.bf16.msra.mxu0 %v8748_v42  ;;  %7742 = vmatpush1.bf16.msra.mxu1 %v8750_v0  ;;  %v8806_v42 = vcombine.low %v1119_v32, %v1123_v34  ;;  %v8813_v0 = vcombine.high %v1126_v12, %v1130_v36  ;;  %v1187_v12 = vld [vmem:[%s9623_s22 + $0x1a38] sm:$0xff] }
 0x3dd   : > { %7415 = vmatprep.subr.bf16.mxu0 %v8757_v43  ;;  %7743 = vmatprep.subr.bf16.mxu1 %v8759_v45  ;;  %v8815_v43 = vcombine.high %v1127_v37, %v1131_v28  ;;  %v1134_v45 = vld [vmem:[%s9623_s22 + $0x1890] sm:$0xff] }
 0x3e0   : > { %7416 = vmatpush1.bf16.msra.mxu0 %v8756_v9  ;;  %7744 = vmatpush1.bf16.msra.mxu1 %v8758_v50  ;;  %v8814_v9 = vcombine.low %v1127_v37, %v1131_v28  ;;  %v8821_v50 = vcombine.high %v1134_v45, %v1138_v46 }
 0x3e1   : > { %7417 = vmatprep.subr.bf16.mxu0 %v8765_v31  ;;  %7745 = vmatprep.subr.bf16.mxu1 %v8767_v52  ;;  %v8823_v31 = vcombine.high %v1135_v47, %v1139_v48  ;;  %v1142_v52 = vld [vmem:[%s9623_s22 + $0x18d0] sm:$0xff] }
 0x3e2   : > { %v8828_v1 = vcombine.low %v1142_v52, %v1146_v10 }
 0x3e4   : > { %7418 = vmatpush1.bf16.msra.mxu0 %v8764_v56  ;;  %7746 = vmatpush1.bf16.msra.mxu1 %v8766_v57  ;;  %v8829_v56 = vcombine.high %v1142_v52, %v1146_v10  ;;  %v8831_v57 = vcombine.high %v1143_v54, %v1147_v23  ;;  %v1203_v52 = vld [vmem:[%s9623_s22 + $0x1ab8] sm:$0xff] }
 0x3e5   : > { %7419 = vmatprep.subr.bf16.mxu0 %v8773_v58  ;;  %7747 = vmatprep.subr.bf16.mxu1 %v8775_v60  ;;  %v1150_v58 = vld [vmem:[%s9623_s22 + $0x1910] sm:$0xff] }
 0x3e6   : > { %v1154_v60 = vld [vmem:[%s9623_s22 + $0x1930] sm:$0xff] }
 0x3e7   : > { %v8837_v3 = vcombine.high %v1150_v58, %v1154_v60  ;;  %v8836_v8 = vcombine.low %v1150_v58, %v1154_v60  ;;  %v1211_v58 = vld [vmem:[%s9623_s22 + $0x1af8] sm:$0xff] }
 0x3e8   : > { %7420 = vmatpush1.bf16.msra.mxu0 %v8772_v51  ;;  %7748 = vmatpush1.bf16.msra.mxu1 %v8774_v4  ;;  %v8839_v51 = vcombine.high %v1151_v61, %v1155_v62  ;;  %v1158_v4 = vld [vmem:[%s9623_s22 + $0x1950] sm:$0xff] }
 0x3e9   : > { %7421 = vmatprep.subr.bf16.mxu0 %v8781_v5  ;;  %7749 = vmatprep.subr.bf16.mxu1 %v8783_v6  ;;  %v1162_v5 = vld [vmem:[%s9623_s22 + $0x1970] sm:$0xff]  ;;  %v1159_v6 = vld [vmem:[%s9623_s22 + $0x1958] sm:$0xff] }
 0x3ea   : > { %v8845_v19 = vcombine.high %v1158_v4, %v1162_v5  ;;  %v8844_v20 = vcombine.low %v1158_v4, %v1162_v5  ;;  %v8846_v21 = vcombine.low %v1159_v6, %v1163_v7  ;;  %v1219_v4 = vld [vmem:[%s9623_s22 + $0x1b38] sm:$0xff] }
 0x3ec   : > { %7422 = vmatpush1.bf16.msra.mxu0 %v8780_v14  ;;  %7750 = vmatpush1.bf16.msra.mxu1 %v8782_v15  ;;  %v8847_v14 = vcombine.high %v1159_v6, %v1163_v7  ;;  %v1166_v15 = vld [vmem:[%s9623_s22 + $0x1990] sm:$0xff] }
 0x3ed   : > { %7423 = vmatprep.subr.bf16.mxu0 %v8789_v59  ;;  %7751 = vmatprep.subr.bf16.mxu1 %v8791_v18  ;;  %v1170_v59 = vld [vmem:[%s9623_s22 + $0x19b0] sm:$0xff]  ;;  %v1167_v18 = vld [vmem:[%s9623_s22 + $0x1998] sm:$0xff] }
 0x3ee   : > { %v8853_v22 = vcombine.high %v1166_v15, %v1170_v59  ;;  %v8852_v30 = vcombine.low %v1166_v15, %v1170_v59  ;;  %v8854_v32 = vcombine.low %v1167_v18, %v1171_v25  ;;  %v1227_v15 = vld [vmem:[%s9623_s22 + $0x1b78] sm:$0xff] }
 0x3f0   : > { %7424 = vmatpush1.bf16.msra.mxu0 %v8788_v29  ;;  %7752 = vmatpush1.bf16.msra.mxu1 %v8790_v13  ;;  %v8855_v29 = vcombine.high %v1167_v18, %v1171_v25  ;;  %v1174_v13 = vld [vmem:[%s9623_s22 + $0x19d0] sm:$0xff] }
 0x3f1   : > { %7425 = vmatprep.subr.bf16.mxu0 %v8797_v2  ;;  %7753 = vmatprep.subr.bf16.mxu1 %v8799_v24  ;;  %v1178_v2 = vld [vmem:[%s9623_s22 + $0x19f0] sm:$0xff]  ;;  %v1175_v24 = vld [vmem:[%s9623_s22 + $0x19d8] sm:$0xff] }
 0x3f2   : > { %v8861_v34 = vcombine.high %v1174_v13, %v1178_v2  ;;  %v8860_v36 = vcombine.low %v1174_v13, %v1178_v2  ;;  %v8862_v37 = vcombine.low %v1175_v24, %v1179_v27  ;;  %v1235_v13 = vld [vmem:[%s9623_s22 + $0x1bb8] sm:$0xff] }
 0x3f4   : > { %7426 = vmatpush1.bf16.msra.mxu0 %v8796_v33  ;;  %7754 = vmatpush1.bf16.msra.mxu1 %v8798_v39  ;;  %v8863_v33 = vcombine.high %v1175_v24, %v1179_v27  ;;  %v1182_v39 = vld [vmem:[%s9623_s22 + $0x1a10] sm:$0xff] }
 0x3f5   : > { %7436 = vmatprep.subr.bf16.mxu0 %v8805_v63  ;;  %7764 = vmatprep.subr.bf16.mxu1 %v8807_v35  ;;  %v1186_v63 = vld [vmem:[%s9623_s22 + $0x1a30] sm:$0xff]  ;;  %v1183_v35 = vld [vmem:[%s9623_s22 + $0x1a18] sm:$0xff] }
 0x3f6   : > { %v8869_v28 = vcombine.high %v1182_v39, %v1186_v63  ;;  %v8870_v47 = vcombine.low %v1183_v35, %v1187_v12 }
 0x3f7   : > { %7428 = vmatmul.mubr.bf16.vlgmr.msra.gmra.mrb[4].mxu0 %v10133_v40  ;;  %7756 = vmatmul.mubr.bf16.vlgmr.msra.gmra.mrb[4].mxu1 %v10133_v40  ;;  %v8820_v40 = vcombine.low %v1134_v45, %v1138_v46  ;;  %v1195_v45 = vld [vmem:[%s9623_s22 + $0x1a78] sm:$0xff]  ;;  %v8868_v46 = vcombine.low %v1182_v39, %v1186_v63 }
 0x3f8   : > { %7437 = vmatpush1.bf16.msra.mxu0 %v8804_v55  ;;  %7765 = vmatpush1.bf16.msra.mxu1 %v8806_v42  ;;  %v8871_v55 = vcombine.high %v1183_v35, %v1187_v12  ;;  %v1190_v42 = vld [vmem:[%s9623_s22 + $0x1a50] sm:$0xff]  ;;  %v1243_v39 = vld [vmem:[%s9623_s22 + $0x1bf8] sm:$0xff] }
 0x3f9   : > { %7438 = vmatprep.subr.bf16.mxu0 %v8813_v0  ;;  %7766 = vmatprep.subr.bf16.mxu1 %v8815_v43  ;;  %v1194_v0 = vld [vmem:[%s9623_s22 + $0x1a70] sm:$0xff]  ;;  %v1191_v43 = vld [vmem:[%s9623_s22 + $0x1a58] sm:$0xff] }
 0x3fa   : > { %7468 = vmatprep.mubr.bf16.mxu0 %v10139_v16  ;;  %7796 = vmatprep.mubr.bf16.mxu1 %v10139_v16  ;;  %v8830_v16 = vcombine.low %v1143_v54, %v1147_v23  ;;  %v8877_v48 = vcombine.high %v1190_v42, %v1194_v0  ;;  %v8876_v10 = vcombine.low %v1190_v42, %v1194_v0  ;;  %v1251_v42 = vld [vmem:[%s9623_s22 + $0x1c38] sm:$0xff] }
 0x3fb   : > { %v8878_v54 = vcombine.low %v1191_v43, %v1195_v45 }
 0x3fc   : > { %7439 = vmatpush1.bf16.msra.mxu0 %v8812_v49  ;;  %7767 = vmatpush1.bf16.msra.mxu1 %v8814_v9  ;;  %v8879_v49 = vcombine.high %v1191_v43, %v1195_v45  ;;  %v1198_v9 = vld [vmem:[%s9623_s22 + $0x1a90] sm:$0xff] }
 0x3fd   : > { %7440 = vmatprep.subr.bf16.mxu0 %v8821_v50  ;;  %7768 = vmatprep.subr.bf16.mxu1 %v8823_v31  ;;  %v1202_v50 = vld [vmem:[%s9623_s22 + $0x1ab0] sm:$0xff]  ;;  %v1199_v31 = vld [vmem:[%s9623_s22 + $0x1a98] sm:$0xff] }
 0x3fe   : > { %v8885_v23 = vcombine.high %v1198_v9, %v1202_v50  ;;  %v8884_v60 = vcombine.low %v1198_v9, %v1202_v50  ;;  %v8886_v61 = vcombine.low %v1199_v31, %v1203_v52  ;;  %v1259_v9 = vld [vmem:[%s9623_s22 + $0x1c78] sm:$0xff] }
 0x400   : > { %7441 = vmatpush1.bf16.msra.mxu0 %v8820_v40  ;;  %7769 = vmatpush1.bf16.msra.mxu1 %v8822_v41  ;;  %v8887_v40 = vcombine.high %v1199_v31, %v1203_v52  ;;  %v1206_v41 = vld [vmem:[%s9623_s22 + $0x1ad0] sm:$0xff] }
 0x401   : > { %7442 = vmatprep.subr.bf16.mxu0 %v8829_v56  ;;  %7770 = vmatprep.subr.bf16.mxu1 %v8831_v57  ;;  %v1210_v56 = vld [vmem:[%s9623_s22 + $0x1af0] sm:$0xff]  ;;  %v1207_v57 = vld [vmem:[%s9623_s22 + $0x1ad8] sm:$0xff] }
 0x402   : > { %v8893_v62 = vcombine.high %v1206_v41, %v1210_v56  ;;  %v8892_v5 = vcombine.low %v1206_v41, %v1210_v56  ;;  %v8894_v6 = vcombine.low %v1207_v57, %v1211_v58  ;;  %v1267_v41 = vld [vmem:[%s9623_s22 + $0x1cb8] sm:$0xff] }
 0x404   : > { %7443 = vmatpush1.bf16.msra.mxu0 %v8828_v1  ;;  %7771 = vmatpush1.bf16.msra.mxu1 %v8830_v16  ;;  %v8895_v1 = vcombine.high %v1207_v57, %v1211_v58  ;;  %v1214_v16 = vld [vmem:[%s9623_s22 + $0x1b10] sm:$0xff] }
 0x405   : > { %7444 = vmatprep.subr.bf16.mxu0 %v8837_v3  ;;  %7772 = vmatprep.subr.bf16.mxu1 %v8839_v51  ;;  %v1218_v3 = vld [vmem:[%s9623_s22 + $0x1b30] sm:$0xff]  ;;  %v1215_v51 = vld [vmem:[%s9623_s22 + $0x1b18] sm:$0xff] }
 0x406   : > { %v8901_v7 = vcombine.high %v1214_v16, %v1218_v3  ;;  %v8900_v59 = vcombine.low %v1214_v16, %v1218_v3  ;;  %v8902_v18 = vcombine.low %v1215_v51, %v1219_v4  ;;  %v1275_v16 = vld [vmem:[%s9623_s22 + $0x1cf8] sm:$0xff] }
 0x408   : > { %7445 = vmatpush1.bf16.msra.mxu0 %v8836_v8  ;;  %7773 = vmatpush1.bf16.msra.mxu1 %v8838_v11  ;;  %v8903_v8 = vcombine.high %v1215_v51, %v1219_v4  ;;  %v1222_v11 = vld [vmem:[%s9623_s22 + $0x1b50] sm:$0xff] }
 0x409   : > { %7446 = vmatprep.subr.bf16.mxu0 %v8845_v19  ;;  %7774 = vmatprep.subr.bf16.mxu1 %v8847_v14  ;;  %v1226_v19 = vld [vmem:[%s9623_s22 + $0x1b70] sm:$0xff]  ;;  %v1223_v14 = vld [vmem:[%s9623_s22 + $0x1b58] sm:$0xff] }
 0x40a   : > { %v8909_v25 = vcombine.high %v1222_v11, %v1226_v19  ;;  %v8908_v2 = vcombine.low %v1222_v11, %v1226_v19  ;;  %v8910_v24 = vcombine.low %v1223_v14, %v1227_v15 }
 0x40c   : > { %7447 = vmatpush1.bf16.msra.mxu0 %v8844_v20  ;;  %7775 = vmatpush1.bf16.msra.mxu1 %v8846_v21  ;;  %v8911_v20 = vcombine.high %v1223_v14, %v1227_v15  ;;  %v1230_v21 = vld [vmem:[%s9623_s22 + $0x1b90] sm:$0xff] }
 0x40d   : > { %7448 = vmatprep.subr.bf16.mxu0 %v8853_v22  ;;  %7776 = vmatprep.subr.bf16.mxu1 %v8855_v29  ;;  %v1234_v22 = vld [vmem:[%s9623_s22 + $0x1bb0] sm:$0xff]  ;;  %v1231_v29 = vld [vmem:[%s9623_s22 + $0x1b98] sm:$0xff] }
 0x40e   : > { %v8917_v27 = vcombine.high %v1230_v21, %v1234_v22  ;;  %v8916_v63 = vcombine.low %v1230_v21, %v1234_v22  ;;  %v8918_v35 = vcombine.low %v1231_v29, %v1235_v13  ;;  %v1286_v15 = vld [vmem:[%s9623_s22 + $0x1d50] sm:$0xff] }
 0x410   : > { %7449 = vmatpush1.bf16.msra.mxu0 %v8852_v30  ;;  %7777 = vmatpush1.bf16.msra.mxu1 %v8854_v32  ;;  %v8919_v30 = vcombine.high %v1231_v29, %v1235_v13  ;;  %v1238_v32 = vld [vmem:[%s9623_s22 + $0x1bd0] sm:$0xff] }
 0x411   : > { %7450 = vmatprep.subr.bf16.mxu0 %v8861_v34  ;;  %7778 = vmatprep.subr.bf16.mxu1 %v8863_v33  ;;  %v1242_v34 = vld [vmem:[%s9623_s22 + $0x1bf0] sm:$0xff]  ;;  %v1239_v33 = vld [vmem:[%s9623_s22 + $0x1bd8] sm:$0xff] }
 0x412   : > { %v8925_v12 = vcombine.high %v1238_v32, %v1242_v34  ;;  %v8924_v0 = vcombine.low %v1238_v32, %v1242_v34  ;;  %v8926_v43 = vcombine.low %v1239_v33, %v1243_v39  ;;  %v1294_v13 = vld [vmem:[%s9623_s22 + $0x1d90] sm:$0xff] }
 0x414   : > { %7451 = vmatpush1.bf16.msra.mxu0 %v8860_v36  ;;  %7779 = vmatpush1.bf16.msra.mxu1 %v8862_v37  ;;  %v8927_v36 = vcombine.high %v1239_v33, %v1243_v39  ;;  %v1246_v37 = vld [vmem:[%s9623_s22 + $0x1c10] sm:$0xff] }
 0x415   : > { %7452 = vmatprep.subr.bf16.mxu0 %v8869_v28  ;;  %7780 = vmatprep.subr.bf16.mxu1 %v8871_v55  ;;  %v1250_v28 = vld [vmem:[%s9623_s22 + $0x1c30] sm:$0xff]  ;;  %v1247_v55 = vld [vmem:[%s9623_s22 + $0x1c18] sm:$0xff] }
 0x416   : > { %v8933_v45 = vcombine.high %v1246_v37, %v1250_v28  ;;  %v8932_v50 = vcombine.low %v1246_v37, %v1250_v28  ;;  %v8934_v31 = vcombine.low %v1247_v55, %v1251_v42  ;;  %v1302_v39 = vld [vmem:[%s9623_s22 + $0x1dd0] sm:$0xff] }
 0x418   : > { %7453 = vmatpush1.bf16.msra.mxu0 %v8868_v46  ;;  %7781 = vmatpush1.bf16.msra.mxu1 %v8870_v47  ;;  %v8935_v46 = vcombine.high %v1247_v55, %v1251_v42  ;;  %v1254_v47 = vld [vmem:[%s9623_s22 + $0x1c50] sm:$0xff] }
 0x419   : > { %7454 = vmatprep.subr.bf16.mxu0 %v8877_v48  ;;  %7782 = vmatprep.subr.bf16.mxu1 %v8879_v49  ;;  %v1258_v48 = vld [vmem:[%s9623_s22 + $0x1c70] sm:$0xff]  ;;  %v1255_v49 = vld [vmem:[%s9623_s22 + $0x1c58] sm:$0xff] }
 0x41a   : > { %v8941_v52 = vcombine.high %v1254_v47, %v1258_v48  ;;  %v8940_v56 = vcombine.low %v1254_v47, %v1258_v48  ;;  %v8942_v57 = vcombine.low %v1255_v49, %v1259_v9  ;;  %v1310_v42 = vld [vmem:[%s9623_s22 + $0x1e10] sm:$0xff] }
 0x41c   : > { %7455 = vmatpush1.bf16.msra.mxu0 %v8876_v10  ;;  %7783 = vmatpush1.bf16.msra.mxu1 %v8878_v54  ;;  %v8943_v10 = vcombine.high %v1255_v49, %v1259_v9  ;;  %v1262_v54 = vld [vmem:[%s9623_s22 + $0x1c90] sm:$0xff] }
 0x41d   : > { %7456 = vmatprep.subr.bf16.mxu0 %v8885_v23  ;;  %7784 = vmatprep.subr.bf16.mxu1 %v8887_v40  ;;  %v1266_v23 = vld [vmem:[%s9623_s22 + $0x1cb0] sm:$0xff]  ;;  %v1263_v40 = vld [vmem:[%s9623_s22 + $0x1c98] sm:$0xff] }
 0x41e   : > { %v8949_v58 = vcombine.high %v1262_v54, %v1266_v23  ;;  %v8950_v3 = vcombine.low %v1263_v40, %v1267_v41  ;;  %v1318_v9 = vld [vmem:[%s9623_s22 + $0x1e50] sm:$0xff] }
 0x420   : > { %7457 = vmatpush1.bf16.msra.mxu0 %v8884_v60  ;;  %7785 = vmatpush1.bf16.msra.mxu1 %v8886_v61  ;;  %v8951_v60 = vcombine.high %v1263_v40, %v1267_v41  ;;  %v1270_v61 = vld [vmem:[%s9623_s22 + $0x1cd0] sm:$0xff] }
 0x421   : > { %7458 = vmatprep.subr.bf16.mxu0 %v8893_v62  ;;  %7786 = vmatprep.subr.bf16.mxu1 %v8895_v1  ;;  %v1274_v62 = vld [vmem:[%s9623_s22 + $0x1cf0] sm:$0xff]  ;;  %v1271_v1 = vld [vmem:[%s9623_s22 + $0x1cd8] sm:$0xff] }
 0x422   : > { %v8957_v51 = vcombine.high %v1270_v61, %v1274_v62  ;;  %v8959_v4 = vcombine.high %v1271_v1, %v1275_v16  ;;  %v8956_v11 = vcombine.low %v1270_v61, %v1274_v62  ;;  %v1326_v41 = vld [vmem:[%s9623_s22 + $0x1e90] sm:$0xff] }
 0x424   : > { %7459 = vmatpush1.bf16.msra.mxu0 %v8892_v5  ;;  %7787 = vmatpush1.bf16.msra.mxu1 %v8894_v6  ;;  %v1278_v5 = vld [vmem:[%s9623_s22 + $0x1d10] sm:$0xff] }
 0x425   : > { %7460 = vmatprep.subr.bf16.mxu0 %v8901_v7  ;;  %7788 = vmatprep.subr.bf16.mxu1 %v8903_v8  ;;  %v1282_v6 = vld [vmem:[%s9623_s22 + $0x1d30] sm:$0xff]  ;;  %v1279_v7 = vld [vmem:[%s9623_s22 + $0x1d18] sm:$0xff] }
 0x426   : > { %v1283_v8 = vld [vmem:[%s9623_s22 + $0x1d38] sm:$0xff]  ;;  %v8965_v19 = vcombine.high %v1278_v5, %v1282_v6 }
 0x427   : > { %v8967_v14 = vcombine.high %v1279_v7, %v1283_v8  ;;  %v8966_v21 = vcombine.low %v1279_v7, %v1283_v8  ;;  %v1342_v8 = vld [vmem:[%s9623_s22 + $0x1f10] sm:$0xff] }
 0x428   : > { %7461 = vmatpush1.bf16.msra.mxu0 %v8900_v59  ;;  %7789 = vmatpush1.bf16.msra.mxu1 %v8902_v18  ;;  %v1290_v59 = vld [vmem:[%s9623_s22 + $0x1d70] sm:$0xff]  ;;  %v1287_v18 = vld [vmem:[%s9623_s22 + $0x1d58] sm:$0xff] }
 0x429   : > { %7462 = vmatprep.subr.bf16.mxu0 %v8909_v25  ;;  %7790 = vmatprep.subr.bf16.mxu1 %v8911_v20  ;;  %v1291_v25 = vld [vmem:[%s9623_s22 + $0x1d78] sm:$0xff]  ;;  %v8964_v20 = vcombine.low %v1278_v5, %v1282_v6  ;;  %v8973_v22 = vcombine.high %v1286_v15, %v1290_v59 }
 0x42a   : > { %v8975_v29 = vcombine.high %v1287_v18, %v1291_v25  ;;  %v8974_v32 = vcombine.low %v1287_v18, %v1291_v25  ;;  %v1350_v25 = vld [vmem:[%s9623_s22 + $0x1f50] sm:$0xff] }
 0x42c   : > { %7463 = vmatpush1.bf16.msra.mxu0 %v8908_v2  ;;  %7791 = vmatpush1.bf16.msra.mxu1 %v8910_v24  ;;  %v1298_v2 = vld [vmem:[%s9623_s22 + $0x1db0] sm:$0xff]  ;;  %v1295_v24 = vld [vmem:[%s9623_s22 + $0x1d98] sm:$0xff] }
 0x42d   : > { %7464 = vmatprep.subr.bf16.mxu0 %v8917_v27  ;;  %7792 = vmatprep.subr.bf16.mxu1 %v8919_v30  ;;  %v1299_v27 = vld [vmem:[%s9623_s22 + $0x1db8] sm:$0xff]  ;;  %v8972_v30 = vcombine.low %v1286_v15, %v1290_v59  ;;  %v8981_v34 = vcombine.high %v1294_v13, %v1298_v2 }
 0x42e   : > { %v8983_v33 = vcombine.high %v1295_v24, %v1299_v27  ;;  %v8982_v37 = vcombine.low %v1295_v24, %v1299_v27  ;;  %v1358_v27 = vld [vmem:[%s9623_s22 + $0x1f90] sm:$0xff] }
 0x430   : > { %7465 = vmatpush1.bf16.msra.mxu0 %v8916_v63  ;;  %7793 = vmatpush1.bf16.msra.mxu1 %v8918_v35  ;;  %v1306_v63 = vld [vmem:[%s9623_s22 + $0x1df0] sm:$0xff]  ;;  %v1303_v35 = vld [vmem:[%s9623_s22 + $0x1dd8] sm:$0xff] }
 0x431   : > { %7466 = vmatprep.subr.bf16.mxu0 %v8925_v12  ;;  %7794 = vmatprep.subr.bf16.mxu1 %v8927_v36  ;;  %v1307_v12 = vld [vmem:[%s9623_s22 + $0x1df8] sm:$0xff]  ;;  %v8980_v36 = vcombine.low %v1294_v13, %v1298_v2  ;;  %v8989_v28 = vcombine.high %v1302_v39, %v1306_v63 }
 0x432   : > { %v8991_v55 = vcombine.high %v1303_v35, %v1307_v12  ;;  %v8990_v47 = vcombine.low %v1303_v35, %v1307_v12  ;;  %v1366_v12 = vld [vmem:[%s9623_s22 + $0x1fd0] sm:$0xff] }
 0x434   : > { %7467 = vmatpush1.bf16.msra.mxu0 %v8924_v0  ;;  %7795 = vmatpush1.bf16.msra.mxu1 %v8926_v43  ;;  %v1314_v0 = vld [vmem:[%s9623_s22 + $0x1e30] sm:$0xff]  ;;  %v1311_v43 = vld [vmem:[%s9623_s22 + $0x1e18] sm:$0xff] }
 0x435   : > { %7477 = vmatprep.subr.bf16.mxu0 %v8933_v45  ;;  %7805 = vmatprep.subr.bf16.mxu1 %v8935_v46  ;;  %v1315_v45 = vld [vmem:[%s9623_s22 + $0x1e38] sm:$0xff]  ;;  %v8988_v46 = vcombine.low %v1302_v39, %v1306_v63  ;;  %v8997_v48 = vcombine.high %v1310_v42, %v1314_v0 }
 0x436   : > { %v8999_v49 = vcombine.high %v1311_v43, %v1315_v45 }
 0x437   : > { %7469 = vmatmul.mubr.bf16.vlgmr.msra.gmra.mrb[4].mxu0 %v10214_v26  ;;  %7797 = vmatmul.mubr.bf16.vlgmr.msra.gmra.mrb[4].mxu1 %v10214_v26  ;;  %v8948_v26 = vcombine.low %v1262_v54, %v1266_v23  ;;  %v8998_v54 = vcombine.low %v1311_v43, %v1315_v45 }
 0x438   : > { %7478 = vmatpush1.bf16.msra.mxu0 %v8932_v50  ;;  %7806 = vmatpush1.bf16.msra.mxu1 %v8934_v31  ;;  %v1322_v50 = vld [vmem:[%s9623_s22 + $0x1e70] sm:$0xff]  ;;  %v1319_v31 = vld [vmem:[%s9623_s22 + $0x1e58] sm:$0xff] }
 0x439   : > { %7479 = vmatprep.subr.bf16.mxu0 %v8941_v52  ;;  %7807 = vmatprep.subr.bf16.mxu1 %v8943_v10  ;;  %v1323_v52 = vld [vmem:[%s9623_s22 + $0x1e78] sm:$0xff]  ;;  %v8996_v10 = vcombine.low %v1310_v42, %v1314_v0  ;;  %v9005_v23 = vcombine.high %v1318_v9, %v1322_v50 }
 0x43a   : > { %7509 = vmatprep.mubr.bf16.mxu0 %v10220_v38  ;;  %7837 = vmatprep.mubr.bf16.mxu1 %v10220_v38  ;;  %v8958_v38 = vcombine.low %v1271_v1, %v1275_v16  ;;  %v9007_v40 = vcombine.high %v1319_v31, %v1323_v52  ;;  %v9006_v61 = vcombine.low %v1319_v31, %v1323_v52  ;;  %v1334_v16 = vld [vmem:[%s9623_s22 + $0x1ed0] sm:$0xff] }
 0x43c   : > { %7480 = vmatpush1.bf16.msra.mxu0 %v8940_v56  ;;  %7808 = vmatpush1.bf16.msra.mxu1 %v8942_v57  ;;  %v1330_v56 = vld [vmem:[%s9623_s22 + $0x1eb0] sm:$0xff]  ;;  %v1327_v57 = vld [vmem:[%s9623_s22 + $0x1e98] sm:$0xff] }
 0x43d   : > { %7481 = vmatprep.subr.bf16.mxu0 %v8949_v58  ;;  %7809 = vmatprep.subr.bf16.mxu1 %v8951_v60  ;;  %v1331_v58 = vld [vmem:[%s9623_s22 + $0x1eb8] sm:$0xff]  ;;  %v9004_v60 = vcombine.low %v1318_v9, %v1322_v50  ;;  %v9013_v62 = vcombine.high %v1326_v41, %v1330_v56  ;;  %v1404_v9 = vsub.s32 7, %v9651_v44  ;;  %v9254_v50 = vld [vmem:[%s10518_s27] sm:$0xff] }
 0x43e   : > { %v9015_v1 = vcombine.high %v1327_v57, %v1331_v58  ;;  %v9014_v5 = vcombine.low %v1327_v57, %v1331_v58 }
 0x440   : > { %7482 = vmatpush1.bf16.msra.mxu0 %v8948_v26  ;;  %7810 = vmatpush1.bf16.msra.mxu1 %v8950_v3  ;;  %v1338_v26 = vld [vmem:[%s9623_s22 + $0x1ef0] sm:$0xff]  ;;  %v1335_v3 = vld [vmem:[%s9623_s22 + $0x1ed8] sm:$0xff] }
 0x441   : > { %7483 = vmatprep.subr.bf16.mxu0 %v8957_v51  ;;  %7811 = vmatprep.subr.bf16.mxu1 %v8959_v4  ;;  %v1339_v51 = vld [vmem:[%s9623_s22 + $0x1ef8] sm:$0xff]  ;;  %v9012_v4 = vcombine.low %v1326_v41, %v1330_v56  ;;  %v9021_v6 = vcombine.high %v1334_v16, %v1338_v26 }
 0x442   : > { %v9023_v7 = vcombine.high %v1335_v3, %v1339_v51  ;;  %v9022_v15 = vcombine.low %v1335_v3, %v1339_v51 }
 0x444   : > { %7484 = vmatpush1.bf16.msra.mxu0 %v8956_v11  ;;  %7812 = vmatpush1.bf16.msra.mxu1 %v8958_v38  ;;  %v1346_v11 = vld [vmem:[%s9623_s22 + $0x1f30] sm:$0xff]  ;;  %v1343_v38 = vld [vmem:[%s9623_s22 + $0x1f18] sm:$0xff] }
 0x445   : > { %7485 = vmatprep.subr.bf16.mxu0 %v8965_v19  ;;  %7813 = vmatprep.subr.bf16.mxu1 %v8967_v14  ;;  %v1347_v19 = vld [vmem:[%s9623_s22 + $0x1f38] sm:$0xff]  ;;  %v9020_v14 = vcombine.low %v1334_v16, %v1338_v26  ;;  %v9029_v59 = vcombine.high %v1342_v8, %v1346_v11 }
 0x446   : > { %v9031_v18 = vcombine.high %v1343_v38, %v1347_v19  ;;  %v9030_v13 = vcombine.low %v1343_v38, %v1347_v19 }
 0x448   : > { %7486 = vmatpush1.bf16.msra.mxu0 %v8964_v20  ;;  %7814 = vmatpush1.bf16.msra.mxu1 %v8966_v21  ;;  %v1354_v20 = vld [vmem:[%s9623_s22 + $0x1f70] sm:$0xff]  ;;  %v1351_v21 = vld [vmem:[%s9623_s22 + $0x1f58] sm:$0xff] }
 0x449   : > { %7487 = vmatprep.subr.bf16.mxu0 %v8973_v22  ;;  %7815 = vmatprep.subr.bf16.mxu1 %v8975_v29  ;;  %v1355_v22 = vld [vmem:[%s9623_s22 + $0x1f78] sm:$0xff]  ;;  %v9028_v29 = vcombine.low %v1342_v8, %v1346_v11  ;;  %v9037_v2 = vcombine.high %v1350_v25, %v1354_v20 }
 0x44a   : > { %v9039_v24 = vcombine.high %v1351_v21, %v1355_v22  ;;  %v9038_v39 = vcombine.low %v1351_v21, %v1355_v22 }
 0x44c   : > { %7488 = vmatpush1.bf16.msra.mxu0 %v8972_v30  ;;  %7816 = vmatpush1.bf16.msra.mxu1 %v8974_v32  ;;  %v1362_v30 = vld [vmem:[%s9623_s22 + $0x1fb0] sm:$0xff]  ;;  %v1359_v32 = vld [vmem:[%s9623_s22 + $0x1f98] sm:$0xff] }
 0x44d   : > { %7489 = vmatprep.subr.bf16.mxu0 %v8981_v34  ;;  %7817 = vmatprep.subr.bf16.mxu1 %v8983_v33  ;;  %v1363_v34 = vld [vmem:[%s9623_s22 + $0x1fb8] sm:$0xff]  ;;  %v9036_v33 = vcombine.low %v1350_v25, %v1354_v20  ;;  %v9045_v63 = vcombine.high %v1358_v27, %v1362_v30 }
 0x44e   : > { %v9047_v35 = vcombine.high %v1359_v32, %v1363_v34  ;;  %v9046_v42 = vcombine.low %v1359_v32, %v1363_v34 }
 0x450   : > { %7490 = vmatpush1.bf16.msra.mxu0 %v8980_v36  ;;  %7818 = vmatpush1.bf16.msra.mxu1 %v8982_v37  ;;  %v1370_v36 = vld [vmem:[%s9623_s22 + $0x1ff0] sm:$0xff]  ;;  %v1367_v37 = vld [vmem:[%s9623_s22 + $0x1fd8] sm:$0xff] }
 0x451   : > { %7491 = vmatprep.subr.bf16.mxu0 %v8989_v28  ;;  %7819 = vmatprep.subr.bf16.mxu1 %v8991_v55  ;;  %v1371_v28 = vld [vmem:[%s9623_s22 + $0x1ff8] sm:$0xff]  ;;  %v9044_v55 = vcombine.low %v1358_v27, %v1362_v30  ;;  %v9053_v0 = vcombine.high %v1366_v12, %v1370_v36  ;;  %v9052_v45 = vcombine.low %v1366_v12, %v1370_v36 }
 0x452   : > { %v9055_v43 = vcombine.high %v1367_v37, %v1371_v28 }
 0x454   : > { %7492 = vmatpush1.bf16.msra.mxu0 %v8988_v46  ;;  %7820 = vmatpush1.bf16.msra.mxu1 %v8990_v47  ;;  %v9054_v46 = vcombine.low %v1367_v37, %v1371_v28  ;;  %v1392_v47 = vsub.s32 4, %v9651_v44 }
 0x455   : > { %7493 = vmatprep.subr.bf16.mxu0 %v8997_v48  ;;  %7821 = vmatprep.subr.bf16.mxu1 %v8999_v49  ;;  %v1400_v48 = vsub.s32 6, %v9651_v44  ;;  %v1396_v49 = vsub.s32 5, %v9651_v44 }
 0x456   : > { %v1393_v31 = vrot.slane %v9254_v50, %v1392_v47 }
 0x457   : > { %v1401_v52 = vrot.slane %v9254_v50, %v1400_v48 }
 0x458   : > { %7494 = vmatpush1.bf16.msra.mxu0 %v8996_v10  ;;  %7822 = vmatpush1.bf16.msra.mxu1 %v8998_v54  ;;  %v1397_v10 = vrot.slane %v9254_v50, %v1396_v49  ;;  %v1405_v54 = vrot.slane %v9254_v50, %v1404_v9 }
 0x459   : > { %7495 = vmatprep.subr.bf16.mxu0 %v9005_v23  ;;  %7823 = vmatprep.subr.bf16.mxu1 %v9007_v40 }
 0x45c   : > { %7496 = vmatpush1.bf16.msra.mxu0 %v9004_v60  ;;  %7824 = vmatpush1.bf16.msra.mxu1 %v9006_v61 }
 0x45d   : > { %7497 = vmatprep.subr.bf16.mxu0 %v9013_v62  ;;  %7825 = vmatprep.subr.bf16.mxu1 %v9015_v1 }
 0x460   : > { %7498 = vmatpush1.bf16.msra.mxu0 %v9012_v4  ;;  %7826 = vmatpush1.bf16.msra.mxu1 %v9014_v5 }
 0x461   : > { %7499 = vmatprep.subr.bf16.mxu0 %v9021_v6  ;;  %7827 = vmatprep.subr.bf16.mxu1 %v9023_v7 }
 0x464   : > { %7500 = vmatpush1.bf16.msra.mxu0 %v9020_v14  ;;  %7828 = vmatpush1.bf16.msra.mxu1 %v9022_v15 }
 0x465   : > { %7501 = vmatprep.subr.bf16.mxu0 %v9029_v59  ;;  %7829 = vmatprep.subr.bf16.mxu1 %v9031_v18 }
 0x468   : > { %7502 = vmatpush1.bf16.msra.mxu0 %v9028_v29  ;;  %7830 = vmatpush1.bf16.msra.mxu1 %v9030_v13 }
 0x469   : > { %7503 = vmatprep.subr.bf16.mxu0 %v9037_v2  ;;  %7831 = vmatprep.subr.bf16.mxu1 %v9039_v24 }
 0x46c   : > { %7504 = vmatpush1.bf16.msra.mxu0 %v9036_v33  ;;  %7832 = vmatpush1.bf16.msra.mxu1 %v9038_v39 }
 0x46d   : > { %7505 = vmatprep.subr.bf16.mxu0 %v9045_v63  ;;  %7833 = vmatprep.subr.bf16.mxu1 %v9047_v35 }
 0x470   : > { %7506 = vmatpush1.bf16.msra.mxu0 %v9044_v55  ;;  %7834 = vmatpush1.bf16.msra.mxu1 %v9046_v42 }
 0x471   : > { %7507 = vmatprep.subr.bf16.mxu0 %v9053_v0  ;;  %7835 = vmatprep.subr.bf16.mxu1 %v9055_v43 }
 0x474   : > { %7508 = vmatpush1.bf16.msra.mxu0 %v9052_v45  ;;  %7836 = vmatpush1.bf16.msra.mxu1 %v9054_v46 }
 0x477   : > { %7510 = vmatmul.mubr.bf16.vlgmr.msra.gmra.mrb[4].mxu0 %v10288_v17  ;;  %7838 = vmatmul.mubr.bf16.vlgmr.msra.gmra.mrb[4].mxu1 %v10288_v17 }
 0x54a   : > { %v7511_v23 = vpop.f32.mrb[4].mxu0  ;;  %v7839_v41 = vpop.f32.mrb[4].mxu1 }
 0x54b   : > { %v9068_v40 = vadd.f32 %v7511_v23, %v1393_v31  ;;  %v7513_v56 = vpop.f32.mrb[5].mxu0  ;;  %v9070_v57 = vadd.f32 %v7839_v41, %v1401_v52  ;;  %v7841_v58 = vpop.f32.mrb[5].mxu1 }
 0x54c   : > { %v9069_v17 = vadd.f32 %v7513_v56, %v1397_v10  ;;  %v7515_v60 = vpop.f32.mrb[6].mxu0  ;;  %v9071_v62 = vadd.f32 %v7841_v58, %v1405_v54  ;;  %v7843_v1 = vpop.f32.mrb[6].mxu1 }
 0x54d   : > { %v7850_v61 = vmax.f32 %v9068_v40, 0.0  ;;  %v7516_v44 = vpop.f32.mrb[7].mxu0  ;;  %v7852_v16 = vmax.f32 %v9070_v57, 0.0  ;;  %v7844_v3 = vpop.f32.mrb[7].mxu1 }
 0x54e   : > { %v7851_v26 = vmax.f32 %v9069_v17, 0.0  ;;  %v7853_v51 = vmax.f32 %v9071_v62, 0.0 }
 0x550   : > { %v7879_v4 = vcombine.low %v7850_v61, %v7851_v26  ;;  %v7880_v5 = vcombine.low %v7852_v16, %v7853_v51 }
 0x552   : > { %v7887_v6 = vrot.slane %v7879_v4, %v9658_v53  ;;  %v7894_v7 = vrot.slane %v7880_v5, %v9658_v53 }
 0x554   : > { %v7895_v8 = vcombine.low %v7887_v6, %v7894_v7 }
 0x556   : > { %7899 = vst [vmem:[%s10547_s10 + $0x8] sm:$0xff] %v7895_v8 }
 0x557   : > { %9356 = shalt.err (!%p9353_p1)
}
 0x558   : > { %s9357_s17 = scalar_lea.hbm %s10856_s5, 256  ;;  %s9361_s21 = scalar_lea.hbm %s10903_s3, 1024 }
 0x559   : > { %p9358_p5 = scmp.ne.s32.totalorder %s10856_s5, %s9357_s17  ;;  %p9362_p6 = scmp.lt.u32.totalorder %s10856_s5, %s10903_s3 }
 0x55a   : > { %p9363_p8 = scmp.lt.u32.totalorder %s9361_s21, %s9357_s17  ;;  %p9365_p11 = scmp.lt.u32.totalorder %s9357_s17, %s10856_s5 }
 0x55b   : > { %p9359_p4 = pnand %p9358_p5, %p10924_p3 }
 0x55c   : > { %p9364_p13 = por %p9363_p8, %p9362_p6 }
 0x55d   : > { %p9360_p2 = pneg %p9359_p4 }
 0x55e   : > { %p9366_p0 = por %p9365_p11, %p9364_p13 }
 0x560   : > { %p9367_p10 = pnand %p9366_p0, %p9360_p2 }
 0x562   : > { %9370 = shalt.err (!%p9367_p10)
}
 0x563   : > { %9192 = dma.vmem_to_hbm [thread:$0]  (%p10924_p3), %s10858_s23, 256, %s10856_s5, %s7901_s6  }
 0x564 PF: > { %p9212_p12 = scmp.ge.s32.totalorder %s9413_s15, 2  ;;  %s7927_s27 = sand.u32 1, %s9401_s12  }
 0x565   : > { %p10925_p9 = scmp.ne.s32.totalorder %s10914_s28, 0  ;;  %s7928_s4 = scalar_lea.sflag [#allocation4], %s7927_s27 }
 0x567   : > { %p9206_p7 = pnand %p9212_p12, %p10925_p9 }
 0x569   : > { %9396 = dma.done.wait (!%p9206_p7), %s7928_s4, 256  }
 0x56a   : > { %9398 = vsyncadd (!%p9206_p7), %s7928_s4, 4294967040  ;;  %p17_p1 = scmp.ge.s32.totalorder %s9464_s16, 6   ;;  %s10926_s12 = smov %s9405_s13 }
 0x56b   : > { %s10927_s13 = smov %s9409_s14  ;;  %s10928_s14 = smov %s9474_s19 }
 0x56c   : > { %s10929_s15 = smov %s9464_s16  ;;  %19 = sbr.rel (!%p17_p1) target bundleno = 6 (0x6), region = 93 }
 0x573   :  { %7933 = vsyncpa [#allocation3], 1 }
 0x574   :  { %7935 = vsyncpa [#allocation3 + $0x1], 1 }
 0x575   :  { %7936 = vsyncpa [#allocation6], 1 }
 0x576   :  { %7938 = vsyncpa [#allocation6 + $0x1], 1 }
 0x577   :  { %7939 = vsyncpa [#allocation4], 1 }
 0x578   :  { %7941 = vsyncpa [#allocation4 + $0x1], 1 }

</bundles_post_ra>
